<compile_context>
chip_gen: v5e
topology: v5e:2x2
jax: 0.10.0
libtpu: 0.0.40
codegen_flags: <defaults>
</compile_context>

<pallas_src>
import jax
import jax.numpy as jnp
import numpy as np
from jax.experimental import pallas as pl
from jax.experimental.pallas import tpu as pltpu

N, C, H, W = 2, 3, 16, 16        # input images (NCHW)
HID = 4                          # hidden channels of the synthetic base autoencoder
CP = 8                           # channel dim padded to one full sublane group
L = N * H * W                    # 512 flattened batch*spatial positions (lane axis)
NUM_ITERATIONS = 3
REFINEMENT_SCALE = 0.7
KH = KW = 3                      # 3x3 convs, padding=1, stride=1


def _refined_ae_kernel(x_ref,
                       w_enc_ref, b_enc_ref,
                       w_dec_ref, b_dec_ref,
                       w_r1_ref, b_r1_ref,
                       w_r2_ref, b_r2_ref,
                       out_ref):
    # ---- hoisted tap shifts + boundary masks (built once, reused by all 8 convs) ----
    col = jax.lax.broadcasted_iota(jnp.int32, (1, L), 1)
    w_pos = col % W                  # position within an image row
    hw_pos = col % (H * W)           # position within one image
    shifts = []
    masks = []
    for dh in (-1, 0, 1):
        for dw in (-1, 0, 1):
            shifts.append((-(dh * W + dw)) % L)
            keep = None
            if dh == -1:
                keep = hw_pos >= W
            elif dh == 1:
                keep = hw_pos < (H - 1) * W
            if dw == -1:
                c = w_pos >= 1
                keep = c if keep is None else (keep & c)
            elif dw == 1:
                c = w_pos < (W - 1)
                keep = c if keep is None else (keep & c)
            masks.append(None if keep is None else keep.astype(jnp.float32))

    def conv3x3(a, w_taps, b_col):
        """SAME 3x3 conv.  a: (CP, L); w_taps: (9, CP, CP); b_col: (CP, 1)."""
        # center tap: no shift, no mask
        y = jnp.dot(w_taps[4], a, preferred_element_type=jnp.float32) + b_col
        for t in range(KH * KW):
            if t == 4:
                continue
            tap = pltpu.roll(a, shifts[t], 1)
            if masks[t] is not None:
                tap = tap * masks[t]
            y = y + jnp.dot(w_taps[t], tap, preferred_element_type=jnp.float32)
        return y

    # ---- hoisted parameter loads (single VMEM read each, reused across iterations) ----
    x = x_ref[...]
    w_enc, b_enc = w_enc_ref[...], b_enc_ref[...]
    w_dec, b_dec = w_dec_ref[...], b_dec_ref[...]
    w_r1, b_r1 = w_r1_ref[...], b_r1_ref[...]
    w_r2, b_r2 = w_r2_ref[...], b_r2_ref[...]

    # ---- base autoencoder: conv -> ReLU -> conv -> sigmoid ----
    hid = jnp.maximum(conv3x3(x, w_enc, b_enc), 0.0)
    x_hat = jax.nn.sigmoid(conv3x3(hid, w_dec, b_dec))

    # ---- iterative refinement: x_hat += scale * conv(relu(conv(x_hat))) ----
    for _ in range(NUM_ITERATIONS):
        r = jnp.maximum(conv3x3(x_hat, w_r1, b_r1), 0.0)
        corr = conv3x3(r, w_r2, b_r2)
        x_hat = x_hat + REFINEMENT_SCALE * corr

    out_ref[...] = x_hat             # single full-width (8, 512) store


def _pack_w(w):
    """OIHW (co, ci, 3, 3) -> (9, CP, CP), tap index = kh*3 + kw, zero-padded."""
    co, ci = w.shape[0], w.shape[1]
    wt = jnp.transpose(w, (2, 3, 0, 1)).reshape(KH * KW, co, ci)
    return jnp.pad(wt, ((0, 0), (0, CP - co), (0, CP - ci)))


def _pack_b(b):
    return jnp.pad(b.reshape(-1, 1), ((0, CP - b.shape[0]), (0, 0)))


def refined_autoencoder(x, params):
    w_enc, b_enc, w_dec, b_dec, w_r1, b_r1, w_r2, b_r2 = params
    # lane-dense kernel I/O: (channels padded to 8, N*H*W)
    x_flat = jnp.pad(jnp.transpose(x, (1, 0, 2, 3)).reshape(C, L),
                     ((0, CP - C), (0, 0))).astype(jnp.float32)
    vmem = pl.BlockSpec(memory_space=pltpu.MemorySpace.VMEM)
    out_flat = pl.pallas_call(
        _refined_ae_kernel,
        out_shape=jax.ShapeDtypeStruct((CP, L), jnp.float32),
        in_specs=[vmem] * 9,
        out_specs=vmem,
    )(x_flat,
      _pack_w(w_enc), _pack_b(b_enc),
      _pack_w(w_dec), _pack_b(b_dec),
      _pack_w(w_r1), _pack_b(b_r1),
      _pack_w(w_r2), _pack_b(b_r2))
    return jnp.transpose(out_flat[:C].reshape(C, N, H, W), (1, 0, 2, 3))


# ----------------------------- pure-JAX reference -----------------------------
def _conv_ref(x, w, b):
    out = jax.lax.conv_general_dilated(
        x, w, window_strides=(1, 1), padding="SAME",
        dimension_numbers=("NCHW", "OIHW", "NCHW"),
        precision=jax.lax.Precision.HIGHEST)
    return out + b[None, :, None, None]


def _forward_ref(x, params):
    w_enc, b_enc, w_dec, b_dec, w_r1, b_r1, w_r2, b_r2 = params
    hid = jax.nn.relu(_conv_ref(x, w_enc, b_enc))
    x_hat = jax.nn.sigmoid(_conv_ref(hid, w_dec, b_dec))
    for _ in range(NUM_ITERATIONS):
        corr = _conv_ref(jax.nn.relu(_conv_ref(x_hat, w_r1, b_r1)), w_r2, b_r2)
        x_hat = x_hat + REFINEMENT_SCALE * corr
    return x_hat


if __name__ == "__main__":
    key = jax.random.PRNGKey(0)
    ks = jax.random.split(key, 9)
    x = jax.random.normal(ks[0], (N, C, H, W), jnp.float32)

    def init_conv(kw, kb, cout, cin):
        # deterministic, PyTorch-Conv2d-style uniform fan-in init
        scale = 1.0 / np.sqrt(cin * KH * KW)
        w = jax.random.uniform(kw, (cout, cin, KH, KW), jnp.float32, -scale, scale)
        b = jax.random.uniform(kb, (cout,), jnp.float32, -scale, scale)
        return w, b

    w_enc, b_enc = init_conv(ks[1], ks[2], HID, C)
    w_dec, b_dec = init_conv(ks[3], ks[4], C, HID)
    w_r1, b_r1 = init_conv(ks[5], ks[6], C, C)
    w_r2, b_r2 = init_conv(ks[7], ks[8], C, C)
    params = (w_enc, b_enc, w_dec, b_dec, w_r1, b_r1, w_r2, b_r2)

    out = jax.jit(refined_autoencoder)(x, params)
    out = jax.block_until_ready(out)

    ref = _forward_ref(x, params)
    np.testing.assert_allclose(np.asarray(out), np.asarray(ref),
                               rtol=5e-3, atol=5e-3)
    print("KERNEL_OK")
</pallas_src>

<mosaic_0001>
module attributes {stable_mosaic.version = 11 : i64} {
  func.func @_refined_ae_kernel(%arg0: memref<8x512xf32, #tpu.memory_space<vmem>>, %arg1: memref<9x8x8xf32, #tpu.memory_space<vmem>>, %arg2: memref<8x1xf32, #tpu.memory_space<vmem>>, %arg3: memref<9x8x8xf32, #tpu.memory_space<vmem>>, %arg4: memref<8x1xf32, #tpu.memory_space<vmem>>, %arg5: memref<9x8x8xf32, #tpu.memory_space<vmem>>, %arg6: memref<8x1xf32, #tpu.memory_space<vmem>>, %arg7: memref<9x8x8xf32, #tpu.memory_space<vmem>>, %arg8: memref<8x1xf32, #tpu.memory_space<vmem>>, %arg9: memref<8x512xf32, #tpu.memory_space<vmem>>) attributes {dimension_semantics = [], scalar_prefetch = 0 : i64, scratch_operands = 0 : i64, tpu.core_type = #tpu.core_type<tc>} {
    %0 = tpu.iota {dimensions = array<i32: 1>} : vector<1x512xi32>
    %c16_i32 = arith.constant 16 : i32
    %c0_i32 = arith.constant 0 : i32
    %1 = arith.cmpi eq, %c16_i32, %c0_i32 : i32
    %c1_i32 = arith.constant 1 : i32
    %2 = arith.select %1, %c1_i32, %c16_i32 : i32
    %3 = vector.broadcast %2 : i32 to vector<1x512xi32>
    %4 = arith.remsi %0, %3 : vector<1x512xi32>
    %c0_i32_0 = arith.constant 0 : i32
    %5 = vector.broadcast %c0_i32_0 : i32 to vector<1x512xi32>
    %6 = arith.cmpi ne, %4, %5 : vector<1x512xi32>
    %c0_i32_1 = arith.constant 0 : i32
    %7 = vector.broadcast %c0_i32_1 : i32 to vector<1x512xi32>
    %8 = arith.cmpi slt, %4, %7 : vector<1x512xi32>
    %c0_i32_2 = arith.constant 0 : i32
    %9 = arith.cmpi slt, %2, %c0_i32_2 : i32
    %10 = vector.broadcast %9 : i1 to vector<1x512xi1>
    %11 = vector.broadcast %10 : vector<1x512xi1> to vector<1x512xi1>
    %12 = arith.xori %8, %11 : vector<1x512xi1>
    %13 = arith.andi %12, %6 : vector<1x512xi1>
    %14 = vector.broadcast %2 : i32 to vector<1x512xi32>
    %15 = arith.addi %4, %14 : vector<1x512xi32>
    %16 = arith.select %13, %15, %4 : vector<1x512xi1>, vector<1x512xi32>
    %c256_i32 = arith.constant 256 : i32
    %c0_i32_3 = arith.constant 0 : i32
    %17 = arith.cmpi eq, %c256_i32, %c0_i32_3 : i32
    %c1_i32_4 = arith.constant 1 : i32
    %18 = arith.select %17, %c1_i32_4, %c256_i32 : i32
    %19 = vector.broadcast %18 : i32 to vector<1x512xi32>
    %20 = arith.remsi %0, %19 : vector<1x512xi32>
    %c0_i32_5 = arith.constant 0 : i32
    %21 = vector.broadcast %c0_i32_5 : i32 to vector<1x512xi32>
    %22 = arith.cmpi ne, %20, %21 : vector<1x512xi32>
    %c0_i32_6 = arith.constant 0 : i32
    %23 = vector.broadcast %c0_i32_6 : i32 to vector<1x512xi32>
    %24 = arith.cmpi slt, %20, %23 : vector<1x512xi32>
    %c0_i32_7 = arith.constant 0 : i32
    %25 = arith.cmpi slt, %18, %c0_i32_7 : i32
    %26 = vector.broadcast %25 : i1 to vector<1x512xi1>
    %27 = vector.broadcast %26 : vector<1x512xi1> to vector<1x512xi1>
    %28 = arith.xori %24, %27 : vector<1x512xi1>
    %29 = arith.andi %28, %22 : vector<1x512xi1>
    %30 = vector.broadcast %18 : i32 to vector<1x512xi32>
    %31 = arith.addi %20, %30 : vector<1x512xi32>
    %32 = arith.select %29, %31, %20 : vector<1x512xi1>, vector<1x512xi32>
    %c16_i32_8 = arith.constant 16 : i32
    %33 = vector.broadcast %c16_i32_8 : i32 to vector<1x512xi32>
    %34 = arith.cmpi sge, %32, %33 : vector<1x512xi32>
    %c1_i32_9 = arith.constant 1 : i32
    %35 = vector.broadcast %c1_i32_9 : i32 to vector<1x512xi32>
    %36 = arith.cmpi sge, %16, %35 : vector<1x512xi32>
    %37 = arith.andi %34, %36 : vector<1x512xi1>
    %38 = arith.extui %37 : vector<1x512xi1> to vector<1x512xi32>
    %39 = arith.sitofp %38 : vector<1x512xi32> to vector<1x512xf32>
    %c16_i32_10 = arith.constant 16 : i32
    %40 = vector.broadcast %c16_i32_10 : i32 to vector<1x512xi32>
    %41 = arith.cmpi sge, %32, %40 : vector<1x512xi32>
    %42 = arith.extui %41 : vector<1x512xi1> to vector<1x512xi32>
    %43 = arith.sitofp %42 : vector<1x512xi32> to vector<1x512xf32>
    %c16_i32_11 = arith.constant 16 : i32
    %44 = vector.broadcast %c16_i32_11 : i32 to vector<1x512xi32>
    %45 = arith.cmpi sge, %32, %44 : vector<1x512xi32>
    %c15_i32 = arith.constant 15 : i32
    %46 = vector.broadcast %c15_i32 : i32 to vector<1x512xi32>
    %47 = arith.cmpi slt, %16, %46 : vector<1x512xi32>
    %48 = arith.andi %45, %47 : vector<1x512xi1>
    %49 = arith.extui %48 : vector<1x512xi1> to vector<1x512xi32>
    %50 = arith.sitofp %49 : vector<1x512xi32> to vector<1x512xf32>
    %c1_i32_12 = arith.constant 1 : i32
    %51 = vector.broadcast %c1_i32_12 : i32 to vector<1x512xi32>
    %52 = arith.cmpi sge, %16, %51 : vector<1x512xi32>
    %53 = arith.extui %52 : vector<1x512xi1> to vector<1x512xi32>
    %54 = arith.sitofp %53 : vector<1x512xi32> to vector<1x512xf32>
    %c15_i32_13 = arith.constant 15 : i32
    %55 = vector.broadcast %c15_i32_13 : i32 to vector<1x512xi32>
    %56 = arith.cmpi slt, %16, %55 : vector<1x512xi32>
    %57 = arith.extui %56 : vector<1x512xi1> to vector<1x512xi32>
    %58 = arith.sitofp %57 : vector<1x512xi32> to vector<1x512xf32>
    %c240_i32 = arith.constant 240 : i32
    %59 = vector.broadcast %c240_i32 : i32 to vector<1x512xi32>
    %60 = arith.cmpi slt, %32, %59 : vector<1x512xi32>
    %c1_i32_14 = arith.constant 1 : i32
    %61 = vector.broadcast %c1_i32_14 : i32 to vector<1x512xi32>
    %62 = arith.cmpi sge, %16, %61 : vector<1x512xi32>
    %63 = arith.andi %60, %62 : vector<1x512xi1>
    %64 = arith.extui %63 : vector<1x512xi1> to vector<1x512xi32>
    %65 = arith.sitofp %64 : vector<1x512xi32> to vector<1x512xf32>
    %c240_i32_15 = arith.constant 240 : i32
    %66 = vector.broadcast %c240_i32_15 : i32 to vector<1x512xi32>
    %67 = arith.cmpi slt, %32, %66 : vector<1x512xi32>
    %68 = arith.extui %67 : vector<1x512xi1> to vector<1x512xi32>
    %69 = arith.sitofp %68 : vector<1x512xi32> to vector<1x512xf32>
    %c240_i32_16 = arith.constant 240 : i32
    %70 = vector.broadcast %c240_i32_16 : i32 to vector<1x512xi32>
    %71 = arith.cmpi slt, %32, %70 : vector<1x512xi32>
    %c15_i32_17 = arith.constant 15 : i32
    %72 = vector.broadcast %c15_i32_17 : i32 to vector<1x512xi32>
    %73 = arith.cmpi slt, %16, %72 : vector<1x512xi32>
    %74 = arith.andi %71, %73 : vector<1x512xi1>
    %75 = arith.extui %74 : vector<1x512xi1> to vector<1x512xi32>
    %76 = arith.sitofp %75 : vector<1x512xi32> to vector<1x512xf32>
    %c0 = arith.constant 0 : index
    %c0_18 = arith.constant 0 : index
    %77 = vector.load %arg0[%c0, %c0_18] : memref<8x512xf32, #tpu.memory_space<vmem>>, vector<8x512xf32>
    %c0_19 = arith.constant 0 : index
    %c0_20 = arith.constant 0 : index
    %c0_21 = arith.constant 0 : index
    %78 = vector.load %arg1[%c0_19, %c0_20, %c0_21] : memref<9x8x8xf32, #tpu.memory_space<vmem>>, vector<9x8x8xf32>
    %c0_22 = arith.constant 0 : index
    %c0_23 = arith.constant 0 : index
    %79 = vector.load %arg2[%c0_22, %c0_23] : memref<8x1xf32, #tpu.memory_space<vmem>>, vector<8x1xf32>
    %c0_24 = arith.constant 0 : index
    %c0_25 = arith.constant 0 : index
    %c0_26 = arith.constant 0 : index
    %80 = vector.load %arg3[%c0_24, %c0_25, %c0_26] : memref<9x8x8xf32, #tpu.memory_space<vmem>>, vector<9x8x8xf32>
    %c0_27 = arith.constant 0 : index
    %c0_28 = arith.constant 0 : index
    %81 = vector.load %arg4[%c0_27, %c0_28] : memref<8x1xf32, #tpu.memory_space<vmem>>, vector<8x1xf32>
    %c0_29 = arith.constant 0 : index
    %c0_30 = arith.constant 0 : index
    %c0_31 = arith.constant 0 : index
    %82 = vector.load %arg5[%c0_29, %c0_30, %c0_31] : memref<9x8x8xf32, #tpu.memory_space<vmem>>, vector<9x8x8xf32>
    %c0_32 = arith.constant 0 : index
    %c0_33 = arith.constant 0 : index
    %83 = vector.load %arg6[%c0_32, %c0_33] : memref<8x1xf32, #tpu.memory_space<vmem>>, vector<8x1xf32>
    %c0_34 = arith.constant 0 : index
    %c0_35 = arith.constant 0 : index
    %c0_36 = arith.constant 0 : index
    %84 = vector.load %arg7[%c0_34, %c0_35, %c0_36] : memref<9x8x8xf32, #tpu.memory_space<vmem>>, vector<9x8x8xf32>
    %c0_37 = arith.constant 0 : index
    %c0_38 = arith.constant 0 : index
    %85 = vector.load %arg8[%c0_37, %c0_38] : memref<8x1xf32, #tpu.memory_space<vmem>>, vector<8x1xf32>
    %86 = vector.extract_strided_slice %78 {offsets = [4, 0, 0], sizes = [1, 8, 8], strides = [1, 1, 1]} : vector<9x8x8xf32> to vector<1x8x8xf32>
    %87 = vector.shape_cast %86 : vector<1x8x8xf32> to vector<8x8xf32>
    %cst = arith.constant dense<0.000000e+00> : vector<8x512xf32>
    %88 = tpu.matmul %87, %77, %cst {dimension_numbers = #tpu.dot_dimension_numbers<[1], [0], [0], [1], [0, 0, 1, 1], [], []>} : vector<8x8xf32>, vector<8x512xf32>, vector<8x512xf32> -> vector<8x512xf32>
    %89 = vector.broadcast %79 : vector<8x1xf32> to vector<8x512xf32>
    %90 = arith.addf %88, %89 : vector<8x512xf32>
    %c17_i32 = arith.constant 17 : i32
    %91 = tpu.dynamic_rotate %77 by %c17_i32 dim 1 : vector<8x512xf32>, i32 -> vector<8x512xf32>
    %92 = vector.broadcast %39 : vector<1x512xf32> to vector<8x512xf32>
    %93 = arith.mulf %91, %92 : vector<8x512xf32>
    %94 = vector.extract_strided_slice %78 {offsets = [0, 0, 0], sizes = [1, 8, 8], strides = [1, 1, 1]} : vector<9x8x8xf32> to vector<1x8x8xf32>
    %95 = vector.shape_cast %94 : vector<1x8x8xf32> to vector<8x8xf32>
    %cst_39 = arith.constant dense<0.000000e+00> : vector<8x512xf32>
    %96 = tpu.matmul %95, %93, %cst_39 {dimension_numbers = #tpu.dot_dimension_numbers<[1], [0], [0], [1], [0, 0, 1, 1], [], []>} : vector<8x8xf32>, vector<8x512xf32>, vector<8x512xf32> -> vector<8x512xf32>
    %97 = arith.addf %90, %96 : vector<8x512xf32>
    %c16_i32_40 = arith.constant 16 : i32
    %98 = tpu.dynamic_rotate %77 by %c16_i32_40 dim 1 : vector<8x512xf32>, i32 -> vector<8x512xf32>
    %99 = vector.broadcast %43 : vector<1x512xf32> to vector<8x512xf32>
    %100 = arith.mulf %98, %99 : vector<8x512xf32>
    %101 = vector.extract_strided_slice %78 {offsets = [1, 0, 0], sizes = [1, 8, 8], strides = [1, 1, 1]} : vector<9x8x8xf32> to vector<1x8x8xf32>
    %102 = vector.shape_cast %101 : vector<1x8x8xf32> to vector<8x8xf32>
    %cst_41 = arith.constant dense<0.000000e+00> : vector<8x512xf32>
    %103 = tpu.matmul %102, %100, %cst_41 {dimension_numbers = #tpu.dot_dimension_numbers<[1], [0], [0], [1], [0, 0, 1, 1], [], []>} : vector<8x8xf32>, vector<8x512xf32>, vector<8x512xf32> -> vector<8x512xf32>
    %104 = arith.addf %97, %103 : vector<8x512xf32>
    %c15_i32_42 = arith.constant 15 : i32
    %105 = tpu.dynamic_rotate %77 by %c15_i32_42 dim 1 : vector<8x512xf32>, i32 -> vector<8x512xf32>
    %106 = vector.broadcast %50 : vector<1x512xf32> to vector<8x512xf32>
    %107 = arith.mulf %105, %106 : vector<8x512xf32>
    %108 = vector.extract_strided_slice %78 {offsets = [2, 0, 0], sizes = [1, 8, 8], strides = [1, 1, 1]} : vector<9x8x8xf32> to vector<1x8x8xf32>
    %109 = vector.shape_cast %108 : vector<1x8x8xf32> to vector<8x8xf32>
    %cst_43 = arith.constant dense<0.000000e+00> : vector<8x512xf32>
    %110 = tpu.matmul %109, %107, %cst_43 {dimension_numbers = #tpu.dot_dimension_numbers<[1], [0], [0], [1], [0, 0, 1, 1], [], []>} : vector<8x8xf32>, vector<8x512xf32>, vector<8x512xf32> -> vector<8x512xf32>
    %111 = arith.addf %104, %110 : vector<8x512xf32>
    %c1_i32_44 = arith.constant 1 : i32
    %112 = tpu.dynamic_rotate %77 by %c1_i32_44 dim 1 : vector<8x512xf32>, i32 -> vector<8x512xf32>
    %113 = vector.broadcast %54 : vector<1x512xf32> to vector<8x512xf32>
    %114 = arith.mulf %112, %113 : vector<8x512xf32>
    %115 = vector.extract_strided_slice %78 {offsets = [3, 0, 0], sizes = [1, 8, 8], strides = [1, 1, 1]} : vector<9x8x8xf32> to vector<1x8x8xf32>
    %116 = vector.shape_cast %115 : vector<1x8x8xf32> to vector<8x8xf32>
    %cst_45 = arith.constant dense<0.000000e+00> : vector<8x512xf32>
    %117 = tpu.matmul %116, %114, %cst_45 {dimension_numbers = #tpu.dot_dimension_numbers<[1], [0], [0], [1], [0, 0, 1, 1], [], []>} : vector<8x8xf32>, vector<8x512xf32>, vector<8x512xf32> -> vector<8x512xf32>
    %118 = arith.addf %111, %117 : vector<8x512xf32>
    %c511_i32 = arith.constant 511 : i32
    %119 = tpu.dynamic_rotate %77 by %c511_i32 dim 1 : vector<8x512xf32>, i32 -> vector<8x512xf32>
    %120 = vector.broadcast %58 : vector<1x512xf32> to vector<8x512xf32>
    %121 = arith.mulf %119, %120 : vector<8x512xf32>
    %122 = vector.extract_strided_slice %78 {offsets = [5, 0, 0], sizes = [1, 8, 8], strides = [1, 1, 1]} : vector<9x8x8xf32> to vector<1x8x8xf32>
    %123 = vector.shape_cast %122 : vector<1x8x8xf32> to vector<8x8xf32>
    %cst_46 = arith.constant dense<0.000000e+00> : vector<8x512xf32>
    %124 = tpu.matmul %123, %121, %cst_46 {dimension_numbers = #tpu.dot_dimension_numbers<[1], [0], [0], [1], [0, 0, 1, 1], [], []>} : vector<8x8xf32>, vector<8x512xf32>, vector<8x512xf32> -> vector<8x512xf32>
    %125 = arith.addf %118, %124 : vector<8x512xf32>
    %c497_i32 = arith.constant 497 : i32
    %126 = tpu.dynamic_rotate %77 by %c497_i32 dim 1 : vector<8x512xf32>, i32 -> vector<8x512xf32>
    %127 = vector.broadcast %65 : vector<1x512xf32> to vector<8x512xf32>
    %128 = arith.mulf %126, %127 : vector<8x512xf32>
    %129 = vector.extract_strided_slice %78 {offsets = [6, 0, 0], sizes = [1, 8, 8], strides = [1, 1, 1]} : vector<9x8x8xf32> to vector<1x8x8xf32>
    %130 = vector.shape_cast %129 : vector<1x8x8xf32> to vector<8x8xf32>
    %cst_47 = arith.constant dense<0.000000e+00> : vector<8x512xf32>
    %131 = tpu.matmul %130, %128, %cst_47 {dimension_numbers = #tpu.dot_dimension_numbers<[1], [0], [0], [1], [0, 0, 1, 1], [], []>} : vector<8x8xf32>, vector<8x512xf32>, vector<8x512xf32> -> vector<8x512xf32>
    %132 = arith.addf %125, %131 : vector<8x512xf32>
    %c496_i32 = arith.constant 496 : i32
    %133 = tpu.dynamic_rotate %77 by %c496_i32 dim 1 : vector<8x512xf32>, i32 -> vector<8x512xf32>
    %134 = vector.broadcast %69 : vector<1x512xf32> to vector<8x512xf32>
    %135 = arith.mulf %133, %134 : vector<8x512xf32>
    %136 = vector.extract_strided_slice %78 {offsets = [7, 0, 0], sizes = [1, 8, 8], strides = [1, 1, 1]} : vector<9x8x8xf32> to vector<1x8x8xf32>
    %137 = vector.shape_cast %136 : vector<1x8x8xf32> to vector<8x8xf32>
    %cst_48 = arith.constant dense<0.000000e+00> : vector<8x512xf32>
    %138 = tpu.matmul %137, %135, %cst_48 {dimension_numbers = #tpu.dot_dimension_numbers<[1], [0], [0], [1], [0, 0, 1, 1], [], []>} : vector<8x8xf32>, vector<8x512xf32>, vector<8x512xf32> -> vector<8x512xf32>
    %139 = arith.addf %132, %138 : vector<8x512xf32>
    %c495_i32 = arith.constant 495 : i32
    %140 = tpu.dynamic_rotate %77 by %c495_i32 dim 1 : vector<8x512xf32>, i32 -> vector<8x512xf32>
    %141 = vector.broadcast %76 : vector<1x512xf32> to vector<8x512xf32>
    %142 = arith.mulf %140, %141 : vector<8x512xf32>
    %143 = vector.extract_strided_slice %78 {offsets = [8, 0, 0], sizes = [1, 8, 8], strides = [1, 1, 1]} : vector<9x8x8xf32> to vector<1x8x8xf32>
    %144 = vector.shape_cast %143 : vector<1x8x8xf32> to vector<8x8xf32>
    %cst_49 = arith.constant dense<0.000000e+00> : vector<8x512xf32>
    %145 = tpu.matmul %144, %142, %cst_49 {dimension_numbers = #tpu.dot_dimension_numbers<[1], [0], [0], [1], [0, 0, 1, 1], [], []>} : vector<8x8xf32>, vector<8x512xf32>, vector<8x512xf32> -> vector<8x512xf32>
    %146 = arith.addf %139, %145 : vector<8x512xf32>
    %cst_50 = arith.constant 0.000000e+00 : f32
    %147 = vector.broadcast %cst_50 : f32 to vector<8x512xf32>
    %148 = arith.maximumf %146, %147 : vector<8x512xf32>
    %149 = vector.extract_strided_slice %80 {offsets = [4, 0, 0], sizes = [1, 8, 8], strides = [1, 1, 1]} : vector<9x8x8xf32> to vector<1x8x8xf32>
    %150 = vector.shape_cast %149 : vector<1x8x8xf32> to vector<8x8xf32>
    %cst_51 = arith.constant dense<0.000000e+00> : vector<8x512xf32>
    %151 = tpu.matmul %150, %148, %cst_51 {dimension_numbers = #tpu.dot_dimension_numbers<[1], [0], [0], [1], [0, 0, 1, 1], [], []>} : vector<8x8xf32>, vector<8x512xf32>, vector<8x512xf32> -> vector<8x512xf32>
    %152 = vector.broadcast %81 : vector<8x1xf32> to vector<8x512xf32>
    %153 = arith.addf %151, %152 : vector<8x512xf32>
    %c17_i32_52 = arith.constant 17 : i32
    %154 = tpu.dynamic_rotate %148 by %c17_i32_52 dim 1 : vector<8x512xf32>, i32 -> vector<8x512xf32>
    %155 = vector.broadcast %39 : vector<1x512xf32> to vector<8x512xf32>
    %156 = arith.mulf %154, %155 : vector<8x512xf32>
    %157 = vector.extract_strided_slice %80 {offsets = [0, 0, 0], sizes = [1, 8, 8], strides = [1, 1, 1]} : vector<9x8x8xf32> to vector<1x8x8xf32>
    %158 = vector.shape_cast %157 : vector<1x8x8xf32> to vector<8x8xf32>
    %cst_53 = arith.constant dense<0.000000e+00> : vector<8x512xf32>
    %159 = tpu.matmul %158, %156, %cst_53 {dimension_numbers = #tpu.dot_dimension_numbers<[1], [0], [0], [1], [0, 0, 1, 1], [], []>} : vector<8x8xf32>, vector<8x512xf32>, vector<8x512xf32> -> vector<8x512xf32>
    %160 = arith.addf %153, %159 : vector<8x512xf32>
    %c16_i32_54 = arith.constant 16 : i32
    %161 = tpu.dynamic_rotate %148 by %c16_i32_54 dim 1 : vector<8x512xf32>, i32 -> vector<8x512xf32>
    %162 = vector.broadcast %43 : vector<1x512xf32> to vector<8x512xf32>
    %163 = arith.mulf %161, %162 : vector<8x512xf32>
    %164 = vector.extract_strided_slice %80 {offsets = [1, 0, 0], sizes = [1, 8, 8], strides = [1, 1, 1]} : vector<9x8x8xf32> to vector<1x8x8xf32>
    %165 = vector.shape_cast %164 : vector<1x8x8xf32> to vector<8x8xf32>
    %cst_55 = arith.constant dense<0.000000e+00> : vector<8x512xf32>
    %166 = tpu.matmul %165, %163, %cst_55 {dimension_numbers = #tpu.dot_dimension_numbers<[1], [0], [0], [1], [0, 0, 1, 1], [], []>} : vector<8x8xf32>, vector<8x512xf32>, vector<8x512xf32> -> vector<8x512xf32>
    %167 = arith.addf %160, %166 : vector<8x512xf32>
    %c15_i32_56 = arith.constant 15 : i32
    %168 = tpu.dynamic_rotate %148 by %c15_i32_56 dim 1 : vector<8x512xf32>, i32 -> vector<8x512xf32>
    %169 = vector.broadcast %50 : vector<1x512xf32> to vector<8x512xf32>
    %170 = arith.mulf %168, %169 : vector<8x512xf32>
    %171 = vector.extract_strided_slice %80 {offsets = [2, 0, 0], sizes = [1, 8, 8], strides = [1, 1, 1]} : vector<9x8x8xf32> to vector<1x8x8xf32>
    %172 = vector.shape_cast %171 : vector<1x8x8xf32> to vector<8x8xf32>
    %cst_57 = arith.constant dense<0.000000e+00> : vector<8x512xf32>
    %173 = tpu.matmul %172, %170, %cst_57 {dimension_numbers = #tpu.dot_dimension_numbers<[1], [0], [0], [1], [0, 0, 1, 1], [], []>} : vector<8x8xf32>, vector<8x512xf32>, vector<8x512xf32> -> vector<8x512xf32>
    %174 = arith.addf %167, %173 : vector<8x512xf32>
    %c1_i32_58 = arith.constant 1 : i32
    %175 = tpu.dynamic_rotate %148 by %c1_i32_58 dim 1 : vector<8x512xf32>, i32 -> vector<8x512xf32>
    %176 = vector.broadcast %54 : vector<1x512xf32> to vector<8x512xf32>
    %177 = arith.mulf %175, %176 : vector<8x512xf32>
    %178 = vector.extract_strided_slice %80 {offsets = [3, 0, 0], sizes = [1, 8, 8], strides = [1, 1, 1]} : vector<9x8x8xf32> to vector<1x8x8xf32>
    %179 = vector.shape_cast %178 : vector<1x8x8xf32> to vector<8x8xf32>
    %cst_59 = arith.constant dense<0.000000e+00> : vector<8x512xf32>
    %180 = tpu.matmul %179, %177, %cst_59 {dimension_numbers = #tpu.dot_dimension_numbers<[1], [0], [0], [1], [0, 0, 1, 1], [], []>} : vector<8x8xf32>, vector<8x512xf32>, vector<8x512xf32> -> vector<8x512xf32>
    %181 = arith.addf %174, %180 : vector<8x512xf32>
    %c511_i32_60 = arith.constant 511 : i32
    %182 = tpu.dynamic_rotate %148 by %c511_i32_60 dim 1 : vector<8x512xf32>, i32 -> vector<8x512xf32>
    %183 = vector.broadcast %58 : vector<1x512xf32> to vector<8x512xf32>
    %184 = arith.mulf %182, %183 : vector<8x512xf32>
    %185 = vector.extract_strided_slice %80 {offsets = [5, 0, 0], sizes = [1, 8, 8], strides = [1, 1, 1]} : vector<9x8x8xf32> to vector<1x8x8xf32>
    %186 = vector.shape_cast %185 : vector<1x8x8xf32> to vector<8x8xf32>
    %cst_61 = arith.constant dense<0.000000e+00> : vector<8x512xf32>
    %187 = tpu.matmul %186, %184, %cst_61 {dimension_numbers = #tpu.dot_dimension_numbers<[1], [0], [0], [1], [0, 0, 1, 1], [], []>} : vector<8x8xf32>, vector<8x512xf32>, vector<8x512xf32> -> vector<8x512xf32>
    %188 = arith.addf %181, %187 : vector<8x512xf32>
    %c497_i32_62 = arith.constant 497 : i32
    %189 = tpu.dynamic_rotate %148 by %c497_i32_62 dim 1 : vector<8x512xf32>, i32 -> vector<8x512xf32>
    %190 = vector.broadcast %65 : vector<1x512xf32> to vector<8x512xf32>
    %191 = arith.mulf %189, %190 : vector<8x512xf32>
    %192 = vector.extract_strided_slice %80 {offsets = [6, 0, 0], sizes = [1, 8, 8], strides = [1, 1, 1]} : vector<9x8x8xf32> to vector<1x8x8xf32>
    %193 = vector.shape_cast %192 : vector<1x8x8xf32> to vector<8x8xf32>
    %cst_63 = arith.constant dense<0.000000e+00> : vector<8x512xf32>
    %194 = tpu.matmul %193, %191, %cst_63 {dimension_numbers = #tpu.dot_dimension_numbers<[1], [0], [0], [1], [0, 0, 1, 1], [], []>} : vector<8x8xf32>, vector<8x512xf32>, vector<8x512xf32> -> vector<8x512xf32>
    %195 = arith.addf %188, %194 : vector<8x512xf32>
    %c496_i32_64 = arith.constant 496 : i32
    %196 = tpu.dynamic_rotate %148 by %c496_i32_64 dim 1 : vector<8x512xf32>, i32 -> vector<8x512xf32>
    %197 = vector.broadcast %69 : vector<1x512xf32> to vector<8x512xf32>
    %198 = arith.mulf %196, %197 : vector<8x512xf32>
    %199 = vector.extract_strided_slice %80 {offsets = [7, 0, 0], sizes = [1, 8, 8], strides = [1, 1, 1]} : vector<9x8x8xf32> to vector<1x8x8xf32>
    %200 = vector.shape_cast %199 : vector<1x8x8xf32> to vector<8x8xf32>
    %cst_65 = arith.constant dense<0.000000e+00> : vector<8x512xf32>
    %201 = tpu.matmul %200, %198, %cst_65 {dimension_numbers = #tpu.dot_dimension_numbers<[1], [0], [0], [1], [0, 0, 1, 1], [], []>} : vector<8x8xf32>, vector<8x512xf32>, vector<8x512xf32> -> vector<8x512xf32>
    %202 = arith.addf %195, %201 : vector<8x512xf32>
    %c495_i32_66 = arith.constant 495 : i32
    %203 = tpu.dynamic_rotate %148 by %c495_i32_66 dim 1 : vector<8x512xf32>, i32 -> vector<8x512xf32>
    %204 = vector.broadcast %76 : vector<1x512xf32> to vector<8x512xf32>
    %205 = arith.mulf %203, %204 : vector<8x512xf32>
    %206 = vector.extract_strided_slice %80 {offsets = [8, 0, 0], sizes = [1, 8, 8], strides = [1, 1, 1]} : vector<9x8x8xf32> to vector<1x8x8xf32>
    %207 = vector.shape_cast %206 : vector<1x8x8xf32> to vector<8x8xf32>
    %cst_67 = arith.constant dense<0.000000e+00> : vector<8x512xf32>
    %208 = tpu.matmul %207, %205, %cst_67 {dimension_numbers = #tpu.dot_dimension_numbers<[1], [0], [0], [1], [0, 0, 1, 1], [], []>} : vector<8x8xf32>, vector<8x512xf32>, vector<8x512xf32> -> vector<8x512xf32>
    %209 = arith.addf %202, %208 : vector<8x512xf32>
    %210 = arith.negf %209 : vector<8x512xf32>
    %211 = math.exp %210 : vector<8x512xf32>
    %cst_68 = arith.constant 1.000000e+00 : f32
    %212 = vector.broadcast %cst_68 : f32 to vector<8x512xf32>
    %213 = arith.addf %212, %211 : vector<8x512xf32>
    %214 = arith.divf %212, %213 : vector<8x512xf32>
    %215 = vector.extract_strided_slice %82 {offsets = [4, 0, 0], sizes = [1, 8, 8], strides = [1, 1, 1]} : vector<9x8x8xf32> to vector<1x8x8xf32>
    %216 = vector.shape_cast %215 : vector<1x8x8xf32> to vector<8x8xf32>
    %cst_69 = arith.constant dense<0.000000e+00> : vector<8x512xf32>
    %217 = tpu.matmul %216, %214, %cst_69 {dimension_numbers = #tpu.dot_dimension_numbers<[1], [0], [0], [1], [0, 0, 1, 1], [], []>} : vector<8x8xf32>, vector<8x512xf32>, vector<8x512xf32> -> vector<8x512xf32>
    %218 = vector.broadcast %83 : vector<8x1xf32> to vector<8x512xf32>
    %219 = arith.addf %217, %218 : vector<8x512xf32>
    %c17_i32_70 = arith.constant 17 : i32
    %220 = tpu.dynamic_rotate %214 by %c17_i32_70 dim 1 : vector<8x512xf32>, i32 -> vector<8x512xf32>
    %221 = vector.broadcast %39 : vector<1x512xf32> to vector<8x512xf32>
    %222 = arith.mulf %220, %221 : vector<8x512xf32>
    %223 = vector.extract_strided_slice %82 {offsets = [0, 0, 0], sizes = [1, 8, 8], strides = [1, 1, 1]} : vector<9x8x8xf32> to vector<1x8x8xf32>
    %224 = vector.shape_cast %223 : vector<1x8x8xf32> to vector<8x8xf32>
    %cst_71 = arith.constant dense<0.000000e+00> : vector<8x512xf32>
    %225 = tpu.matmul %224, %222, %cst_71 {dimension_numbers = #tpu.dot_dimension_numbers<[1], [0], [0], [1], [0, 0, 1, 1], [], []>} : vector<8x8xf32>, vector<8x512xf32>, vector<8x512xf32> -> vector<8x512xf32>
    %226 = arith.addf %219, %225 : vector<8x512xf32>
    %c16_i32_72 = arith.constant 16 : i32
    %227 = tpu.dynamic_rotate %214 by %c16_i32_72 dim 1 : vector<8x512xf32>, i32 -> vector<8x512xf32>
    %228 = vector.broadcast %43 : vector<1x512xf32> to vector<8x512xf32>
    %229 = arith.mulf %227, %228 : vector<8x512xf32>
    %230 = vector.extract_strided_slice %82 {offsets = [1, 0, 0], sizes = [1, 8, 8], strides = [1, 1, 1]} : vector<9x8x8xf32> to vector<1x8x8xf32>
    %231 = vector.shape_cast %230 : vector<1x8x8xf32> to vector<8x8xf32>
    %cst_73 = arith.constant dense<0.000000e+00> : vector<8x512xf32>
    %232 = tpu.matmul %231, %229, %cst_73 {dimension_numbers = #tpu.dot_dimension_numbers<[1], [0], [0], [1], [0, 0, 1, 1], [], []>} : vector<8x8xf32>, vector<8x512xf32>, vector<8x512xf32> -> vector<8x512xf32>
    %233 = arith.addf %226, %232 : vector<8x512xf32>
    %c15_i32_74 = arith.constant 15 : i32
    %234 = tpu.dynamic_rotate %214 by %c15_i32_74 dim 1 : vector<8x512xf32>, i32 -> vector<8x512xf32>
    %235 = vector.broadcast %50 : vector<1x512xf32> to vector<8x512xf32>
    %236 = arith.mulf %234, %235 : vector<8x512xf32>
    %237 = vector.extract_strided_slice %82 {offsets = [2, 0, 0], sizes = [1, 8, 8], strides = [1, 1, 1]} : vector<9x8x8xf32> to vector<1x8x8xf32>
    %238 = vector.shape_cast %237 : vector<1x8x8xf32> to vector<8x8xf32>
    %cst_75 = arith.constant dense<0.000000e+00> : vector<8x512xf32>
    %239 = tpu.matmul %238, %236, %cst_75 {dimension_numbers = #tpu.dot_dimension_numbers<[1], [0], [0], [1], [0, 0, 1, 1], [], []>} : vector<8x8xf32>, vector<8x512xf32>, vector<8x512xf32> -> vector<8x512xf32>
    %240 = arith.addf %233, %239 : vector<8x512xf32>
    %c1_i32_76 = arith.constant 1 : i32
    %241 = tpu.dynamic_rotate %214 by %c1_i32_76 dim 1 : vector<8x512xf32>, i32 -> vector<8x512xf32>
    %242 = vector.broadcast %54 : vector<1x512xf32> to vector<8x512xf32>
    %243 = arith.mulf %241, %242 : vector<8x512xf32>
    %244 = vector.extract_strided_slice %82 {offsets = [3, 0, 0], sizes = [1, 8, 8], strides = [1, 1, 1]} : vector<9x8x8xf32> to vector<1x8x8xf32>
    %245 = vector.shape_cast %244 : vector<1x8x8xf32> to vector<8x8xf32>
    %cst_77 = arith.constant dense<0.000000e+00> : vector<8x512xf32>
    %246 = tpu.matmul %245, %243, %cst_77 {dimension_numbers = #tpu.dot_dimension_numbers<[1], [0], [0], [1], [0, 0, 1, 1], [], []>} : vector<8x8xf32>, vector<8x512xf32>, vector<8x512xf32> -> vector<8x512xf32>
    %247 = arith.addf %240, %246 : vector<8x512xf32>
    %c511_i32_78 = arith.constant 511 : i32
    %248 = tpu.dynamic_rotate %214 by %c511_i32_78 dim 1 : vector<8x512xf32>, i32 -> vector<8x512xf32>
    %249 = vector.broadcast %58 : vector<1x512xf32> to vector<8x512xf32>
    %250 = arith.mulf %248, %249 : vector<8x512xf32>
    %251 = vector.extract_strided_slice %82 {offsets = [5, 0, 0], sizes = [1, 8, 8], strides = [1, 1, 1]} : vector<9x8x8xf32> to vector<1x8x8xf32>
    %252 = vector.shape_cast %251 : vector<1x8x8xf32> to vector<8x8xf32>
    %cst_79 = arith.constant dense<0.000000e+00> : vector<8x512xf32>
    %253 = tpu.matmul %252, %250, %cst_79 {dimension_numbers = #tpu.dot_dimension_numbers<[1], [0], [0], [1], [0, 0, 1, 1], [], []>} : vector<8x8xf32>, vector<8x512xf32>, vector<8x512xf32> -> vector<8x512xf32>
    %254 = arith.addf %247, %253 : vector<8x512xf32>
    %c497_i32_80 = arith.constant 497 : i32
    %255 = tpu.dynamic_rotate %214 by %c497_i32_80 dim 1 : vector<8x512xf32>, i32 -> vector<8x512xf32>
    %256 = vector.broadcast %65 : vector<1x512xf32> to vector<8x512xf32>
    %257 = arith.mulf %255, %256 : vector<8x512xf32>
    %258 = vector.extract_strided_slice %82 {offsets = [6, 0, 0], sizes = [1, 8, 8], strides = [1, 1, 1]} : vector<9x8x8xf32> to vector<1x8x8xf32>
    %259 = vector.shape_cast %258 : vector<1x8x8xf32> to vector<8x8xf32>
    %cst_81 = arith.constant dense<0.000000e+00> : vector<8x512xf32>
    %260 = tpu.matmul %259, %257, %cst_81 {dimension_numbers = #tpu.dot_dimension_numbers<[1], [0], [0], [1], [0, 0, 1, 1], [], []>} : vector<8x8xf32>, vector<8x512xf32>, vector<8x512xf32> -> vector<8x512xf32>
    %261 = arith.addf %254, %260 : vector<8x512xf32>
    %c496_i32_82 = arith.constant 496 : i32
    %262 = tpu.dynamic_rotate %214 by %c496_i32_82 dim 1 : vector<8x512xf32>, i32 -> vector<8x512xf32>
    %263 = vector.broadcast %69 : vector<1x512xf32> to vector<8x512xf32>
    %264 = arith.mulf %262, %263 : vector<8x512xf32>
    %265 = vector.extract_strided_slice %82 {offsets = [7, 0, 0], sizes = [1, 8, 8], strides = [1, 1, 1]} : vector<9x8x8xf32> to vector<1x8x8xf32>
    %266 = vector.shape_cast %265 : vector<1x8x8xf32> to vector<8x8xf32>
    %cst_83 = arith.constant dense<0.000000e+00> : vector<8x512xf32>
    %267 = tpu.matmul %266, %264, %cst_83 {dimension_numbers = #tpu.dot_dimension_numbers<[1], [0], [0], [1], [0, 0, 1, 1], [], []>} : vector<8x8xf32>, vector<8x512xf32>, vector<8x512xf32> -> vector<8x512xf32>
    %268 = arith.addf %261, %267 : vector<8x512xf32>
    %c495_i32_84 = arith.constant 495 : i32
    %269 = tpu.dynamic_rotate %214 by %c495_i32_84 dim 1 : vector<8x512xf32>, i32 -> vector<8x512xf32>
    %270 = vector.broadcast %76 : vector<1x512xf32> to vector<8x512xf32>
    %271 = arith.mulf %269, %270 : vector<8x512xf32>
    %272 = vector.extract_strided_slice %82 {offsets = [8, 0, 0], sizes = [1, 8, 8], strides = [1, 1, 1]} : vector<9x8x8xf32> to vector<1x8x8xf32>
    %273 = vector.shape_cast %272 : vector<1x8x8xf32> to vector<8x8xf32>
    %cst_85 = arith.constant dense<0.000000e+00> : vector<8x512xf32>
    %274 = tpu.matmul %273, %271, %cst_85 {dimension_numbers = #tpu.dot_dimension_numbers<[1], [0], [0], [1], [0, 0, 1, 1], [], []>} : vector<8x8xf32>, vector<8x512xf32>, vector<8x512xf32> -> vector<8x512xf32>
    %275 = arith.addf %268, %274 : vector<8x512xf32>
    %cst_86 = arith.constant 0.000000e+00 : f32
    %276 = vector.broadcast %cst_86 : f32 to vector<8x512xf32>
    %277 = arith.maximumf %275, %276 : vector<8x512xf32>
    %278 = vector.extract_strided_slice %84 {offsets = [4, 0, 0], sizes = [1, 8, 8], strides = [1, 1, 1]} : vector<9x8x8xf32> to vector<1x8x8xf32>
    %279 = vector.shape_cast %278 : vector<1x8x8xf32> to vector<8x8xf32>
    %cst_87 = arith.constant dense<0.000000e+00> : vector<8x512xf32>
    %280 = tpu.matmul %279, %277, %cst_87 {dimension_numbers = #tpu.dot_dimension_numbers<[1], [0], [0], [1], [0, 0, 1, 1], [], []>} : vector<8x8xf32>, vector<8x512xf32>, vector<8x512xf32> -> vector<8x512xf32>
    %281 = vector.broadcast %85 : vector<8x1xf32> to vector<8x512xf32>
    %282 = arith.addf %280, %281 : vector<8x512xf32>
    %c17_i32_88 = arith.constant 17 : i32
    %283 = tpu.dynamic_rotate %277 by %c17_i32_88 dim 1 : vector<8x512xf32>, i32 -> vector<8x512xf32>
    %284 = vector.broadcast %39 : vector<1x512xf32> to vector<8x512xf32>
    %285 = arith.mulf %283, %284 : vector<8x512xf32>
    %286 = vector.extract_strided_slice %84 {offsets = [0, 0, 0], sizes = [1, 8, 8], strides = [1, 1, 1]} : vector<9x8x8xf32> to vector<1x8x8xf32>
    %287 = vector.shape_cast %286 : vector<1x8x8xf32> to vector<8x8xf32>
    %cst_89 = arith.constant dense<0.000000e+00> : vector<8x512xf32>
    %288 = tpu.matmul %287, %285, %cst_89 {dimension_numbers = #tpu.dot_dimension_numbers<[1], [0], [0], [1], [0, 0, 1, 1], [], []>} : vector<8x8xf32>, vector<8x512xf32>, vector<8x512xf32> -> vector<8x512xf32>
    %289 = arith.addf %282, %288 : vector<8x512xf32>
    %c16_i32_90 = arith.constant 16 : i32
    %290 = tpu.dynamic_rotate %277 by %c16_i32_90 dim 1 : vector<8x512xf32>, i32 -> vector<8x512xf32>
    %291 = vector.broadcast %43 : vector<1x512xf32> to vector<8x512xf32>
    %292 = arith.mulf %290, %291 : vector<8x512xf32>
    %293 = vector.extract_strided_slice %84 {offsets = [1, 0, 0], sizes = [1, 8, 8], strides = [1, 1, 1]} : vector<9x8x8xf32> to vector<1x8x8xf32>
    %294 = vector.shape_cast %293 : vector<1x8x8xf32> to vector<8x8xf32>
    %cst_91 = arith.constant dense<0.000000e+00> : vector<8x512xf32>
    %295 = tpu.matmul %294, %292, %cst_91 {dimension_numbers = #tpu.dot_dimension_numbers<[1], [0], [0], [1], [0, 0, 1, 1], [], []>} : vector<8x8xf32>, vector<8x512xf32>, vector<8x512xf32> -> vector<8x512xf32>
    %296 = arith.addf %289, %295 : vector<8x512xf32>
    %c15_i32_92 = arith.constant 15 : i32
    %297 = tpu.dynamic_rotate %277 by %c15_i32_92 dim 1 : vector<8x512xf32>, i32 -> vector<8x512xf32>
    %298 = vector.broadcast %50 : vector<1x512xf32> to vector<8x512xf32>
    %299 = arith.mulf %297, %298 : vector<8x512xf32>
    %300 = vector.extract_strided_slice %84 {offsets = [2, 0, 0], sizes = [1, 8, 8], strides = [1, 1, 1]} : vector<9x8x8xf32> to vector<1x8x8xf32>
    %301 = vector.shape_cast %300 : vector<1x8x8xf32> to vector<8x8xf32>
    %cst_93 = arith.constant dense<0.000000e+00> : vector<8x512xf32>
    %302 = tpu.matmul %301, %299, %cst_93 {dimension_numbers = #tpu.dot_dimension_numbers<[1], [0], [0], [1], [0, 0, 1, 1], [], []>} : vector<8x8xf32>, vector<8x512xf32>, vector<8x512xf32> -> vector<8x512xf32>
    %303 = arith.addf %296, %302 : vector<8x512xf32>
    %c1_i32_94 = arith.constant 1 : i32
    %304 = tpu.dynamic_rotate %277 by %c1_i32_94 dim 1 : vector<8x512xf32>, i32 -> vector<8x512xf32>
    %305 = vector.broadcast %54 : vector<1x512xf32> to vector<8x512xf32>
    %306 = arith.mulf %304, %305 : vector<8x512xf32>
    %307 = vector.extract_strided_slice %84 {offsets = [3, 0, 0], sizes = [1, 8, 8], strides = [1, 1, 1]} : vector<9x8x8xf32> to vector<1x8x8xf32>
    %308 = vector.shape_cast %307 : vector<1x8x8xf32> to vector<8x8xf32>
    %cst_95 = arith.constant dense<0.000000e+00> : vector<8x512xf32>
    %309 = tpu.matmul %308, %306, %cst_95 {dimension_numbers = #tpu.dot_dimension_numbers<[1], [0], [0], [1], [0, 0, 1, 1], [], []>} : vector<8x8xf32>, vector<8x512xf32>, vector<8x512xf32> -> vector<8x512xf32>
    %310 = arith.addf %303, %309 : vector<8x512xf32>
    %c511_i32_96 = arith.constant 511 : i32
    %311 = tpu.dynamic_rotate %277 by %c511_i32_96 dim 1 : vector<8x512xf32>, i32 -> vector<8x512xf32>
    %312 = vector.broadcast %58 : vector<1x512xf32> to vector<8x512xf32>
    %313 = arith.mulf %311, %312 : vector<8x512xf32>
    %314 = vector.extract_strided_slice %84 {offsets = [5, 0, 0], sizes = [1, 8, 8], strides = [1, 1, 1]} : vector<9x8x8xf32> to vector<1x8x8xf32>
    %315 = vector.shape_cast %314 : vector<1x8x8xf32> to vector<8x8xf32>
    %cst_97 = arith.constant dense<0.000000e+00> : vector<8x512xf32>
    %316 = tpu.matmul %315, %313, %cst_97 {dimension_numbers = #tpu.dot_dimension_numbers<[1], [0], [0], [1], [0, 0, 1, 1], [], []>} : vector<8x8xf32>, vector<8x512xf32>, vector<8x512xf32> -> vector<8x512xf32>
    %317 = arith.addf %310, %316 : vector<8x512xf32>
    %c497_i32_98 = arith.constant 497 : i32
    %318 = tpu.dynamic_rotate %277 by %c497_i32_98 dim 1 : vector<8x512xf32>, i32 -> vector<8x512xf32>
    %319 = vector.broadcast %65 : vector<1x512xf32> to vector<8x512xf32>
    %320 = arith.mulf %318, %319 : vector<8x512xf32>
    %321 = vector.extract_strided_slice %84 {offsets = [6, 0, 0], sizes = [1, 8, 8], strides = [1, 1, 1]} : vector<9x8x8xf32> to vector<1x8x8xf32>
    %322 = vector.shape_cast %321 : vector<1x8x8xf32> to vector<8x8xf32>
    %cst_99 = arith.constant dense<0.000000e+00> : vector<8x512xf32>
    %323 = tpu.matmul %322, %320, %cst_99 {dimension_numbers = #tpu.dot_dimension_numbers<[1], [0], [0], [1], [0, 0, 1, 1], [], []>} : vector<8x8xf32>, vector<8x512xf32>, vector<8x512xf32> -> vector<8x512xf32>
    %324 = arith.addf %317, %323 : vector<8x512xf32>
    %c496_i32_100 = arith.constant 496 : i32
    %325 = tpu.dynamic_rotate %277 by %c496_i32_100 dim 1 : vector<8x512xf32>, i32 -> vector<8x512xf32>
    %326 = vector.broadcast %69 : vector<1x512xf32> to vector<8x512xf32>
    %327 = arith.mulf %325, %326 : vector<8x512xf32>
    %328 = vector.extract_strided_slice %84 {offsets = [7, 0, 0], sizes = [1, 8, 8], strides = [1, 1, 1]} : vector<9x8x8xf32> to vector<1x8x8xf32>
    %329 = vector.shape_cast %328 : vector<1x8x8xf32> to vector<8x8xf32>
    %cst_101 = arith.constant dense<0.000000e+00> : vector<8x512xf32>
    %330 = tpu.matmul %329, %327, %cst_101 {dimension_numbers = #tpu.dot_dimension_numbers<[1], [0], [0], [1], [0, 0, 1, 1], [], []>} : vector<8x8xf32>, vector<8x512xf32>, vector<8x512xf32> -> vector<8x512xf32>
    %331 = arith.addf %324, %330 : vector<8x512xf32>
    %c495_i32_102 = arith.constant 495 : i32
    %332 = tpu.dynamic_rotate %277 by %c495_i32_102 dim 1 : vector<8x512xf32>, i32 -> vector<8x512xf32>
    %333 = vector.broadcast %76 : vector<1x512xf32> to vector<8x512xf32>
    %334 = arith.mulf %332, %333 : vector<8x512xf32>
    %335 = vector.extract_strided_slice %84 {offsets = [8, 0, 0], sizes = [1, 8, 8], strides = [1, 1, 1]} : vector<9x8x8xf32> to vector<1x8x8xf32>
    %336 = vector.shape_cast %335 : vector<1x8x8xf32> to vector<8x8xf32>
    %cst_103 = arith.constant dense<0.000000e+00> : vector<8x512xf32>
    %337 = tpu.matmul %336, %334, %cst_103 {dimension_numbers = #tpu.dot_dimension_numbers<[1], [0], [0], [1], [0, 0, 1, 1], [], []>} : vector<8x8xf32>, vector<8x512xf32>, vector<8x512xf32> -> vector<8x512xf32>
    %338 = arith.addf %331, %337 : vector<8x512xf32>
    %cst_104 = arith.constant 0.699999988 : f32
    %339 = vector.broadcast %cst_104 : f32 to vector<8x512xf32>
    %340 = arith.mulf %339, %338 : vector<8x512xf32>
    %341 = arith.addf %214, %340 : vector<8x512xf32>
    %342 = vector.extract_strided_slice %82 {offsets = [4, 0, 0], sizes = [1, 8, 8], strides = [1, 1, 1]} : vector<9x8x8xf32> to vector<1x8x8xf32>
    %343 = vector.shape_cast %342 : vector<1x8x8xf32> to vector<8x8xf32>
    %cst_105 = arith.constant dense<0.000000e+00> : vector<8x512xf32>
    %344 = tpu.matmul %343, %341, %cst_105 {dimension_numbers = #tpu.dot_dimension_numbers<[1], [0], [0], [1], [0, 0, 1, 1], [], []>} : vector<8x8xf32>, vector<8x512xf32>, vector<8x512xf32> -> vector<8x512xf32>
    %345 = vector.broadcast %83 : vector<8x1xf32> to vector<8x512xf32>
    %346 = arith.addf %344, %345 : vector<8x512xf32>
    %c17_i32_106 = arith.constant 17 : i32
    %347 = tpu.dynamic_rotate %341 by %c17_i32_106 dim 1 : vector<8x512xf32>, i32 -> vector<8x512xf32>
    %348 = vector.broadcast %39 : vector<1x512xf32> to vector<8x512xf32>
    %349 = arith.mulf %347, %348 : vector<8x512xf32>
    %350 = vector.extract_strided_slice %82 {offsets = [0, 0, 0], sizes = [1, 8, 8], strides = [1, 1, 1]} : vector<9x8x8xf32> to vector<1x8x8xf32>
    %351 = vector.shape_cast %350 : vector<1x8x8xf32> to vector<8x8xf32>
    %cst_107 = arith.constant dense<0.000000e+00> : vector<8x512xf32>
    %352 = tpu.matmul %351, %349, %cst_107 {dimension_numbers = #tpu.dot_dimension_numbers<[1], [0], [0], [1], [0, 0, 1, 1], [], []>} : vector<8x8xf32>, vector<8x512xf32>, vector<8x512xf32> -> vector<8x512xf32>
    %353 = arith.addf %346, %352 : vector<8x512xf32>
    %c16_i32_108 = arith.constant 16 : i32
    %354 = tpu.dynamic_rotate %341 by %c16_i32_108 dim 1 : vector<8x512xf32>, i32 -> vector<8x512xf32>
    %355 = vector.broadcast %43 : vector<1x512xf32> to vector<8x512xf32>
    %356 = arith.mulf %354, %355 : vector<8x512xf32>
    %357 = vector.extract_strided_slice %82 {offsets = [1, 0, 0], sizes = [1, 8, 8], strides = [1, 1, 1]} : vector<9x8x8xf32> to vector<1x8x8xf32>
    %358 = vector.shape_cast %357 : vector<1x8x8xf32> to vector<8x8xf32>
    %cst_109 = arith.constant dense<0.000000e+00> : vector<8x512xf32>
    %359 = tpu.matmul %358, %356, %cst_109 {dimension_numbers = #tpu.dot_dimension_numbers<[1], [0], [0], [1], [0, 0, 1, 1], [], []>} : vector<8x8xf32>, vector<8x512xf32>, vector<8x512xf32> -> vector<8x512xf32>
    %360 = arith.addf %353, %359 : vector<8x512xf32>
    %c15_i32_110 = arith.constant 15 : i32
    %361 = tpu.dynamic_rotate %341 by %c15_i32_110 dim 1 : vector<8x512xf32>, i32 -> vector<8x512xf32>
    %362 = vector.broadcast %50 : vector<1x512xf32> to vector<8x512xf32>
    %363 = arith.mulf %361, %362 : vector<8x512xf32>
    %364 = vector.extract_strided_slice %82 {offsets = [2, 0, 0], sizes = [1, 8, 8], strides = [1, 1, 1]} : vector<9x8x8xf32> to vector<1x8x8xf32>
    %365 = vector.shape_cast %364 : vector<1x8x8xf32> to vector<8x8xf32>
    %cst_111 = arith.constant dense<0.000000e+00> : vector<8x512xf32>
    %366 = tpu.matmul %365, %363, %cst_111 {dimension_numbers = #tpu.dot_dimension_numbers<[1], [0], [0], [1], [0, 0, 1, 1], [], []>} : vector<8x8xf32>, vector<8x512xf32>, vector<8x512xf32> -> vector<8x512xf32>
    %367 = arith.addf %360, %366 : vector<8x512xf32>
    %c1_i32_112 = arith.constant 1 : i32
    %368 = tpu.dynamic_rotate %341 by %c1_i32_112 dim 1 : vector<8x512xf32>, i32 -> vector<8x512xf32>
    %369 = vector.broadcast %54 : vector<1x512xf32> to vector<8x512xf32>
    %370 = arith.mulf %368, %369 : vector<8x512xf32>
    %371 = vector.extract_strided_slice %82 {offsets = [3, 0, 0], sizes = [1, 8, 8], strides = [1, 1, 1]} : vector<9x8x8xf32> to vector<1x8x8xf32>
    %372 = vector.shape_cast %371 : vector<1x8x8xf32> to vector<8x8xf32>
    %cst_113 = arith.constant dense<0.000000e+00> : vector<8x512xf32>
    %373 = tpu.matmul %372, %370, %cst_113 {dimension_numbers = #tpu.dot_dimension_numbers<[1], [0], [0], [1], [0, 0, 1, 1], [], []>} : vector<8x8xf32>, vector<8x512xf32>, vector<8x512xf32> -> vector<8x512xf32>
    %374 = arith.addf %367, %373 : vector<8x512xf32>
    %c511_i32_114 = arith.constant 511 : i32
    %375 = tpu.dynamic_rotate %341 by %c511_i32_114 dim 1 : vector<8x512xf32>, i32 -> vector<8x512xf32>
    %376 = vector.broadcast %58 : vector<1x512xf32> to vector<8x512xf32>
    %377 = arith.mulf %375, %376 : vector<8x512xf32>
    %378 = vector.extract_strided_slice %82 {offsets = [5, 0, 0], sizes = [1, 8, 8], strides = [1, 1, 1]} : vector<9x8x8xf32> to vector<1x8x8xf32>
    %379 = vector.shape_cast %378 : vector<1x8x8xf32> to vector<8x8xf32>
    %cst_115 = arith.constant dense<0.000000e+00> : vector<8x512xf32>
    %380 = tpu.matmul %379, %377, %cst_115 {dimension_numbers = #tpu.dot_dimension_numbers<[1], [0], [0], [1], [0, 0, 1, 1], [], []>} : vector<8x8xf32>, vector<8x512xf32>, vector<8x512xf32> -> vector<8x512xf32>
    %381 = arith.addf %374, %380 : vector<8x512xf32>
    %c497_i32_116 = arith.constant 497 : i32
    %382 = tpu.dynamic_rotate %341 by %c497_i32_116 dim 1 : vector<8x512xf32>, i32 -> vector<8x512xf32>
    %383 = vector.broadcast %65 : vector<1x512xf32> to vector<8x512xf32>
    %384 = arith.mulf %382, %383 : vector<8x512xf32>
    %385 = vector.extract_strided_slice %82 {offsets = [6, 0, 0], sizes = [1, 8, 8], strides = [1, 1, 1]} : vector<9x8x8xf32> to vector<1x8x8xf32>
    %386 = vector.shape_cast %385 : vector<1x8x8xf32> to vector<8x8xf32>
    %cst_117 = arith.constant dense<0.000000e+00> : vector<8x512xf32>
    %387 = tpu.matmul %386, %384, %cst_117 {dimension_numbers = #tpu.dot_dimension_numbers<[1], [0], [0], [1], [0, 0, 1, 1], [], []>} : vector<8x8xf32>, vector<8x512xf32>, vector<8x512xf32> -> vector<8x512xf32>
    %388 = arith.addf %381, %387 : vector<8x512xf32>
    %c496_i32_118 = arith.constant 496 : i32
    %389 = tpu.dynamic_rotate %341 by %c496_i32_118 dim 1 : vector<8x512xf32>, i32 -> vector<8x512xf32>
    %390 = vector.broadcast %69 : vector<1x512xf32> to vector<8x512xf32>
    %391 = arith.mulf %389, %390 : vector<8x512xf32>
    %392 = vector.extract_strided_slice %82 {offsets = [7, 0, 0], sizes = [1, 8, 8], strides = [1, 1, 1]} : vector<9x8x8xf32> to vector<1x8x8xf32>
    %393 = vector.shape_cast %392 : vector<1x8x8xf32> to vector<8x8xf32>
    %cst_119 = arith.constant dense<0.000000e+00> : vector<8x512xf32>
    %394 = tpu.matmul %393, %391, %cst_119 {dimension_numbers = #tpu.dot_dimension_numbers<[1], [0], [0], [1], [0, 0, 1, 1], [], []>} : vector<8x8xf32>, vector<8x512xf32>, vector<8x512xf32> -> vector<8x512xf32>
    %395 = arith.addf %388, %394 : vector<8x512xf32>
    %c495_i32_120 = arith.constant 495 : i32
    %396 = tpu.dynamic_rotate %341 by %c495_i32_120 dim 1 : vector<8x512xf32>, i32 -> vector<8x512xf32>
    %397 = vector.broadcast %76 : vector<1x512xf32> to vector<8x512xf32>
    %398 = arith.mulf %396, %397 : vector<8x512xf32>
    %399 = vector.extract_strided_slice %82 {offsets = [8, 0, 0], sizes = [1, 8, 8], strides = [1, 1, 1]} : vector<9x8x8xf32> to vector<1x8x8xf32>
    %400 = vector.shape_cast %399 : vector<1x8x8xf32> to vector<8x8xf32>
    %cst_121 = arith.constant dense<0.000000e+00> : vector<8x512xf32>
    %401 = tpu.matmul %400, %398, %cst_121 {dimension_numbers = #tpu.dot_dimension_numbers<[1], [0], [0], [1], [0, 0, 1, 1], [], []>} : vector<8x8xf32>, vector<8x512xf32>, vector<8x512xf32> -> vector<8x512xf32>
    %402 = arith.addf %395, %401 : vector<8x512xf32>
    %cst_122 = arith.constant 0.000000e+00 : f32
    %403 = vector.broadcast %cst_122 : f32 to vector<8x512xf32>
    %404 = arith.maximumf %402, %403 : vector<8x512xf32>
    %405 = vector.extract_strided_slice %84 {offsets = [4, 0, 0], sizes = [1, 8, 8], strides = [1, 1, 1]} : vector<9x8x8xf32> to vector<1x8x8xf32>
    %406 = vector.shape_cast %405 : vector<1x8x8xf32> to vector<8x8xf32>
    %cst_123 = arith.constant dense<0.000000e+00> : vector<8x512xf32>
    %407 = tpu.matmul %406, %404, %cst_123 {dimension_numbers = #tpu.dot_dimension_numbers<[1], [0], [0], [1], [0, 0, 1, 1], [], []>} : vector<8x8xf32>, vector<8x512xf32>, vector<8x512xf32> -> vector<8x512xf32>
    %408 = vector.broadcast %85 : vector<8x1xf32> to vector<8x512xf32>
    %409 = arith.addf %407, %408 : vector<8x512xf32>
    %c17_i32_124 = arith.constant 17 : i32
    %410 = tpu.dynamic_rotate %404 by %c17_i32_124 dim 1 : vector<8x512xf32>, i32 -> vector<8x512xf32>
    %411 = vector.broadcast %39 : vector<1x512xf32> to vector<8x512xf32>
    %412 = arith.mulf %410, %411 : vector<8x512xf32>
    %413 = vector.extract_strided_slice %84 {offsets = [0, 0, 0], sizes = [1, 8, 8], strides = [1, 1, 1]} : vector<9x8x8xf32> to vector<1x8x8xf32>
    %414 = vector.shape_cast %413 : vector<1x8x8xf32> to vector<8x8xf32>
    %cst_125 = arith.constant dense<0.000000e+00> : vector<8x512xf32>
    %415 = tpu.matmul %414, %412, %cst_125 {dimension_numbers = #tpu.dot_dimension_numbers<[1], [0], [0], [1], [0, 0, 1, 1], [], []>} : vector<8x8xf32>, vector<8x512xf32>, vector<8x512xf32> -> vector<8x512xf32>
    %416 = arith.addf %409, %415 : vector<8x512xf32>
    %c16_i32_126 = arith.constant 16 : i32
    %417 = tpu.dynamic_rotate %404 by %c16_i32_126 dim 1 : vector<8x512xf32>, i32 -> vector<8x512xf32>
    %418 = vector.broadcast %43 : vector<1x512xf32> to vector<8x512xf32>
    %419 = arith.mulf %417, %418 : vector<8x512xf32>
    %420 = vector.extract_strided_slice %84 {offsets = [1, 0, 0], sizes = [1, 8, 8], strides = [1, 1, 1]} : vector<9x8x8xf32> to vector<1x8x8xf32>
    %421 = vector.shape_cast %420 : vector<1x8x8xf32> to vector<8x8xf32>
    %cst_127 = arith.constant dense<0.000000e+00> : vector<8x512xf32>
    %422 = tpu.matmul %421, %419, %cst_127 {dimension_numbers = #tpu.dot_dimension_numbers<[1], [0], [0], [1], [0, 0, 1, 1], [], []>} : vector<8x8xf32>, vector<8x512xf32>, vector<8x512xf32> -> vector<8x512xf32>
    %423 = arith.addf %416, %422 : vector<8x512xf32>
    %c15_i32_128 = arith.constant 15 : i32
    %424 = tpu.dynamic_rotate %404 by %c15_i32_128 dim 1 : vector<8x512xf32>, i32 -> vector<8x512xf32>
    %425 = vector.broadcast %50 : vector<1x512xf32> to vector<8x512xf32>
    %426 = arith.mulf %424, %425 : vector<8x512xf32>
    %427 = vector.extract_strided_slice %84 {offsets = [2, 0, 0], sizes = [1, 8, 8], strides = [1, 1, 1]} : vector<9x8x8xf32> to vector<1x8x8xf32>
    %428 = vector.shape_cast %427 : vector<1x8x8xf32> to vector<8x8xf32>
    %cst_129 = arith.constant dense<0.000000e+00> : vector<8x512xf32>
    %429 = tpu.matmul %428, %426, %cst_129 {dimension_numbers = #tpu.dot_dimension_numbers<[1], [0], [0], [1], [0, 0, 1, 1], [], []>} : vector<8x8xf32>, vector<8x512xf32>, vector<8x512xf32> -> vector<8x512xf32>
    %430 = arith.addf %423, %429 : vector<8x512xf32>
    %c1_i32_130 = arith.constant 1 : i32
    %431 = tpu.dynamic_rotate %404 by %c1_i32_130 dim 1 : vector<8x512xf32>, i32 -> vector<8x512xf32>
    %432 = vector.broadcast %54 : vector<1x512xf32> to vector<8x512xf32>
    %433 = arith.mulf %431, %432 : vector<8x512xf32>
    %434 = vector.extract_strided_slice %84 {offsets = [3, 0, 0], sizes = [1, 8, 8], strides = [1, 1, 1]} : vector<9x8x8xf32> to vector<1x8x8xf32>
    %435 = vector.shape_cast %434 : vector<1x8x8xf32> to vector<8x8xf32>
    %cst_131 = arith.constant dense<0.000000e+00> : vector<8x512xf32>
    %436 = tpu.matmul %435, %433, %cst_131 {dimension_numbers = #tpu.dot_dimension_numbers<[1], [0], [0], [1], [0, 0, 1, 1], [], []>} : vector<8x8xf32>, vector<8x512xf32>, vector<8x512xf32> -> vector<8x512xf32>
    %437 = arith.addf %430, %436 : vector<8x512xf32>
    %c511_i32_132 = arith.constant 511 : i32
    %438 = tpu.dynamic_rotate %404 by %c511_i32_132 dim 1 : vector<8x512xf32>, i32 -> vector<8x512xf32>
    %439 = vector.broadcast %58 : vector<1x512xf32> to vector<8x512xf32>
    %440 = arith.mulf %438, %439 : vector<8x512xf32>
    %441 = vector.extract_strided_slice %84 {offsets = [5, 0, 0], sizes = [1, 8, 8], strides = [1, 1, 1]} : vector<9x8x8xf32> to vector<1x8x8xf32>
    %442 = vector.shape_cast %441 : vector<1x8x8xf32> to vector<8x8xf32>
    %cst_133 = arith.constant dense<0.000000e+00> : vector<8x512xf32>
    %443 = tpu.matmul %442, %440, %cst_133 {dimension_numbers = #tpu.dot_dimension_numbers<[1], [0], [0], [1], [0, 0, 1, 1], [], []>} : vector<8x8xf32>, vector<8x512xf32>, vector<8x512xf32> -> vector<8x512xf32>
    %444 = arith.addf %437, %443 : vector<8x512xf32>
    %c497_i32_134 = arith.constant 497 : i32
    %445 = tpu.dynamic_rotate %404 by %c497_i32_134 dim 1 : vector<8x512xf32>, i32 -> vector<8x512xf32>
    %446 = vector.broadcast %65 : vector<1x512xf32> to vector<8x512xf32>
    %447 = arith.mulf %445, %446 : vector<8x512xf32>
    %448 = vector.extract_strided_slice %84 {offsets = [6, 0, 0], sizes = [1, 8, 8], strides = [1, 1, 1]} : vector<9x8x8xf32> to vector<1x8x8xf32>
    %449 = vector.shape_cast %448 : vector<1x8x8xf32> to vector<8x8xf32>
    %cst_135 = arith.constant dense<0.000000e+00> : vector<8x512xf32>
    %450 = tpu.matmul %449, %447, %cst_135 {dimension_numbers = #tpu.dot_dimension_numbers<[1], [0], [0], [1], [0, 0, 1, 1], [], []>} : vector<8x8xf32>, vector<8x512xf32>, vector<8x512xf32> -> vector<8x512xf32>
    %451 = arith.addf %444, %450 : vector<8x512xf32>
    %c496_i32_136 = arith.constant 496 : i32
    %452 = tpu.dynamic_rotate %404 by %c496_i32_136 dim 1 : vector<8x512xf32>, i32 -> vector<8x512xf32>
    %453 = vector.broadcast %69 : vector<1x512xf32> to vector<8x512xf32>
    %454 = arith.mulf %452, %453 : vector<8x512xf32>
    %455 = vector.extract_strided_slice %84 {offsets = [7, 0, 0], sizes = [1, 8, 8], strides = [1, 1, 1]} : vector<9x8x8xf32> to vector<1x8x8xf32>
    %456 = vector.shape_cast %455 : vector<1x8x8xf32> to vector<8x8xf32>
    %cst_137 = arith.constant dense<0.000000e+00> : vector<8x512xf32>
    %457 = tpu.matmul %456, %454, %cst_137 {dimension_numbers = #tpu.dot_dimension_numbers<[1], [0], [0], [1], [0, 0, 1, 1], [], []>} : vector<8x8xf32>, vector<8x512xf32>, vector<8x512xf32> -> vector<8x512xf32>
    %458 = arith.addf %451, %457 : vector<8x512xf32>
    %c495_i32_138 = arith.constant 495 : i32
    %459 = tpu.dynamic_rotate %404 by %c495_i32_138 dim 1 : vector<8x512xf32>, i32 -> vector<8x512xf32>
    %460 = vector.broadcast %76 : vector<1x512xf32> to vector<8x512xf32>
    %461 = arith.mulf %459, %460 : vector<8x512xf32>
    %462 = vector.extract_strided_slice %84 {offsets = [8, 0, 0], sizes = [1, 8, 8], strides = [1, 1, 1]} : vector<9x8x8xf32> to vector<1x8x8xf32>
    %463 = vector.shape_cast %462 : vector<1x8x8xf32> to vector<8x8xf32>
    %cst_139 = arith.constant dense<0.000000e+00> : vector<8x512xf32>
    %464 = tpu.matmul %463, %461, %cst_139 {dimension_numbers = #tpu.dot_dimension_numbers<[1], [0], [0], [1], [0, 0, 1, 1], [], []>} : vector<8x8xf32>, vector<8x512xf32>, vector<8x512xf32> -> vector<8x512xf32>
    %465 = arith.addf %458, %464 : vector<8x512xf32>
    %cst_140 = arith.constant 0.699999988 : f32
    %466 = vector.broadcast %cst_140 : f32 to vector<8x512xf32>
    %467 = arith.mulf %466, %465 : vector<8x512xf32>
    %468 = arith.addf %341, %467 : vector<8x512xf32>
    %469 = vector.extract_strided_slice %82 {offsets = [4, 0, 0], sizes = [1, 8, 8], strides = [1, 1, 1]} : vector<9x8x8xf32> to vector<1x8x8xf32>
    %470 = vector.shape_cast %469 : vector<1x8x8xf32> to vector<8x8xf32>
    %cst_141 = arith.constant dense<0.000000e+00> : vector<8x512xf32>
    %471 = tpu.matmul %470, %468, %cst_141 {dimension_numbers = #tpu.dot_dimension_numbers<[1], [0], [0], [1], [0, 0, 1, 1], [], []>} : vector<8x8xf32>, vector<8x512xf32>, vector<8x512xf32> -> vector<8x512xf32>
    %472 = vector.broadcast %83 : vector<8x1xf32> to vector<8x512xf32>
    %473 = arith.addf %471, %472 : vector<8x512xf32>
    %c17_i32_142 = arith.constant 17 : i32
    %474 = tpu.dynamic_rotate %468 by %c17_i32_142 dim 1 : vector<8x512xf32>, i32 -> vector<8x512xf32>
    %475 = vector.broadcast %39 : vector<1x512xf32> to vector<8x512xf32>
    %476 = arith.mulf %474, %475 : vector<8x512xf32>
    %477 = vector.extract_strided_slice %82 {offsets = [0, 0, 0], sizes = [1, 8, 8], strides = [1, 1, 1]} : vector<9x8x8xf32> to vector<1x8x8xf32>
    %478 = vector.shape_cast %477 : vector<1x8x8xf32> to vector<8x8xf32>
    %cst_143 = arith.constant dense<0.000000e+00> : vector<8x512xf32>
    %479 = tpu.matmul %478, %476, %cst_143 {dimension_numbers = #tpu.dot_dimension_numbers<[1], [0], [0], [1], [0, 0, 1, 1], [], []>} : vector<8x8xf32>, vector<8x512xf32>, vector<8x512xf32> -> vector<8x512xf32>
    %480 = arith.addf %473, %479 : vector<8x512xf32>
    %c16_i32_144 = arith.constant 16 : i32
    %481 = tpu.dynamic_rotate %468 by %c16_i32_144 dim 1 : vector<8x512xf32>, i32 -> vector<8x512xf32>
    %482 = vector.broadcast %43 : vector<1x512xf32> to vector<8x512xf32>
    %483 = arith.mulf %481, %482 : vector<8x512xf32>
    %484 = vector.extract_strided_slice %82 {offsets = [1, 0, 0], sizes = [1, 8, 8], strides = [1, 1, 1]} : vector<9x8x8xf32> to vector<1x8x8xf32>
    %485 = vector.shape_cast %484 : vector<1x8x8xf32> to vector<8x8xf32>
    %cst_145 = arith.constant dense<0.000000e+00> : vector<8x512xf32>
    %486 = tpu.matmul %485, %483, %cst_145 {dimension_numbers = #tpu.dot_dimension_numbers<[1], [0], [0], [1], [0, 0, 1, 1], [], []>} : vector<8x8xf32>, vector<8x512xf32>, vector<8x512xf32> -> vector<8x512xf32>
    %487 = arith.addf %480, %486 : vector<8x512xf32>
    %c15_i32_146 = arith.constant 15 : i32
    %488 = tpu.dynamic_rotate %468 by %c15_i32_146 dim 1 : vector<8x512xf32>, i32 -> vector<8x512xf32>
    %489 = vector.broadcast %50 : vector<1x512xf32> to vector<8x512xf32>
    %490 = arith.mulf %488, %489 : vector<8x512xf32>
    %491 = vector.extract_strided_slice %82 {offsets = [2, 0, 0], sizes = [1, 8, 8], strides = [1, 1, 1]} : vector<9x8x8xf32> to vector<1x8x8xf32>
    %492 = vector.shape_cast %491 : vector<1x8x8xf32> to vector<8x8xf32>
    %cst_147 = arith.constant dense<0.000000e+00> : vector<8x512xf32>
    %493 = tpu.matmul %492, %490, %cst_147 {dimension_numbers = #tpu.dot_dimension_numbers<[1], [0], [0], [1], [0, 0, 1, 1], [], []>} : vector<8x8xf32>, vector<8x512xf32>, vector<8x512xf32> -> vector<8x512xf32>
    %494 = arith.addf %487, %493 : vector<8x512xf32>
    %c1_i32_148 = arith.constant 1 : i32
    %495 = tpu.dynamic_rotate %468 by %c1_i32_148 dim 1 : vector<8x512xf32>, i32 -> vector<8x512xf32>
    %496 = vector.broadcast %54 : vector<1x512xf32> to vector<8x512xf32>
    %497 = arith.mulf %495, %496 : vector<8x512xf32>
    %498 = vector.extract_strided_slice %82 {offsets = [3, 0, 0], sizes = [1, 8, 8], strides = [1, 1, 1]} : vector<9x8x8xf32> to vector<1x8x8xf32>
    %499 = vector.shape_cast %498 : vector<1x8x8xf32> to vector<8x8xf32>
    %cst_149 = arith.constant dense<0.000000e+00> : vector<8x512xf32>
    %500 = tpu.matmul %499, %497, %cst_149 {dimension_numbers = #tpu.dot_dimension_numbers<[1], [0], [0], [1], [0, 0, 1, 1], [], []>} : vector<8x8xf32>, vector<8x512xf32>, vector<8x512xf32> -> vector<8x512xf32>
    %501 = arith.addf %494, %500 : vector<8x512xf32>
    %c511_i32_150 = arith.constant 511 : i32
    %502 = tpu.dynamic_rotate %468 by %c511_i32_150 dim 1 : vector<8x512xf32>, i32 -> vector<8x512xf32>
    %503 = vector.broadcast %58 : vector<1x512xf32> to vector<8x512xf32>
    %504 = arith.mulf %502, %503 : vector<8x512xf32>
    %505 = vector.extract_strided_slice %82 {offsets = [5, 0, 0], sizes = [1, 8, 8], strides = [1, 1, 1]} : vector<9x8x8xf32> to vector<1x8x8xf32>
    %506 = vector.shape_cast %505 : vector<1x8x8xf32> to vector<8x8xf32>
    %cst_151 = arith.constant dense<0.000000e+00> : vector<8x512xf32>
    %507 = tpu.matmul %506, %504, %cst_151 {dimension_numbers = #tpu.dot_dimension_numbers<[1], [0], [0], [1], [0, 0, 1, 1], [], []>} : vector<8x8xf32>, vector<8x512xf32>, vector<8x512xf32> -> vector<8x512xf32>
    %508 = arith.addf %501, %507 : vector<8x512xf32>
    %c497_i32_152 = arith.constant 497 : i32
    %509 = tpu.dynamic_rotate %468 by %c497_i32_152 dim 1 : vector<8x512xf32>, i32 -> vector<8x512xf32>
    %510 = vector.broadcast %65 : vector<1x512xf32> to vector<8x512xf32>
    %511 = arith.mulf %509, %510 : vector<8x512xf32>
    %512 = vector.extract_strided_slice %82 {offsets = [6, 0, 0], sizes = [1, 8, 8], strides = [1, 1, 1]} : vector<9x8x8xf32> to vector<1x8x8xf32>
    %513 = vector.shape_cast %512 : vector<1x8x8xf32> to vector<8x8xf32>
    %cst_153 = arith.constant dense<0.000000e+00> : vector<8x512xf32>
    %514 = tpu.matmul %513, %511, %cst_153 {dimension_numbers = #tpu.dot_dimension_numbers<[1], [0], [0], [1], [0, 0, 1, 1], [], []>} : vector<8x8xf32>, vector<8x512xf32>, vector<8x512xf32> -> vector<8x512xf32>
    %515 = arith.addf %508, %514 : vector<8x512xf32>
    %c496_i32_154 = arith.constant 496 : i32
    %516 = tpu.dynamic_rotate %468 by %c496_i32_154 dim 1 : vector<8x512xf32>, i32 -> vector<8x512xf32>
    %517 = vector.broadcast %69 : vector<1x512xf32> to vector<8x512xf32>
    %518 = arith.mulf %516, %517 : vector<8x512xf32>
    %519 = vector.extract_strided_slice %82 {offsets = [7, 0, 0], sizes = [1, 8, 8], strides = [1, 1, 1]} : vector<9x8x8xf32> to vector<1x8x8xf32>
    %520 = vector.shape_cast %519 : vector<1x8x8xf32> to vector<8x8xf32>
    %cst_155 = arith.constant dense<0.000000e+00> : vector<8x512xf32>
    %521 = tpu.matmul %520, %518, %cst_155 {dimension_numbers = #tpu.dot_dimension_numbers<[1], [0], [0], [1], [0, 0, 1, 1], [], []>} : vector<8x8xf32>, vector<8x512xf32>, vector<8x512xf32> -> vector<8x512xf32>
    %522 = arith.addf %515, %521 : vector<8x512xf32>
    %c495_i32_156 = arith.constant 495 : i32
    %523 = tpu.dynamic_rotate %468 by %c495_i32_156 dim 1 : vector<8x512xf32>, i32 -> vector<8x512xf32>
    %524 = vector.broadcast %76 : vector<1x512xf32> to vector<8x512xf32>
    %525 = arith.mulf %523, %524 : vector<8x512xf32>
    %526 = vector.extract_strided_slice %82 {offsets = [8, 0, 0], sizes = [1, 8, 8], strides = [1, 1, 1]} : vector<9x8x8xf32> to vector<1x8x8xf32>
    %527 = vector.shape_cast %526 : vector<1x8x8xf32> to vector<8x8xf32>
    %cst_157 = arith.constant dense<0.000000e+00> : vector<8x512xf32>
    %528 = tpu.matmul %527, %525, %cst_157 {dimension_numbers = #tpu.dot_dimension_numbers<[1], [0], [0], [1], [0, 0, 1, 1], [], []>} : vector<8x8xf32>, vector<8x512xf32>, vector<8x512xf32> -> vector<8x512xf32>
    %529 = arith.addf %522, %528 : vector<8x512xf32>
    %cst_158 = arith.constant 0.000000e+00 : f32
    %530 = vector.broadcast %cst_158 : f32 to vector<8x512xf32>
    %531 = arith.maximumf %529, %530 : vector<8x512xf32>
    %532 = vector.extract_strided_slice %84 {offsets = [4, 0, 0], sizes = [1, 8, 8], strides = [1, 1, 1]} : vector<9x8x8xf32> to vector<1x8x8xf32>
    %533 = vector.shape_cast %532 : vector<1x8x8xf32> to vector<8x8xf32>
    %cst_159 = arith.constant dense<0.000000e+00> : vector<8x512xf32>
    %534 = tpu.matmul %533, %531, %cst_159 {dimension_numbers = #tpu.dot_dimension_numbers<[1], [0], [0], [1], [0, 0, 1, 1], [], []>} : vector<8x8xf32>, vector<8x512xf32>, vector<8x512xf32> -> vector<8x512xf32>
    %535 = vector.broadcast %85 : vector<8x1xf32> to vector<8x512xf32>
    %536 = arith.addf %534, %535 : vector<8x512xf32>
    %c17_i32_160 = arith.constant 17 : i32
    %537 = tpu.dynamic_rotate %531 by %c17_i32_160 dim 1 : vector<8x512xf32>, i32 -> vector<8x512xf32>
    %538 = vector.broadcast %39 : vector<1x512xf32> to vector<8x512xf32>
    %539 = arith.mulf %537, %538 : vector<8x512xf32>
    %540 = vector.extract_strided_slice %84 {offsets = [0, 0, 0], sizes = [1, 8, 8], strides = [1, 1, 1]} : vector<9x8x8xf32> to vector<1x8x8xf32>
    %541 = vector.shape_cast %540 : vector<1x8x8xf32> to vector<8x8xf32>
    %cst_161 = arith.constant dense<0.000000e+00> : vector<8x512xf32>
    %542 = tpu.matmul %541, %539, %cst_161 {dimension_numbers = #tpu.dot_dimension_numbers<[1], [0], [0], [1], [0, 0, 1, 1], [], []>} : vector<8x8xf32>, vector<8x512xf32>, vector<8x512xf32> -> vector<8x512xf32>
    %543 = arith.addf %536, %542 : vector<8x512xf32>
    %c16_i32_162 = arith.constant 16 : i32
    %544 = tpu.dynamic_rotate %531 by %c16_i32_162 dim 1 : vector<8x512xf32>, i32 -> vector<8x512xf32>
    %545 = vector.broadcast %43 : vector<1x512xf32> to vector<8x512xf32>
    %546 = arith.mulf %544, %545 : vector<8x512xf32>
    %547 = vector.extract_strided_slice %84 {offsets = [1, 0, 0], sizes = [1, 8, 8], strides = [1, 1, 1]} : vector<9x8x8xf32> to vector<1x8x8xf32>
    %548 = vector.shape_cast %547 : vector<1x8x8xf32> to vector<8x8xf32>
    %cst_163 = arith.constant dense<0.000000e+00> : vector<8x512xf32>
    %549 = tpu.matmul %548, %546, %cst_163 {dimension_numbers = #tpu.dot_dimension_numbers<[1], [0], [0], [1], [0, 0, 1, 1], [], []>} : vector<8x8xf32>, vector<8x512xf32>, vector<8x512xf32> -> vector<8x512xf32>
    %550 = arith.addf %543, %549 : vector<8x512xf32>
    %c15_i32_164 = arith.constant 15 : i32
    %551 = tpu.dynamic_rotate %531 by %c15_i32_164 dim 1 : vector<8x512xf32>, i32 -> vector<8x512xf32>
    %552 = vector.broadcast %50 : vector<1x512xf32> to vector<8x512xf32>
    %553 = arith.mulf %551, %552 : vector<8x512xf32>
    %554 = vector.extract_strided_slice %84 {offsets = [2, 0, 0], sizes = [1, 8, 8], strides = [1, 1, 1]} : vector<9x8x8xf32> to vector<1x8x8xf32>
    %555 = vector.shape_cast %554 : vector<1x8x8xf32> to vector<8x8xf32>
    %cst_165 = arith.constant dense<0.000000e+00> : vector<8x512xf32>
    %556 = tpu.matmul %555, %553, %cst_165 {dimension_numbers = #tpu.dot_dimension_numbers<[1], [0], [0], [1], [0, 0, 1, 1], [], []>} : vector<8x8xf32>, vector<8x512xf32>, vector<8x512xf32> -> vector<8x512xf32>
    %557 = arith.addf %550, %556 : vector<8x512xf32>
    %c1_i32_166 = arith.constant 1 : i32
    %558 = tpu.dynamic_rotate %531 by %c1_i32_166 dim 1 : vector<8x512xf32>, i32 -> vector<8x512xf32>
    %559 = vector.broadcast %54 : vector<1x512xf32> to vector<8x512xf32>
    %560 = arith.mulf %558, %559 : vector<8x512xf32>
    %561 = vector.extract_strided_slice %84 {offsets = [3, 0, 0], sizes = [1, 8, 8], strides = [1, 1, 1]} : vector<9x8x8xf32> to vector<1x8x8xf32>
    %562 = vector.shape_cast %561 : vector<1x8x8xf32> to vector<8x8xf32>
    %cst_167 = arith.constant dense<0.000000e+00> : vector<8x512xf32>
    %563 = tpu.matmul %562, %560, %cst_167 {dimension_numbers = #tpu.dot_dimension_numbers<[1], [0], [0], [1], [0, 0, 1, 1], [], []>} : vector<8x8xf32>, vector<8x512xf32>, vector<8x512xf32> -> vector<8x512xf32>
    %564 = arith.addf %557, %563 : vector<8x512xf32>
    %c511_i32_168 = arith.constant 511 : i32
    %565 = tpu.dynamic_rotate %531 by %c511_i32_168 dim 1 : vector<8x512xf32>, i32 -> vector<8x512xf32>
    %566 = vector.broadcast %58 : vector<1x512xf32> to vector<8x512xf32>
    %567 = arith.mulf %565, %566 : vector<8x512xf32>
    %568 = vector.extract_strided_slice %84 {offsets = [5, 0, 0], sizes = [1, 8, 8], strides = [1, 1, 1]} : vector<9x8x8xf32> to vector<1x8x8xf32>
    %569 = vector.shape_cast %568 : vector<1x8x8xf32> to vector<8x8xf32>
    %cst_169 = arith.constant dense<0.000000e+00> : vector<8x512xf32>
    %570 = tpu.matmul %569, %567, %cst_169 {dimension_numbers = #tpu.dot_dimension_numbers<[1], [0], [0], [1], [0, 0, 1, 1], [], []>} : vector<8x8xf32>, vector<8x512xf32>, vector<8x512xf32> -> vector<8x512xf32>
    %571 = arith.addf %564, %570 : vector<8x512xf32>
    %c497_i32_170 = arith.constant 497 : i32
    %572 = tpu.dynamic_rotate %531 by %c497_i32_170 dim 1 : vector<8x512xf32>, i32 -> vector<8x512xf32>
    %573 = vector.broadcast %65 : vector<1x512xf32> to vector<8x512xf32>
    %574 = arith.mulf %572, %573 : vector<8x512xf32>
    %575 = vector.extract_strided_slice %84 {offsets = [6, 0, 0], sizes = [1, 8, 8], strides = [1, 1, 1]} : vector<9x8x8xf32> to vector<1x8x8xf32>
    %576 = vector.shape_cast %575 : vector<1x8x8xf32> to vector<8x8xf32>
    %cst_171 = arith.constant dense<0.000000e+00> : vector<8x512xf32>
    %577 = tpu.matmul %576, %574, %cst_171 {dimension_numbers = #tpu.dot_dimension_numbers<[1], [0], [0], [1], [0, 0, 1, 1], [], []>} : vector<8x8xf32>, vector<8x512xf32>, vector<8x512xf32> -> vector<8x512xf32>
    %578 = arith.addf %571, %577 : vector<8x512xf32>
    %c496_i32_172 = arith.constant 496 : i32
    %579 = tpu.dynamic_rotate %531 by %c496_i32_172 dim 1 : vector<8x512xf32>, i32 -> vector<8x512xf32>
    %580 = vector.broadcast %69 : vector<1x512xf32> to vector<8x512xf32>
    %581 = arith.mulf %579, %580 : vector<8x512xf32>
    %582 = vector.extract_strided_slice %84 {offsets = [7, 0, 0], sizes = [1, 8, 8], strides = [1, 1, 1]} : vector<9x8x8xf32> to vector<1x8x8xf32>
    %583 = vector.shape_cast %582 : vector<1x8x8xf32> to vector<8x8xf32>
    %cst_173 = arith.constant dense<0.000000e+00> : vector<8x512xf32>
    %584 = tpu.matmul %583, %581, %cst_173 {dimension_numbers = #tpu.dot_dimension_numbers<[1], [0], [0], [1], [0, 0, 1, 1], [], []>} : vector<8x8xf32>, vector<8x512xf32>, vector<8x512xf32> -> vector<8x512xf32>
    %585 = arith.addf %578, %584 : vector<8x512xf32>
    %c495_i32_174 = arith.constant 495 : i32
    %586 = tpu.dynamic_rotate %531 by %c495_i32_174 dim 1 : vector<8x512xf32>, i32 -> vector<8x512xf32>
    %587 = vector.broadcast %76 : vector<1x512xf32> to vector<8x512xf32>
    %588 = arith.mulf %586, %587 : vector<8x512xf32>
    %589 = vector.extract_strided_slice %84 {offsets = [8, 0, 0], sizes = [1, 8, 8], strides = [1, 1, 1]} : vector<9x8x8xf32> to vector<1x8x8xf32>
    %590 = vector.shape_cast %589 : vector<1x8x8xf32> to vector<8x8xf32>
    %cst_175 = arith.constant dense<0.000000e+00> : vector<8x512xf32>
    %591 = tpu.matmul %590, %588, %cst_175 {dimension_numbers = #tpu.dot_dimension_numbers<[1], [0], [0], [1], [0, 0, 1, 1], [], []>} : vector<8x8xf32>, vector<8x512xf32>, vector<8x512xf32> -> vector<8x512xf32>
    %592 = arith.addf %585, %591 : vector<8x512xf32>
    %cst_176 = arith.constant 0.699999988 : f32
    %593 = vector.broadcast %cst_176 : f32 to vector<8x512xf32>
    %594 = arith.mulf %593, %592 : vector<8x512xf32>
    %595 = arith.addf %468, %594 : vector<8x512xf32>
    %c0_177 = arith.constant 0 : index
    %c0_178 = arith.constant 0 : index
    %596 = vector.load %arg9[%c0_177, %c0_178] : memref<8x512xf32, #tpu.memory_space<vmem>>, vector<8x512xf32>
    tpu.vector_store %arg9[%c0_177, %c0_178], %595 {strides = array<i32>} : memref<8x512xf32, #tpu.memory_space<vmem>>, vector<8x512xf32>,
    return
  }
}

</mosaic_0001>

<bundles_post_ra>
// kernel: refined_autoencoder.1
= control target key start
LH: loop header
LB: loop body
LE: loop exit
PB: predicated region body
PF: predicated region fallthrough
CT: control target
= control target key end

     0   :  { %s7958_s13 = smov 17   ;;  %s7959_s18 = smov 16   ;;  %vm278_vm0 = vcmask 64512   ;;  %v32_v6 = vlaneseq  ;;  %v7966_v27 = vmov 0.0   ;;  %s10025_s0 = inlined_call_operand.vmem [shape: f32[8,512], index: 0, kind: input, shape index: {}]   ;;  %s10026_s1 = inlined_call_operand.vmem [shape: f32[9,8,8], index: 1, kind: input, shape index: {}]   ;;  %s10027_s2 = inlined_call_operand.vmem [shape: f32[8,1], index: 2, kind: input, shape index: {}]   ;;  %s10028_s3 = inlined_call_operand.vmem [shape: f32[9,8,8], index: 3, kind: input, shape index: {}]   ;;  %s10029_s4 = inlined_call_operand.vmem [shape: f32[8,1], index: 4, kind: input, shape index: {}]   ;;  %s10030_s5 = inlined_call_operand.vmem [shape: f32[9,8,8], index: 5, kind: input, shape index: {}]   ;;  %s10031_s6 = inlined_call_operand.vmem [shape: f32[8,1], index: 6, kind: input, shape index: {}]   ;;  %s10032_s7 = inlined_call_operand.vmem [shape: f32[9,8,8], index: 7, kind: input, shape index: {}]   ;;  %s10033_s8 = inlined_call_operand.vmem [shape: f32[8,1], index: 8, kind: input, shape index: {}]   ;;  %s10034_s9 = inlined_call_operand.vmem [shape: f32[8,512], index: 9, kind: output, shape index: {}]  }
   0x1   :  { %v232_v0 = vld [vmem:[%s10025_s0 + $0x18] sm:$0xff]  ;;  %v230_v1 = vld [vmem:[%s10025_s0 + $0x8] sm:$0xff]  ;;  %v231_v2 = vld [vmem:[%s10025_s0 + $0x10] sm:$0xff]  ;;  %s7960_s19 = smov 15   ;;  %s7962_s20 = smov 127  }
   0x2   :  { %368 = vrot.lane.b32.xlu1 %v232_v0, %s7958_s13  ;;  %364 = vrot.lane.b32.xlu0 %v230_v1, %s7958_s13  ;;  %v229_v3 = vld [vmem:[%s10025_s0] sm:$0xff]  ;;  %s7961_s0 = smov 1   ;;  %s7963_s21 = smov 113   ;;  %v8073_v8 = vand.u32 127, %v32_v6  ;;  %v234_v61 = vld [vmem:[%s10026_s1 + $0x8] sm:$0xff] }
   0x3   :  { %468 = vrot.lane.b32.xlu2 %v230_v1, %s7959_s18  ;;  %317 = vmatpush.msra.mxu1 %v230_v1  ;;  %s7964_s22 = smov 112   ;;  %s7965_s23 = smov 111   ;;  %v237_v4 = vld [vmem:[%s10026_s1 + $0x20] sm:$0xff] }
   0x4   :  { %337 = vmatpush.msra.mxu2 %v231_v2  ;;  %297 = vmatpush.msra.mxu0 %v229_v3  ;;  %v35_v9 = vadd.s32 256, %v8073_v8  ;;  %v41_v11 = vand.u32 15, %v8073_v8  ;;  %v89_v12 = vand.u32 255, %v8073_v8  ;;  %v8081_v13 = vadd.s32 128, %v8073_v8  ;;  %v233_v47 = vld [vmem:[%s10026_s1] sm:$0xff] }
   0x5   :  { %357 = vmatpush.msra.mxu3 %v232_v0  ;;  %7603 = vmatmul.msk.f32.vlgmr.msra.gmra.mxu1 %vm278_vm0, %v237_v4  ;;  %v8084_v14 = vadd.s32 384, %v8073_v8  ;;  %vm474_vm5 = vcmp.lt.s32.totalorder %v8073_v8, 16  ;;  %vm370_vm10 = vcmp.lt.s32.totalorder %v8073_v8, 17  ;;  %vm578_vm11 = vcmp.lt.s32.totalorder %v8073_v8, 15 }
   0x6   :  { %7604 = vmatmul.msk.f32.vlgmr.msra.gmra.mxu2 %vm278_vm0, %v237_v4  ;;  %7602 = vmatmul.msk.f32.vlgmr.msra.gmra.mxu0 %vm278_vm0, %v237_v4  ;;  %v103_v15 = vand.u32 255, %v35_v9  ;;  %v55_v16 = vand.u32 15, %v35_v9  ;;  %vm8086_vm1 = vcmp.ge.s32.totalorder %v89_v12, 16  ;;  %vm8092_vm2 = vcmp.ge.s32.totalorder %v41_v11, 1 }
   0x7   :  { %7605 = vmatmul.msk.f32.vlgmr.msra.gmra.mxu3 %vm278_vm0, %v237_v4  ;;  %v48_v21 = vand.u32 15, %v8081_v13  ;;  %v62_v22 = vand.u32 15, %v8084_v14  ;;  %vm141_vm6 = vmand %vm8086_vm1, %vm8092_vm2  ;;  %v8186_v50 = vsel %vm8086_vm1, 1.0, %v7966_v27  ;;  %vm8207_vm14 = vcmp.lt.s32.totalorder %v41_v11, 15 }
   0x8   :  { %vm8098_vm3 = vcmp.ge.s32.totalorder %v103_v15, 16  ;;  %vm8102_vm4 = vcmp.ge.s32.totalorder %v55_v16, 1  ;;  %v8136_v31 = vsel %vm141_vm6, 1.0, %v7966_v27  ;;  %vm8193_vm13 = vcmp.lt.s32.totalorder %v55_v16, 15 }
   0x9   :  { %vm8111_vm7 = vcmp.ge.s32.totalorder %v48_v21, 1  ;;  %vm143_vm8 = vmand %vm8098_vm3, %vm8102_vm4  ;;  %vm8119_vm9 = vcmp.ge.s32.totalorder %v62_v22, 1  ;;  %v8126_v28 = vsel %vm8098_vm3, 1.0, %v7966_v27  ;;  %vm8153_vm12 = vcmp.lt.s32.totalorder %v48_v21, 15 }
   0xa   :  { %366 = vrot.lane.b32.xlu0 %v231_v2, %s7958_s13  ;;  %362 = vrot.lane.b32.xlu1 %v229_v3, %s7958_s13  ;;  %v8141_v32 = vsel %vm8111_vm7, 1.0, %v7966_v27  ;;  %v8144_v33 = vsel %vm143_vm8, 1.0, %v7966_v27  ;;  %v8149_v34 = vsel %vm8119_vm9, 1.0, %v7966_v27  ;;  %v8175_v48 = vsel %vm8153_vm12, 1.0, %v7966_v27  ;;  %vm167_vm15 = vmand %vm8098_vm3, %vm8193_vm13 }
   0xb   :  { %470 = vrot.lane.b32.xlu2 %v231_v2, %s7959_s18  ;;  %vm8219_vm6 = vcmp.lt.s32.totalorder %v62_v22, 15  ;;  %vm165_vm8 = vmand %vm8086_vm1, %vm8207_vm14  ;;  %v8230_v63 = vsel %vm167_vm15, 1.0, %v7966_v27  ;;  %v7967_v4 = vmov 0   ;;  %vm682_vm1 = vcmp.lt.s32.totalorder %v8073_v8, 1 }
   0xc   :  { %7904 = vset.pattern.permute.xlu2 %v7967_v4  ;;  %7905 = vset.pattern.permute.xlu0 %v7967_v4  ;;  %v96_v20 = vand.u32 255, %v8081_v13  ;;  %vm786_vm3 = vcmp.lt.s32.totalorder %v8073_v8, 127  ;;  %v8307_v13 = vsel %vm8207_vm14, 1.0, %v7966_v27 }
  0x12   :  { %472 = vrot.lane.b32.xlu0 %v232_v0, %s7959_s18  ;;  %466 = vrot.lane.b32.xlu1 %v229_v3, %s7959_s18 }
  0x13   :  { %572 = vrot.lane.b32.xlu2 %v230_v1, %s7960_s19 }
  0x1a   :  { %574 = vrot.lane.b32.xlu0 %v231_v2, %s7960_s19  ;;  %576 = vrot.lane.b32.xlu1 %v232_v0, %s7960_s19 }
  0x1b   :  { %570 = vrot.lane.b32.xlu2 %v229_v3, %s7960_s19 }
  0x22   :  { %676 = vrot.lane.b32.xlu0 %v230_v1, %s7961_s0  ;;  %678 = vrot.lane.b32.xlu1 %v231_v2, %s7961_s0 }
  0x23   :  { %680 = vrot.lane.b32.xlu2 %v232_v0, %s7961_s0 }
  0x2a   :  { %674 = vrot.lane.b32.xlu0 %v229_v3, %s7961_s0  ;;  %778 = vrot.lane.b32.xlu1 %v229_v3, %s7962_s20 }
  0x2b   :  { %782 = vrot.lane.b32.xlu2 %v231_v2, %s7962_s20 }
  0x32   :  { %784 = vrot.lane.b32.xlu0 %v232_v0, %s7962_s20  ;;  %780 = vrot.lane.b32.xlu1 %v230_v1, %s7962_s20 }
  0x33   :  { %882 = vrot.lane.b32.xlu2 %v229_v3, %s7963_s21 }
  0x3a   :  { %886 = vrot.lane.b32.xlu0 %v231_v2, %s7963_s21  ;;  %888 = vrot.lane.b32.xlu1 %v232_v0, %s7963_s21 }
  0x3b   :  { %884 = vrot.lane.b32.xlu2 %v230_v1, %s7963_s21 }
  0x42   :  { %986 = vrot.lane.b32.xlu0 %v229_v3, %s7964_s22  ;;  %992 = vrot.lane.b32.xlu1 %v232_v0, %s7964_s22 }
  0x43   :  { %990 = vrot.lane.b32.xlu2 %v231_v2, %s7964_s22 }
  0x4a   :  { %988 = vrot.lane.b32.xlu0 %v230_v1, %s7964_s22  ;;  %1090 = vrot.lane.b32.xlu1 %v229_v3, %s7965_s23 }
  0x4b   :  { %1094 = vrot.lane.b32.xlu2 %v231_v2, %s7965_s23 }
  0x52   :  { %1096 = vrot.lane.b32.xlu0 %v232_v0, %s7965_s23  ;;  %1092 = vrot.lane.b32.xlu1 %v230_v1, %s7965_s23  ;;  %v8233_v0 = vsel %vm165_vm8, 1.0, %v7966_v27  ;;  %v8238_v1 = vsel %vm8219_vm6, 1.0, %v7966_v27 }
  0x5d   :  { %v8069_v5 = vpop.permute.xlu2 %468 }
  0x65   :  { %v8071_v7 = vpop.permute.xlu2 %470 }
  0x66   :  { %v476_v29 = vsel %vm474_vm5, %v8069_v5, %v8071_v7 }
  0x67   :  { %v481_v35 = vmul.f32 %v8126_v28, %v476_v29 }
  0x6d   :  { %v8076_v10 = vpop.permute.xlu2 %572 }
  0x74   :  { %v369_v17 = vpop.permute.xlu1 %368  ;;  %v365_v18 = vpop.permute.xlu0 %364 }
  0x75   :  { %v8132_v30 = vpop.permute.xlu2 %570 }
  0x76   :  { %v581_v49 = vsel %vm578_vm11, %v8132_v30, %v8076_v10 }
  0x77   :  { %v584_v51 = vmul.f32 %v8175_v48, %v581_v49 }
  0x7c   :  { %v367_v36 = vpop.permute.xlu0 %366  ;;  %v363_v37 = vpop.permute.xlu1 %362 }
  0x7d   :  { %v374_v39 = vsel %vm370_vm10, %v369_v17, %v363_v37  ;;  %v373_v40 = vsel %vm370_vm10, %v363_v37, %v365_v18  ;;  %v372_v41 = vsel %vm370_vm10, %v365_v18, %v367_v36  ;;  %v371_v42 = vsel %vm370_vm10, %v367_v36, %v369_v17  ;;  %v8190_v52 = vpop.permute.xlu2 %680 }
  0x7e   :  { %v375_v43 = vmul.f32 %v8136_v31, %v374_v39  ;;  %v376_v44 = vmul.f32 %v8141_v32, %v373_v40  ;;  %v377_v45 = vmul.f32 %v8144_v33, %v372_v41  ;;  %v378_v46 = vmul.f32 %v8149_v34, %v371_v42 }
  0x7f   :  { %v8264_v17 = vsel %vm8102_vm4, 1.0, %v7966_v27  ;;  %vm8309_vm4 = vcmp.lt.s32.totalorder %v96_v20, 240 }
  0x80   :  { %397 = vmatpush.msrb.mxu0 %v375_v43  ;;  %417 = vmatpush.msrb.mxu1 %v376_v44  ;;  %v110_v43 = vand.u32 255, %v8084_v14  ;;  %vm218_vm8 = vmand %vm8309_vm4, %vm8153_vm12 }
  0x81   :  { %437 = vmatpush.msrb.mxu2 %v377_v45  ;;  %457 = vmatpush.msrb.mxu3 %v378_v46  ;;  %v8302_v45 = vsel %vm8193_vm13, 1.0, %v7966_v27  ;;  %vm198_vm13 = vmand %vm8309_vm4, %vm8111_vm7  ;;  %vm994_vm7 = vcmp.lt.s32.totalorder %v8073_v8, 112 }
  0x82   :  { %7607 = vmatmul.msk.f32.vlgmr.msrb.gmra.mxu1 %vm278_vm0, %v233_v47  ;;  %7608 = vmatmul.msk.f32.vlgmr.msrb.gmra.mxu2 %vm278_vm0, %v233_v47  ;;  %vm8315_vm15 = vcmp.lt.s32.totalorder %v110_v43, 240  ;;  %v8348_v25 = vsel %vm198_vm13, 1.0, %v7966_v27  ;;  %vm10043_vm13 = vcmp.lt.s32.totalorder %v8073_v8, 111 }
  0x83   :  { %541 = vmatpush.msra.mxu2 %v481_v35  ;;  %7606 = vmatmul.msk.f32.vlgmr.msrb.gmra.mxu0 %vm278_vm0, %v233_v47  ;;  %v8282_v35 = vsel %vm8092_vm2, 1.0, %v7966_v27  ;;  %vm890_vm2 = vcmp.lt.s32.totalorder %v8073_v8, 113  ;;  %vm200_vm14 = vmand %vm8315_vm15, %vm8119_vm9  ;;  %10092 = vst [vmem:[#allocation2_spill] sm:$0xff] %v8348_v25 }
  0x84   :  { %v473_v53 = vpop.permute.xlu0 %472  ;;  %v467_v54 = vpop.permute.xlu1 %466  ;;  %7609 = vmatmul.msk.f32.vlgmr.msrb.gmra.mxu3 %vm278_vm0, %v233_v47  ;;  %vm220_vm9 = vmand %vm8315_vm15, %vm8219_vm6 }
  0x85   :  { %v478_v56 = vsel %vm474_vm5, %v473_v53, %v467_v54  ;;  %v477_v57 = vsel %vm474_vm5, %v467_v54, %v8069_v5  ;;  %v475_v58 = vsel %vm474_vm5, %v8071_v7, %v473_v53  ;;  %v242_v5 = vld [vmem:[%s10027_s2] sm:$0xff]  ;;  %v783_v11 = vpop.permute.xlu2 %782 }
  0x86   :  { %v479_v60 = vmul.f32 %v8186_v50, %v478_v56  ;;  %521 = vmatpush.msra.mxu1 %v477_v57  ;;  %561 = vmatpush.msra.mxu3 %v475_v58 }
  0x87   :  { %275 = vperm.xlu2 %7904, %v242_v5  }
  0x88   :  { %625 = vmatpush.msrb.mxu1 %v584_v51  ;;  %501 = vmatpush.msra.mxu0 %v479_v60  ;;  %v238_v60 = vld [vmem:[%s10026_s1 + $0x28] sm:$0xff]  ;;  %v241_v51 = vld [vmem:[%s10026_s1 + $0x40] sm:$0xff] }
  0x8a   :  { %7611 = vmatmul.msk.f32.vlgmr.msra.gmra.mxu1 %vm278_vm0, %v234_v61  ;;  %7612 = vmatmul.msk.f32.vlgmr.msra.gmra.mxu2 %vm278_vm0, %v234_v61 }
  0x8b   :  { %7610 = vmatmul.msk.f32.vlgmr.msra.gmra.mxu0 %vm278_vm0, %v234_v61 }
  0x8c   :  { %v575_v2 = vpop.permute.xlu0 %574  ;;  %v577_v3 = vpop.permute.xlu1 %576  ;;  %7613 = vmatmul.msk.f32.vlgmr.msra.gmra.mxu3 %vm278_vm0, %v234_v61 }
  0x8d   :  { %v580_v6 = vsel %vm578_vm11, %v8076_v10, %v575_v2  ;;  %v579_v7 = vsel %vm578_vm11, %v575_v2, %v577_v3  ;;  %v582_v9 = vsel %vm578_vm11, %v577_v3, %v8132_v30  ;;  %v235_v10 = vld [vmem:[%s10026_s1 + $0x10] sm:$0xff]  ;;  %v883_v29 = vpop.permute.xlu2 %882  ;;  %v236_v30 = vld [vmem:[%s10026_s1 + $0x18] sm:$0xff]  ;;  %v8351_v2 = vsel %vm200_vm14, 1.0, %v7966_v27 }
  0x8e   :  { %v585_v12 = vmul.f32 %v8230_v63, %v580_v6  ;;  %v583_v15 = vmul.f32 %v8233_v0, %v582_v9  ;;  %v586_v16 = vmul.f32 %v8238_v1, %v579_v7  ;;  %10093 = vst [vmem:[#allocation3_spill] sm:$0xff] %v8351_v2 }
  0x90   :  { %605 = vmatpush.msrb.mxu0 %v583_v15  ;;  %645 = vmatpush.msrb.mxu2 %v585_v12  ;;  %v239_v12 = vld [vmem:[%s10026_s1 + $0x30] sm:$0xff] }
  0x91   :  { %665 = vmatpush.msrb.mxu3 %v586_v16  ;;  %v8373_v16 = vsel %vm8315_vm15, 1.0, %v7966_v27 }
  0x92   :  { %7615 = vmatmul.msk.f32.vlgmr.msrb.gmra.mxu1 %vm278_vm0, %v235_v10  ;;  %7616 = vmatmul.msk.f32.vlgmr.msrb.gmra.mxu2 %vm278_vm0, %v235_v10  ;;  %10094 = vst [vmem:[#allocation4_spill] sm:$0xff] %v8373_v16 }
  0x93   :  { %7614 = vmatmul.msk.f32.vlgmr.msrb.gmra.mxu0 %vm278_vm0, %v235_v10 }
  0x94   :  { %v677_v18 = vpop.permute.xlu0 %676  ;;  %v679_v19 = vpop.permute.xlu1 %678  ;;  %7617 = vmatmul.msk.f32.vlgmr.msrb.gmra.mxu3 %vm278_vm0, %v235_v10 }
  0x95   :  { %v683_v21 = vsel %vm682_vm1, %v679_v19, %v8190_v52  ;;  %v684_v22 = vsel %vm682_vm1, %v677_v18, %v679_v19  ;;  %v885_v44 = vpop.permute.xlu2 %884 }
  0x96   :  { %v689_v23 = vmul.f32 %v8264_v17, %v684_v22  ;;  %v690_v24 = vmul.f32 %v8149_v34, %v683_v21  ;;  %v893_v49 = vsel %vm890_vm2, %v883_v29, %v885_v44 }
  0x97   :  { %v895_v61 = vmul.f32 %v8282_v35, %v893_v49 }
  0x98   :  { %749 = vmatpush.msra.mxu2 %v689_v23  ;;  %769 = vmatpush.msra.mxu3 %v690_v24  ;;  %v240_v23 = vld [vmem:[%s10026_s1 + $0x38] sm:$0xff]  ;;  %v8388_v24 = vsel %vm8309_vm4, 1.0, %v7966_v27 }
  0x99   :  { %10095 = vst [vmem:[#allocation5_spill] sm:$0xff] %v8388_v24 }
  0x9a   :  { %7620 = vmatmul.msk.f32.vlgmr.msra.gmra.mxu2 %vm278_vm0, %v236_v30 }
  0x9c   :  { %v675_v36 = vpop.permute.xlu0 %674  ;;  %v779_v37 = vpop.permute.xlu1 %778  ;;  %7621 = vmatmul.msk.f32.vlgmr.msra.gmra.mxu3 %vm278_vm0, %v236_v30 }
  0x9d   :  { %v685_v39 = vsel %vm682_vm1, %v675_v36, %v677_v18  ;;  %v686_v40 = vsel %vm682_vm1, %v8190_v52, %v675_v36  ;;  %v991_v15 = vpop.permute.xlu2 %990 }
  0x9e   :  { %v687_v41 = vmul.f32 %v8282_v35, %v686_v40  ;;  %v688_v42 = vmul.f32 %v8141_v32, %v685_v39 }
  0xa0   :  { %709 = vmatpush.msra.mxu0 %v687_v41  ;;  %729 = vmatpush.msra.mxu1 %v688_v42  ;;  %v8407_v41 = vsel %vm220_vm9, 1.0, %v7966_v27  ;;  %v8410_v42 = vsel %vm218_vm8, 1.0, %v7966_v27 }
  0xa1   :  { %7618 = vmatmul.msk.f32.vlgmr.msra.gmra.mxu0 %vm278_vm0, %v236_v30  ;;  %7619 = vmatmul.msk.f32.vlgmr.msra.gmra.mxu1 %vm278_vm0, %v236_v30  ;;  %10096 = vst [vmem:[#allocation6_spill] sm:$0xff] %v8407_v41 }
  0xa2   :  { %10097 = vst [vmem:[#allocation7_spill] sm:$0xff] %v8410_v42 }
  0xa4   :  { %v785_v14 = vpop.permute.xlu0 %784  ;;  %v781_v46 = vpop.permute.xlu1 %780 }
  0xa5   :  { %v787_v52 = vsel %vm786_vm3, %v783_v11, %v785_v14  ;;  %v790_v53 = vsel %vm786_vm3, %v785_v14, %v779_v37  ;;  %v788_v54 = vsel %vm786_vm3, %v781_v46, %v783_v11  ;;  %v789_v55 = vsel %vm786_vm3, %v779_v37, %v781_v46  ;;  %v1095_v40 = vpop.permute.xlu2 %1094 }
  0xa6   :  { %v793_v56 = vmul.f32 %v8302_v45, %v787_v52  ;;  %v794_v57 = vmul.f32 %v8238_v1, %v790_v53  ;;  %v791_v58 = vmul.f32 %v8307_v13, %v789_v55  ;;  %v792_v59 = vmul.f32 %v8175_v48, %v788_v54  ;;  %v319_v52 = vpop.f32.mrf.mxu1  ;;  %v299_v53 = vpop.f32.mrf.mxu0 }
  0xa7   :  { %v359_v54 = vpop.f32.mrf.mxu3  ;;  %v339_v55 = vpop.f32.mrf.mxu2 }
  0xa8   :  { %813 = vmatpush.msrb.mxu0 %v791_v58  ;;  %833 = vmatpush.msrb.mxu1 %v792_v59 }
  0xa9   :  { %853 = vmatpush.msrb.mxu2 %v793_v56  ;;  %873 = vmatpush.msrb.mxu3 %v794_v57 }
  0xaa   :  { %7622 = vmatmul.msk.f32.vlgmr.msrb.gmra.mxu0 %vm278_vm0, %v238_v60  ;;  %7623 = vmatmul.msk.f32.vlgmr.msrb.gmra.mxu1 %vm278_vm0, %v238_v60 }
  0xab   :  { %7624 = vmatmul.msk.f32.vlgmr.msrb.gmra.mxu2 %vm278_vm0, %v238_v60  ;;  %7625 = vmatmul.msk.f32.vlgmr.msrb.gmra.mxu3 %vm278_vm0, %v238_v60 }
  0xac   :  { %v887_v26 = vpop.permute.xlu0 %886  ;;  %v889_v3 = vpop.permute.xlu1 %888  ;;  %917 = vmatpush.msra.mxu0 %v895_v61 }
  0xad   :  { %v892_v4 = vsel %vm890_vm2, %v885_v44, %v887_v26  ;;  %v891_v5 = vsel %vm890_vm2, %v887_v26, %v889_v3  ;;  %v894_v6 = vsel %vm890_vm2, %v889_v3, %v883_v29 }
  0xae   :  { %v896_v7 = vmul.f32 %v8348_v25, %v892_v4  ;;  %v897_v9 = vmul.f32 %v8264_v17, %v891_v5  ;;  %v898_v11 = vmul.f32 %v8351_v2, %v894_v6 }
  0xb0   :  { %937 = vmatpush.msra.mxu1 %v896_v7  ;;  %957 = vmatpush.msra.mxu2 %v897_v9 }
  0xb1   :  { %977 = vmatpush.msra.mxu3 %v898_v11 }
  0xb2   :  { %7626 = vmatmul.msk.f32.vlgmr.msra.gmra.mxu0 %vm278_vm0, %v239_v12  ;;  %7627 = vmatmul.msk.f32.vlgmr.msra.gmra.mxu1 %vm278_vm0, %v239_v12 }
  0xb3   :  { %7628 = vmatmul.msk.f32.vlgmr.msra.gmra.mxu2 %vm278_vm0, %v239_v12  ;;  %7629 = vmatmul.msk.f32.vlgmr.msra.gmra.mxu3 %vm278_vm0, %v239_v12 }
  0xb4   :  { %v987_v10 = vpop.permute.xlu0 %986  ;;  %v993_v18 = vpop.permute.xlu1 %992 }
  0xb5   :  { %v998_v19 = vsel %vm994_vm7, %v993_v18, %v987_v10  ;;  %v995_v21 = vsel %vm994_vm7, %v991_v15, %v993_v18 }
  0xb6   :  { %v1002_v22 = vmul.f32 %v8373_v16, %v998_v19  ;;  %1061 = vmatpush.msrb.mxu2 %v995_v21 }
  0xb8   :  { %1081 = vmatpush.msrb.mxu3 %v1002_v22 }
  0xbb   :  { %7632 = vmatmul.msk.f32.vlgmr.msrb.gmra.mxu2 %vm278_vm0, %v240_v23  ;;  %7633 = vmatmul.msk.f32.vlgmr.msrb.gmra.mxu3 %vm278_vm0, %v240_v23 }
  0xbc   :  { %v989_v29 = vpop.permute.xlu0 %988  ;;  %v1091_v30 = vpop.permute.xlu1 %1090 }
  0xbd   :  { %v996_v36 = vsel %vm994_vm7, %v989_v29, %v991_v15  ;;  %v997_v37 = vsel %vm994_vm7, %v987_v10, %v989_v29 }
  0xbe   :  { %v1000_v39 = vmul.f32 %v8388_v24, %v996_v36  ;;  %1021 = vmatpush.msrb.mxu0 %v997_v37 }
  0xbf   :  { %7630 = vmatmul.msk.f32.vlgmr.msrb.gmra.mxu0 %vm278_vm0, %v240_v23 }
  0xc0   :  { %1041 = vmatpush.msrb.mxu1 %v1000_v39 }
  0xc1   :  { %7631 = vmatmul.msk.f32.vlgmr.msrb.gmra.mxu1 %vm278_vm0, %v240_v23 }
  0xc4   :  { %v1097_v62 = vpop.permute.xlu0 %1096  ;;  %v1093_v20 = vpop.permute.xlu1 %1092 }
  0xc5   :  { %v1102_v43 = vsel %vm10043_vm13, %v1097_v62, %v1091_v30  ;;  %v1099_v38 = vsel %vm10043_vm13, %v1095_v40, %v1097_v62  ;;  %v1100_v44 = vsel %vm10043_vm13, %v1093_v20, %v1095_v40  ;;  %v1101_v14 = vsel %vm10043_vm13, %v1091_v30, %v1093_v20 }
  0xc6   :  { %v1106_v46 = vmul.f32 %v8407_v41, %v1102_v43  ;;  %v1105_v47 = vmul.f32 %v8302_v45, %v1099_v38  ;;  %v1103_v27 = vmul.f32 %v8307_v13, %v1101_v14  ;;  %v1104_v49 = vmul.f32 %v8410_v42, %v1100_v44 }
  0xc8   :  { %1125 = vmatpush.msra.mxu0 %v1103_v27  ;;  %1145 = vmatpush.msra.mxu1 %v1104_v49 }
  0xc9   :  { %1165 = vmatpush.msra.mxu2 %v1105_v47  ;;  %1185 = vmatpush.msra.mxu3 %v1106_v46 }
  0xca   :  { %7634 = vmatmul.msk.f32.vlgmr.msra.gmra.mxu0 %vm278_vm0, %v241_v51  ;;  %7635 = vmatmul.msk.f32.vlgmr.msra.gmra.mxu1 %vm278_vm0, %v241_v51 }
  0xcb   :  { %7636 = vmatmul.msk.f32.vlgmr.msra.gmra.mxu2 %vm278_vm0, %v241_v51  ;;  %7637 = vmatmul.msk.f32.vlgmr.msra.gmra.mxu3 %vm278_vm0, %v241_v51 }
  0xe1   :  { %v276_v19 = vpop.permute.xlu2 %275 }
  0xe2   :  { %v300_v21 = vadd.f32 %v299_v53, %v276_v19  ;;  %v320_v29 = vadd.f32 %v319_v52, %v276_v19  ;;  %v360_v30 = vadd.f32 %v359_v54, %v276_v19  ;;  %v340_v37 = vadd.f32 %v339_v55, %v276_v19 }
  0xff   :  { %v419_v56 = vpop.f32.mrf.mxu1 }
 0x100   :  { %v399_v57 = vpop.f32.mrf.mxu0  ;;  %v463_v62 = vadd.f32 %v419_v56, %v320_v29 }
 0x101   :  { %v462_v36 = vadd.f32 %v399_v57, %v300_v21 }
 0x105   :  { %v439_v59 = vpop.f32.mrf.mxu2 }
 0x106   :  { %v464_v38 = vadd.f32 %v439_v59, %v340_v37 }
 0x107   :  { %v459_v58 = vpop.f32.mrf.mxu3  ;;  %v523_v60 = vpop.f32.mrf.mxu1 }
 0x108   :  { %v503_v61 = vpop.f32.mrf.mxu0  ;;  %v465_v20 = vadd.f32 %v459_v58, %v360_v30  ;;  %v567_v44 = vadd.f32 %v523_v60, %v463_v62 }
 0x109   :  { %v566_v43 = vadd.f32 %v503_v61, %v462_v36 }
 0x10d   :  { %v543_v3 = vpop.f32.mrf.mxu2 }
 0x10e   :  { %v568_v51 = vadd.f32 %v543_v3, %v464_v38 }
 0x10f   :  { %v563_v26 = vpop.f32.mrf.mxu3  ;;  %v627_v4 = vpop.f32.mrf.mxu1 }
 0x110   :  { %v607_v5 = vpop.f32.mrf.mxu0  ;;  %v569_v47 = vadd.f32 %v563_v26, %v465_v20  ;;  %v671_v27 = vadd.f32 %v627_v4, %v567_v44 }
 0x111   :  { %v670_v49 = vadd.f32 %v607_v5, %v566_v43 }
 0x115   :  { %v647_v7 = vpop.f32.mrf.mxu2 }
 0x116   :  { %v672_v19 = vadd.f32 %v647_v7, %v568_v51 }
 0x117   :  { %v667_v6 = vpop.f32.mrf.mxu3 }
 0x118   :  { %v673_v54 = vadd.f32 %v667_v6, %v569_v47 }
 0x11d   :  { %v751_v15 = vpop.f32.mrf.mxu2 }
 0x11e   :  { %v711_v9 = vpop.f32.mrf.mxu0  ;;  %v731_v11 = vpop.f32.mrf.mxu1  ;;  %v776_v30 = vadd.f32 %v751_v15, %v672_v19 }
 0x11f   :  { %v771_v12 = vpop.f32.mrf.mxu3  ;;  %v774_v42 = vadd.f32 %v711_v9, %v670_v49  ;;  %v775_v52 = vadd.f32 %v731_v11, %v671_v27 }
 0x120   :  { %v777_v58 = vadd.f32 %v771_v12, %v673_v54  ;;  %v243_v54 = vld [vmem:[%s10028_s3] sm:$0xff] }
 0x127   :  { %v815_v10 = vpop.f32.mrf.mxu0  ;;  %v835_v18 = vpop.f32.mrf.mxu1 }
 0x128   :  { %v878_v57 = vadd.f32 %v815_v10, %v774_v42  ;;  %v879_v55 = vadd.f32 %v835_v18, %v775_v52 }
 0x12e   :  { %v855_v22 = vpop.f32.mrf.mxu2  ;;  %v875_v23 = vpop.f32.mrf.mxu3 }
 0x12f   :  { %v919_v39 = vpop.f32.mrf.mxu0  ;;  %v939_v40 = vpop.f32.mrf.mxu1  ;;  %v880_v36 = vadd.f32 %v855_v22, %v776_v30  ;;  %v881_v37 = vadd.f32 %v875_v23, %v777_v58  ;;  %v244_v30 = vld [vmem:[%s10028_s3 + $0x8] sm:$0xff] }
 0x130   :  { %v982_v21 = vadd.f32 %v919_v39, %v878_v57  ;;  %v983_v56 = vadd.f32 %v939_v40, %v879_v55  ;;  %v252_v40 = vld [vmem:[%s10029_s4] sm:$0xff] }
 0x136   :  { %v959_v14 = vpop.f32.mrf.mxu2  ;;  %v979_v46 = vpop.f32.mrf.mxu3 }
 0x137   :  { %v984_v6 = vadd.f32 %v959_v14, %v880_v36  ;;  %v985_v42 = vadd.f32 %v979_v46, %v881_v37 }
 0x13c   :  { %v1023_v53 = vpop.f32.mrf.mxu0 }
 0x13d   :  { %v1086_v61 = vadd.f32 %v1023_v53, %v982_v21 }
 0x13e   :  { %v1043_v41 = vpop.f32.mrf.mxu1  ;;  %v1063_v59 = vpop.f32.mrf.mxu2 }
 0x13f   :  { %v1083_v60 = vpop.f32.mrf.mxu3  ;;  %v1087_v29 = vadd.f32 %v1043_v41, %v983_v56  ;;  %v1088_v7 = vadd.f32 %v1063_v59, %v984_v6  ;;  %v247_v41 = vld [vmem:[%s10028_s3 + $0x20] sm:$0xff] }
 0x140   :  { %v1089_v12 = vadd.f32 %v1083_v60, %v985_v42 }
 0x147   :  { %v1127_v26 = vpop.f32.mrf.mxu0  ;;  %v1147_v4 = vpop.f32.mrf.mxu1 }
 0x148   :  { %v1190_v5 = vadd.f32 %v1127_v26, %v1086_v61  ;;  %v1191_v3 = vadd.f32 %v1147_v4, %v1087_v29 }
 0x14a   :  { %v1194_v9 = vmax.f32 %v1190_v5, 0.0  ;;  %v1195_v11 = vmax.f32 %v1191_v3, 0.0 }
 0x14c   :  { %1494 = vrot.lane.b32.xlu2 %v1195_v11, %s7960_s19  ;;  %1391 = vrot.lane.b32.xlu1 %v1195_v11, %s7959_s18 }
 0x14d   :  { %1288 = vrot.lane.b32.xlu0 %v1195_v11, %s7958_s13  ;;  %1221 = vmatpush.msrb.mxu0 %v1194_v9 }
 0x14e   :  { %1241 = vmatpush.msrb.mxu1 %v1195_v11  ;;  %v1167_v15 = vpop.f32.mrf.mxu2  ;;  %v1187_v10 = vpop.f32.mrf.mxu3  ;;  %7638 = vmatmul.msk.f32.vlgmr.msrb.gmra.mxu0 %vm278_vm0, %v247_v41 }
 0x14f   :  { %v1192_v18 = vadd.f32 %v1167_v15, %v1088_v7  ;;  %v1193_v22 = vadd.f32 %v1187_v10, %v1089_v12  ;;  %7639 = vmatmul.msk.f32.vlgmr.msrb.gmra.mxu1 %vm278_vm0, %v247_v41 }
 0x151   :  { %v1196_v23 = vmax.f32 %v1192_v18, 0.0  ;;  %v1197_v39 = vmax.f32 %v1193_v22, 0.0  ;;  %v246_v18 = vld [vmem:[%s10028_s3 + $0x18] sm:$0xff] }
 0x153   :  { %1261 = vmatpush.msrb.mxu2 %v1196_v23  ;;  %1281 = vmatpush.msrb.mxu3 %v1197_v39 }
 0x154   :  { %1492 = vrot.lane.b32.xlu2 %v1194_v9, %s7960_s19  ;;  %1389 = vrot.lane.b32.xlu1 %v1194_v9, %s7959_s18 }
 0x155   :  { %1286 = vrot.lane.b32.xlu0 %v1194_v9, %s7958_s13  ;;  %7640 = vmatmul.msk.f32.vlgmr.msrb.gmra.mxu2 %vm278_vm0, %v247_v41 }
 0x156   :  { %7641 = vmatmul.msk.f32.vlgmr.msrb.gmra.mxu3 %vm278_vm0, %v247_v41 }
 0x15c   :  { %1292 = vrot.lane.b32.xlu2 %v1197_v39, %s7958_s13  ;;  %1290 = vrot.lane.b32.xlu1 %v1196_v23, %s7958_s13 }
 0x15d   :  { %1597 = vrot.lane.b32.xlu0 %v1195_v11, %s7961_s0 }
 0x164   :  { %1393 = vrot.lane.b32.xlu2 %v1196_v23, %s7959_s18  ;;  %1698 = vrot.lane.b32.xlu1 %v1194_v9, %s7962_s20 }
 0x165   :  { %1595 = vrot.lane.b32.xlu0 %v1194_v9, %s7961_s0 }
 0x16c   :  { %1801 = vrot.lane.b32.xlu2 %v1194_v9, %s7963_s21  ;;  %1498 = vrot.lane.b32.xlu1 %v1197_v39, %s7960_s19 }
 0x16d   :  { %1395 = vrot.lane.b32.xlu0 %v1197_v39, %s7959_s18 }
 0x174   :  { %1601 = vrot.lane.b32.xlu2 %v1197_v39, %s7961_s0  ;;  %1599 = vrot.lane.b32.xlu1 %v1196_v23, %s7961_s0 }
 0x175   :  { %1496 = vrot.lane.b32.xlu0 %v1196_v23, %s7960_s19 }
 0x17c   :  { %1702 = vrot.lane.b32.xlu2 %v1196_v23, %s7962_s20  ;;  %1700 = vrot.lane.b32.xlu1 %v1195_v11, %s7962_s20 }
 0x17d   :  { %1904 = vrot.lane.b32.xlu0 %v1194_v9, %s7964_s22 }
 0x184   :  { %1803 = vrot.lane.b32.xlu2 %v1195_v11, %s7963_s21  ;;  %1807 = vrot.lane.b32.xlu1 %v1197_v39, %s7963_s21 }
 0x185   :  { %1704 = vrot.lane.b32.xlu0 %v1197_v39, %s7962_s20 }
 0x18c   :  { %1908 = vrot.lane.b32.xlu2 %v1196_v23, %s7964_s22  ;;  %1910 = vrot.lane.b32.xlu1 %v1197_v39, %s7964_s22 }
 0x18d   :  { %1805 = vrot.lane.b32.xlu0 %v1196_v23, %s7963_s21 }
 0x194   :  { %2011 = vrot.lane.b32.xlu2 %v1196_v23, %s7965_s23  ;;  %2007 = vrot.lane.b32.xlu1 %v1194_v9, %s7965_s23  ;;  %v245_v9 = vld [vmem:[%s10028_s3 + $0x10] sm:$0xff] }
 0x195   :  { %1906 = vrot.lane.b32.xlu0 %v1195_v11, %s7964_s22 }
 0x19c   :  { %1200 = vperm.xlu2 %7904, %v252_v40   ;;  %2009 = vrot.lane.b32.xlu1 %v1195_v11, %s7965_s23 }
 0x19d   :  { %2013 = vrot.lane.b32.xlu0 %v1197_v39, %s7965_s23 }
 0x1a6   :  { %v8473_v62 = vpop.permute.xlu2 %1494 }
 0x1ae   :  { %v1493_v20 = vpop.permute.xlu2 %1492 }
 0x1af   :  { %v1502_v51 = vsel %vm578_vm11, %v1493_v20, %v8473_v62 }
 0x1b0   :  { %v1505_v57 = vmul.f32 %v8175_v48, %v1502_v51 }
 0x1b6   :  { %v1293_v43 = vpop.permute.xlu2 %1292 }
 0x1be   :  { %v1392_v38 = vpop.permute.xlu1 %1391  ;;  %v1394_v14 = vpop.permute.xlu2 %1393 }
 0x1bf   :  { %v1289_v44 = vpop.permute.xlu0 %1288  ;;  %v1398_v21 = vsel %vm474_vm5, %v1392_v38, %v1394_v14 }
 0x1c0   :  { %v1403_v26 = vmul.f32 %v8126_v28, %v1398_v21 }
 0x1c6   :  { %v1390_v46 = vpop.permute.xlu1 %1389  ;;  %v8494_v56 = vpop.permute.xlu2 %1801 }
 0x1c7   :  { %v1287_v47 = vpop.permute.xlu0 %1286  ;;  %v1399_v55 = vsel %vm474_vm5, %v1390_v46, %v1392_v38 }
 0x1c8   :  { %v1296_v27 = vsel %vm370_vm10, %v1287_v47, %v1289_v44  ;;  %v1297_v49 = vsel %vm370_vm10, %v1293_v43, %v1287_v47 }
 0x1c9   :  { %v1298_v53 = vmul.f32 %v8136_v31, %v1297_v49  ;;  %v1299_v52 = vmul.f32 %v8141_v32, %v1296_v27 }
 0x1cb   :  { %1320 = vmatpush.msra.mxu0 %v1298_v53  ;;  %1340 = vmatpush.msra.mxu1 %v1299_v52 }
 0x1cc   :  { %7642 = vmatmul.msk.f32.vlgmr.msra.gmra.mxu0 %vm278_vm0, %v243_v54  ;;  %7643 = vmatmul.msk.f32.vlgmr.msra.gmra.mxu1 %vm278_vm0, %v243_v54 }
 0x1cd   :  { %1443 = vmatpush.msrb.mxu1 %v1399_v55 }
 0x1ce   :  { %v1291_v19 = vpop.permute.xlu1 %1290  ;;  %v1602_v36 = vpop.permute.xlu2 %1601 }
 0x1cf   :  { %1546 = vmatpush.msra.mxu1 %v1505_v57  ;;  %v1294_v58 = vsel %vm370_vm10, %v1291_v19, %v1293_v43  ;;  %v1295_v61 = vsel %vm370_vm10, %v1289_v44, %v1291_v19  ;;  %v1598_v59 = vpop.permute.xlu0 %1597  ;;  %v248_v19 = vld [vmem:[%s10028_s3 + $0x28] sm:$0xff] }
 0x1d0   :  { %v1300_v60 = vmul.f32 %v8144_v33, %v1295_v61  ;;  %v1301_v29 = vmul.f32 %v8149_v34, %v1294_v58 }
 0x1d2   :  { %1360 = vmatpush.msra.mxu2 %v1300_v60  ;;  %1380 = vmatpush.msra.mxu3 %v1301_v29 }
 0x1d3   :  { %7644 = vmatmul.msk.f32.vlgmr.msra.gmra.mxu2 %vm278_vm0, %v243_v54  ;;  %7645 = vmatmul.msk.f32.vlgmr.msra.gmra.mxu3 %vm278_vm0, %v243_v54 }
 0x1d4   :  { %7647 = vmatmul.msk.f32.vlgmr.msrb.gmra.mxu1 %vm278_vm0, %v244_v30  ;;  %1463 = vmatpush.msrb.mxu2 %v1403_v26 }
 0x1d6   :  { %v8509_v4 = vpop.permute.xlu1 %1698  ;;  %v1703_v22 = vpop.permute.xlu2 %1702 }
 0x1d7   :  { %v1596_v5 = vpop.permute.xlu0 %1595 }
 0x1d8   :  { %v1605_v3 = vsel %vm682_vm1, %v1596_v5, %v1598_v59  ;;  %v1606_v41 = vsel %vm682_vm1, %v1602_v36, %v1596_v5 }
 0x1d9   :  { %v1608_v37 = vmul.f32 %v8141_v32, %v1605_v3  ;;  %v1607_v23 = vmul.f32 %v8282_v35, %v1606_v41 }
 0x1db   :  { %1649 = vmatpush.msrb.mxu1 %v1608_v37  ;;  %7648 = vmatmul.msk.f32.vlgmr.msrb.gmra.mxu2 %vm278_vm0, %v244_v30 }
 0x1dc   :  { %7651 = vmatmul.msk.f32.vlgmr.msra.gmra.mxu1 %vm278_vm0, %v245_v9 }
 0x1de   :  { %v1499_v11 = vpop.permute.xlu1 %1498  ;;  %v1804_v49 = vpop.permute.xlu2 %1803 }
 0x1df   :  { %v1503_v6 = vsel %vm578_vm11, %v1499_v11, %v1493_v20  ;;  %v1396_v42 = vpop.permute.xlu0 %1395  ;;  %v1811_v54 = vsel %vm890_vm2, %v8494_v56, %v1804_v49 }
 0x1e0   :  { %v1400_v7 = vsel %vm474_vm5, %v1396_v42, %v1390_v46  ;;  %v1397_v12 = vsel %vm474_vm5, %v1394_v14, %v1396_v42  ;;  %v1504_v15 = vmul.f32 %v8233_v0, %v1503_v6  ;;  %v1813_v21 = vmul.f32 %v8282_v35, %v1811_v54  ;;  %v249_v42 = vld [vmem:[%s10028_s3 + $0x30] sm:$0xff]  ;;  %v1223_v54 = vpop.f32.mrf.mxu0 }
 0x1e1   :  { %v1401_v10 = vmul.f32 %v8186_v50, %v1400_v7  ;;  %1483 = vmatpush.msrb.mxu3 %v1397_v12 }
 0x1e2   :  { %7649 = vmatmul.msk.f32.vlgmr.msrb.gmra.mxu3 %vm278_vm0, %v244_v30 }
 0x1e3   :  { %1423 = vmatpush.msrb.mxu0 %v1401_v10 }
 0x1e4   :  { %7646 = vmatmul.msk.f32.vlgmr.msrb.gmra.mxu0 %vm278_vm0, %v244_v30  ;;  %7655 = vmatmul.msk.f32.vlgmr.msrb.gmra.mxu1 %vm278_vm0, %v246_v18 }
 0x1e5   :  { %1526 = vmatpush.msra.mxu0 %v1504_v15 }
 0x1e6   :  { %v1600_v39 = vpop.permute.xlu1 %1599  ;;  %v1909_v7 = vpop.permute.xlu2 %1908 }
 0x1e7   :  { %1629 = vmatpush.msrb.mxu0 %v1607_v23  ;;  %v1603_v40 = vsel %vm682_vm1, %v1600_v39, %v1602_v36  ;;  %v1604_v20 = vsel %vm682_vm1, %v1598_v59, %v1600_v39  ;;  %v1497_v43 = vpop.permute.xlu0 %1496  ;;  %v250_v23 = vld [vmem:[%s10028_s3 + $0x38] sm:$0xff] }
 0x1e8   :  { %v1500_v38 = vsel %vm578_vm11, %v1497_v43, %v1499_v11  ;;  %v1501_v44 = vsel %vm578_vm11, %v8473_v62, %v1497_v43  ;;  %v1609_v14 = vmul.f32 %v8264_v17, %v1604_v20  ;;  %v1610_v27 = vmul.f32 %v8149_v34, %v1603_v40 }
 0x1e9   :  { %v1506_v46 = vmul.f32 %v8230_v63, %v1501_v44  ;;  %v1507_v47 = vmul.f32 %v8238_v1, %v1500_v38 }
 0x1eb   :  { %1566 = vmatpush.msra.mxu2 %v1506_v46  ;;  %1586 = vmatpush.msra.mxu3 %v1507_v47 }
 0x1ec   :  { %7650 = vmatmul.msk.f32.vlgmr.msra.gmra.mxu0 %vm278_vm0, %v245_v9  ;;  %7652 = vmatmul.msk.f32.vlgmr.msra.gmra.mxu2 %vm278_vm0, %v245_v9 }
 0x1ed   :  { %7653 = vmatmul.msk.f32.vlgmr.msra.gmra.mxu3 %vm278_vm0, %v245_v9  ;;  %1669 = vmatpush.msrb.mxu2 %v1609_v14  ;;  %v10098_v14 = vld [vmem:[#allocation7_spill] sm:$0xff] }
 0x1ee   :  { %1689 = vmatpush.msrb.mxu3 %v1610_v27  ;;  %v1701_v62 = vpop.permute.xlu1 %1700  ;;  %v2012_v39 = vpop.permute.xlu2 %2011 }
 0x1ef   :  { %v1707_v51 = vsel %vm786_vm3, %v1701_v62, %v1703_v22  ;;  %v1708_v53 = vsel %vm786_vm3, %v8509_v4, %v1701_v62  ;;  %v1905_v52 = vpop.permute.xlu0 %1904  ;;  %v10099_v62 = vld [vmem:[#allocation6_spill] sm:$0xff] }
 0x1f0   :  { %v1710_v57 = vmul.f32 %v8307_v13, %v1708_v53  ;;  %v1711_v55 = vmul.f32 %v8175_v48, %v1707_v51  ;;  %v251_v53 = vld [vmem:[%s10028_s3 + $0x40] sm:$0xff] }
 0x1f2   :  { %1732 = vmatpush.msra.mxu0 %v1710_v57  ;;  %1752 = vmatpush.msra.mxu1 %v1711_v55  ;;  %v1263_v55 = vpop.f32.mrf.mxu2 }
 0x1f3   :  { %7659 = vmatmul.msk.f32.vlgmr.msra.gmra.mxu1 %vm278_vm0, %v248_v19 }
 0x1f4   :  { %7654 = vmatmul.msk.f32.vlgmr.msrb.gmra.mxu0 %vm278_vm0, %v246_v18  ;;  %7656 = vmatmul.msk.f32.vlgmr.msrb.gmra.mxu2 %vm278_vm0, %v246_v18 }
 0x1f5   :  { %7657 = vmatmul.msk.f32.vlgmr.msrb.gmra.mxu3 %vm278_vm0, %v246_v18  ;;  %1835 = vmatpush.msrb.mxu0 %v1813_v21 }
 0x1f6   :  { %v1808_v58 = vpop.permute.xlu1 %1807 }
 0x1f7   :  { %v1812_v61 = vsel %vm890_vm2, %v1808_v58, %v8494_v56  ;;  %v1705_v59 = vpop.permute.xlu0 %1704 }
 0x1f8   :  { %v1706_v60 = vsel %vm786_vm3, %v1703_v22, %v1705_v59  ;;  %v1709_v29 = vsel %vm786_vm3, %v1705_v59, %v8509_v4  ;;  %v1816_v5 = vmul.f32 %v8351_v2, %v1812_v61 }
 0x1f9   :  { %v1712_v30 = vmul.f32 %v8302_v45, %v1706_v60  ;;  %v1713_v26 = vmul.f32 %v8238_v1, %v1709_v29 }
 0x1fb   :  { %1772 = vmatpush.msra.mxu2 %v1712_v30  ;;  %1792 = vmatpush.msra.mxu3 %v1713_v26 }
 0x1fc   :  { %7658 = vmatmul.msk.f32.vlgmr.msra.gmra.mxu0 %vm278_vm0, %v248_v19  ;;  %7660 = vmatmul.msk.f32.vlgmr.msra.gmra.mxu2 %vm278_vm0, %v248_v19 }
 0x1fd   :  { %7661 = vmatmul.msk.f32.vlgmr.msra.gmra.mxu3 %vm278_vm0, %v248_v19  ;;  %v1283_v19 = vpop.f32.mrf.mxu3 }
 0x1fe   :  { %1895 = vmatpush.msrb.mxu3 %v1816_v5  ;;  %v1911_v56 = vpop.permute.xlu1 %1910 }
 0x1ff   :  { %v1915_v3 = vsel %vm994_vm7, %v1911_v56, %v1905_v52  ;;  %v1806_v4 = vpop.permute.xlu0 %1805  ;;  %v1912_v12 = vsel %vm994_vm7, %v1909_v7, %v1911_v56 }
 0x200   :  { %v1919_v36 = vmul.f32 %v8373_v16, %v1915_v3  ;;  %v1809_v37 = vsel %vm890_vm2, %v1806_v4, %v1808_v58  ;;  %v1810_v9 = vsel %vm890_vm2, %v1804_v49, %v1806_v4 }
 0x201   :  { %v1814_v11 = vmul.f32 %v8348_v25, %v1810_v9  ;;  %v1815_v6 = vmul.f32 %v8264_v17, %v1809_v37 }
 0x202   :  { %1998 = vmatpush.msra.mxu3 %v1919_v36 }
 0x203   :  { %1855 = vmatpush.msrb.mxu1 %v1814_v11  ;;  %1875 = vmatpush.msrb.mxu2 %v1815_v6 }
 0x204   :  { %7662 = vmatmul.msk.f32.vlgmr.msrb.gmra.mxu0 %vm278_vm0, %v249_v42  ;;  %7663 = vmatmul.msk.f32.vlgmr.msrb.gmra.mxu1 %vm278_vm0, %v249_v42 }
 0x205   :  { %7664 = vmatmul.msk.f32.vlgmr.msrb.gmra.mxu2 %vm278_vm0, %v249_v42  ;;  %7665 = vmatmul.msk.f32.vlgmr.msrb.gmra.mxu3 %vm278_vm0, %v249_v42  ;;  %v1201_v42 = vpop.permute.xlu2 %1200 }
 0x206   :  { %1978 = vmatpush.msra.mxu2 %v1912_v12  ;;  %v2008_v41 = vpop.permute.xlu1 %2007 }
 0x207   :  { %v1907_v15 = vpop.permute.xlu0 %1906 }
 0x208   :  { %v1913_v10 = vsel %vm994_vm7, %v1907_v15, %v1909_v7  ;;  %v1914_v18 = vsel %vm994_vm7, %v1905_v52, %v1907_v15  ;;  %v1243_v52 = vpop.f32.mrf.mxu1 }
 0x209   :  { %v1917_v22 = vmul.f32 %v8388_v24, %v1913_v10  ;;  %1938 = vmatpush.msra.mxu0 %v1914_v18  ;;  %v1224_v10 = vadd.f32 %v1223_v54, %v1201_v42  ;;  %v1244_v18 = vadd.f32 %v1243_v52, %v1201_v42 }
 0x20b   :  { %1958 = vmatpush.msra.mxu1 %v1917_v22 }
 0x20c   :  { %7666 = vmatmul.msk.f32.vlgmr.msra.gmra.mxu0 %vm278_vm0, %v250_v23  ;;  %7667 = vmatmul.msk.f32.vlgmr.msra.gmra.mxu1 %vm278_vm0, %v250_v23 }
 0x20d   :  { %7668 = vmatmul.msk.f32.vlgmr.msra.gmra.mxu2 %vm278_vm0, %v250_v23  ;;  %7669 = vmatmul.msk.f32.vlgmr.msra.gmra.mxu3 %vm278_vm0, %v250_v23 }
 0x20e   :  { %v2010_v40 = vpop.permute.xlu1 %2009 }
 0x20f   :  { %v2016_v20 = vsel %vm10043_vm13, %v2010_v40, %v2012_v39  ;;  %v2017_v43 = vsel %vm10043_vm13, %v2008_v41, %v2010_v40  ;;  %v2014_v38 = vpop.permute.xlu0 %2013 }
 0x210   :  { %v2019_v44 = vmul.f32 %v8307_v13, %v2017_v43  ;;  %v2020_v46 = vmul.f32 %v10098_v14, %v2016_v20  ;;  %v2015_v47 = vsel %vm10043_vm13, %v2012_v39, %v2014_v38  ;;  %v2018_v27 = vsel %vm10043_vm13, %v2014_v38, %v2008_v41 }
 0x211   :  { %v2021_v49 = vmul.f32 %v8302_v45, %v2015_v47  ;;  %v2022_v51 = vmul.f32 %v10099_v62, %v2018_v27  ;;  %v1284_v47 = vadd.f32 %v1283_v19, %v1201_v42 }
 0x212   :  { %2041 = vmatpush.msrb.mxu0 %v2019_v44  ;;  %2061 = vmatpush.msrb.mxu1 %v2020_v46  ;;  %v1264_v46 = vadd.f32 %v1263_v55, %v1201_v42 }
 0x213   :  { %2081 = vmatpush.msrb.mxu2 %v2021_v49  ;;  %2101 = vmatpush.msrb.mxu3 %v2022_v51 }
 0x214   :  { %7670 = vmatmul.msk.f32.vlgmr.msrb.gmra.mxu0 %vm278_vm0, %v251_v53  ;;  %7671 = vmatmul.msk.f32.vlgmr.msrb.gmra.mxu1 %vm278_vm0, %v251_v53 }
 0x215   :  { %7672 = vmatmul.msk.f32.vlgmr.msrb.gmra.mxu2 %vm278_vm0, %v251_v53  ;;  %7673 = vmatmul.msk.f32.vlgmr.msrb.gmra.mxu3 %vm278_vm0, %v251_v53 }
 0x249   :  { %v1342_v57 = vpop.f32.mrf.mxu1  ;;  %v1322_v21 = vpop.f32.mrf.mxu0 }
 0x24a   :  { %v1385_v22 = vadd.f32 %v1322_v21, %v1224_v10  ;;  %v1386_v23 = vadd.f32 %v1342_v57, %v1244_v18 }
 0x251   :  { %v1445_v58 = vpop.f32.mrf.mxu1 }
 0x252   :  { %v1489_v39 = vadd.f32 %v1445_v58, %v1386_v23 }
 0x256   :  { %v1362_v61 = vpop.f32.mrf.mxu2  ;;  %v1382_v59 = vpop.f32.mrf.mxu3 }
 0x257   :  { %v1387_v62 = vadd.f32 %v1362_v61, %v1264_v46  ;;  %v1388_v14 = vadd.f32 %v1382_v59, %v1284_v47 }
 0x259   :  { %v1548_v29 = vpop.f32.mrf.mxu1 }
 0x25a   :  { %v1592_v20 = vadd.f32 %v1548_v29, %v1489_v39 }
 0x25e   :  { %v1465_v30 = vpop.f32.mrf.mxu2 }
 0x25f   :  { %v1490_v54 = vadd.f32 %v1465_v30, %v1387_v62 }
 0x261   :  { %v1425_v60 = vpop.f32.mrf.mxu0  ;;  %v1651_v4 = vpop.f32.mrf.mxu1 }
 0x262   :  { %v1488_v40 = vadd.f32 %v1425_v60, %v1385_v22  ;;  %v1695_v51 = vadd.f32 %v1651_v4, %v1592_v20 }
 0x265   :  { %v1485_v26 = vpop.f32.mrf.mxu3 }
 0x266   :  { %v1491_v52 = vadd.f32 %v1485_v26, %v1388_v14 }
 0x269   :  { %v1528_v5 = vpop.f32.mrf.mxu0 }
 0x26a   :  { %v1591_v43 = vadd.f32 %v1528_v5, %v1488_v40 }
 0x26f   :  { %v1568_v56 = vpop.f32.mrf.mxu2 }
 0x270   :  { %v1588_v3 = vpop.f32.mrf.mxu3  ;;  %v1754_v11 = vpop.f32.mrf.mxu1  ;;  %v1593_v58 = vadd.f32 %v1568_v56, %v1490_v54 }
 0x271   :  { %v1631_v36 = vpop.f32.mrf.mxu0  ;;  %v1798_v24 = vadd.f32 %v1754_v11, %v1695_v51  ;;  %v1594_v60 = vadd.f32 %v1588_v3, %v1491_v52 }
 0x272   :  { %v1694_v53 = vadd.f32 %v1631_v36, %v1591_v43 }
 0x277   :  { %v1671_v37 = vpop.f32.mrf.mxu2 }
 0x278   :  { %v1691_v9 = vpop.f32.mrf.mxu3  ;;  %v1696_v55 = vadd.f32 %v1671_v37, %v1593_v58 }
 0x279   :  { %v1734_v6 = vpop.f32.mrf.mxu0  ;;  %v1697_v19 = vadd.f32 %v1691_v9, %v1594_v60 }
 0x27a   :  { %v1797_v25 = vadd.f32 %v1734_v6, %v1694_v53 }
 0x27f   :  { %v1774_v7 = vpop.f32.mrf.mxu2 }
 0x280   :  { %v1794_v12 = vpop.f32.mrf.mxu3  ;;  %v1799_v61 = vadd.f32 %v1774_v7, %v1696_v55 }
 0x281   :  { %v1837_v41 = vpop.f32.mrf.mxu0  ;;  %v1857_v15 = vpop.f32.mrf.mxu1  ;;  %v1800_v59 = vadd.f32 %v1794_v12, %v1697_v19 }
 0x282   :  { %v1900_v21 = vadd.f32 %v1837_v41, %v1797_v25  ;;  %v1901_v57 = vadd.f32 %v1857_v15, %v1798_v24 }
 0x288   :  { %v1877_v38 = vpop.f32.mrf.mxu2  ;;  %v1897_v44 = vpop.f32.mrf.mxu3 }
 0x289   :  { %v1940_v27 = vpop.f32.mrf.mxu0  ;;  %v1960_v49 = vpop.f32.mrf.mxu1  ;;  %v1902_v62 = vadd.f32 %v1877_v38, %v1799_v61  ;;  %v1903_v14 = vadd.f32 %v1897_v44, %v1800_v59 }
 0x28a   :  { %v2003_v29 = vadd.f32 %v1940_v27, %v1900_v21  ;;  %v2004_v5 = vadd.f32 %v1960_v49, %v1901_v57 }
 0x290   :  { %v1980_v10 = vpop.f32.mrf.mxu2  ;;  %v2000_v18 = vpop.f32.mrf.mxu3 }
 0x291   :  { %v2043_v42 = vpop.f32.mrf.mxu0  ;;  %v2063_v22 = vpop.f32.mrf.mxu1  ;;  %v2005_v25 = vadd.f32 %v1980_v10, %v1902_v62  ;;  %v2006_v24 = vadd.f32 %v2000_v18, %v1903_v14  ;;  %v257_v14 = vld [vmem:[%s10030_s5 + $0x20] sm:$0xff] }
 0x292   :  { %v2106_v4 = vadd.f32 %v2043_v42, %v2003_v29  ;;  %v2107_v36 = vadd.f32 %v2063_v22, %v2004_v5 }
 0x294   :  { %v7674_v11 = vmul.f32 -1.442695, %v2106_v4  ;;  %v7675_v6 = vmul.f32 -1.442695, %v2107_v36 }
 0x296   :  { %7906 = vpow2.f32 %v7674_v11 }
 0x297   :  { %7908 = vpow2.f32 %v7675_v6 }
 0x298   :  { %v2083_v30 = vpop.f32.mrf.mxu2  ;;  %v2103_v26 = vpop.f32.mrf.mxu3 }
 0x299   :  { %v2108_v56 = vadd.f32 %v2083_v30, %v2005_v25  ;;  %v2109_v3 = vadd.f32 %v2103_v26, %v2006_v24 }
 0x29b   :  { %v7676_v37 = vmul.f32 -1.442695, %v2108_v56  ;;  %v7677_v9 = vmul.f32 -1.442695, %v2109_v3 }
 0x29c   :  { %v7907_v41 = vpop.eup %7906 }
 0x29d   :  { %v7909_v15 = vpop.eup %7908  ;;  %v2122_v23 = vadd.f32 1.0, %v7907_v41  ;;  %7910 = vpow2.f32 %v7676_v37 }
 0x29e   :  { %v2123_v7 = vadd.f32 1.0, %v7909_v15  ;;  %7912 = vpow2.f32 %v7677_v9 }
 0x29f   :  { %7914 = vrcp.f32 %v2122_v23  ;;  %v2135_v27 = vand.u32 2147483647, %v2122_v23  ;;  %v2137_v49 = vand.u32 2147483648, %v2122_v23  ;;  %vm2131_vm4 = vweird.f32 %v2122_v23 }
 0x2a0   :  { %7916 = vrcp.f32 %v2123_v7  ;;  %v2150_v54 = vand.u32 2147483647, %v2123_v7  ;;  %v2152_v52 = vand.u32 2147483648, %v2123_v7  ;;  %vm2146_vm14 = vweird.f32 %v2123_v7 }
 0x2a1   :  { %v2138_v60 = vor.u32 1.1754944e-38, %v2137_v49  ;;  %vm2136_vm9 = vcmp.eq.f32.partialorder %v2135_v27, 8.507059e+37 }
 0x2a2   :  { %vm2151_vm13 = vcmp.eq.f32.partialorder %v2150_v54, 8.507059e+37  ;;  %v2153_v55 = vor.u32 1.1754944e-38, %v2152_v52 }
 0x2a3   :  { %v7911_v12 = vpop.eup %7910 }
 0x2a4   :  { %v7913_v39 = vpop.eup %7912  ;;  %v2124_v40 = vadd.f32 1.0, %v7911_v12 }
 0x2a5   :  { %v7915_v20 = vpop.eup %7914  ;;  %v8633_v43 = vadd.f32 1.0, %v7913_v39 }
 0x2a6   :  { %v7917_v38 = vpop.eup %7916  ;;  %v2127_v44 = vmul.f32 %v7915_v20, %v2122_v23  ;;  %7918 = vrcp.f32 %v2124_v40  ;;  %vm2132_vm12 = vweird.f32 %v7915_v20  ;;  %v2167_v61 = vand.u32 2147483648, %v2124_v40  ;;  %v262_v23 = vld [vmem:[%s10031_s6] sm:$0xff] }
 0x2a7   :  { %v2142_v46 = vmul.f32 %v7917_v38, %v2123_v7  ;;  %7920 = vrcp.f32 %v8633_v43  ;;  %vm2147_vm6 = vweird.f32 %v7917_v38  ;;  %vm2133_vm15 = vmor %vm2131_vm4, %vm2132_vm12  ;;  %v2165_v11 = vand.u32 2147483647, %v2124_v40 }
 0x2a8   :  { %v2128_v47 = vsub.f32 1.0, %v2127_v44  ;;  %vm2148_vm8 = vmor %vm2146_vm14, %vm2147_vm6  ;;  %vm2161_vm6 = vweird.f32 %v2124_v40  ;;  %v2182_v62 = vand.u32 2147483648, %v8633_v43  ;;  %v2180_v30 = vand.u32 2147483647, %v8633_v43 }
 0x2a9   :  { %v2143_v51 = vsub.f32 1.0, %v2142_v46  ;;  %v2168_v26 = vor.u32 1.1754944e-38, %v2167_v61  ;;  %vm2176_vm14 = vweird.f32 %v8633_v43 }
 0x2aa   :  { %v2129_v53 = vmul.f32 %v7915_v20, %v2128_v47  ;;  %v2183_v9 = vor.u32 1.1754944e-38, %v2182_v62 }
 0x2ab   :  { %v2144_v21 = vmul.f32 %v7917_v38, %v2143_v51 }
 0x2ac   :  { %v7919_v57 = vpop.eup %7918  ;;  %v2130_v58 = vadd.f32 %v7915_v20, %v2129_v53 }
 0x2ad   :  { %v2145_v29 = vadd.f32 %v7917_v38, %v2144_v21  ;;  %v2157_v5 = vmul.f32 %v7919_v57, %v2124_v40  ;;  %v7921_v10 = vpop.eup %7920  ;;  %vm2162_vm12 = vweird.f32 %v7919_v57 }
 0x2ae   :  { %v2134_v18 = vsel %vm2133_vm15, %v7915_v20, %v2130_v58  ;;  %v2172_v4 = vmul.f32 %v7921_v10, %v8633_v43  ;;  %vm2163_vm4 = vmor %vm2161_vm6, %vm2162_vm12  ;;  %vm2166_vm15 = vcmp.eq.f32.partialorder %v2165_v11, 8.507059e+37  ;;  %v254_v11 = vld [vmem:[%s10030_s5 + $0x8] sm:$0xff]  ;;  %vm10106_vm12 = vcmp.lt.s32.totalorder %v8073_v8, 111 }
 0x2af   :  { %v8636_v19 = vsel %vm2136_vm9, %v2138_v60, %v2134_v18  ;;  %v2149_v42 = vsel %vm2148_vm8, %v7917_v38, %v2145_v29  ;;  %v2158_v22 = vsub.f32 1.0, %v2157_v5  ;;  %vm2181_vm8 = vcmp.eq.f32.partialorder %v2180_v30, 8.507059e+37  ;;  %v253_v29 = vld [vmem:[%s10030_s5] sm:$0xff]  ;;  %vm10107_vm6 = vmmov %vm10106_vm12 }
 0x2b0   :  { %10100 = vst [vmem:[#allocation8_spill] sm:$0xff] %v8636_v19  ;;  %v8639_v36 = vsel %vm2151_vm13, %v2153_v55, %v2149_v42  ;;  %2209 = vmatpush.msra.mxu0 %v8636_v19  ;;  %v2173_v6 = vsub.f32 1.0, %v2172_v4  ;;  %vm2177_vm13 = vweird.f32 %v7921_v10 }
 0x2b1   :  { %10101 = vst [vmem:[#allocation9_spill] sm:$0xff] %v8639_v36  ;;  %v2159_v59 = vmul.f32 %v7919_v57, %v2158_v22  ;;  %2482 = vrot.lane.b32.xlu2 %v8639_v36, %s7960_s19  ;;  %2379 = vrot.lane.b32.xlu1 %v8639_v36, %s7959_s18  ;;  %vm2178_vm9 = vmor %vm2176_vm14, %vm2177_vm13 }
 0x2b2   :  { %2276 = vrot.lane.b32.xlu0 %v8639_v36, %s7958_s13  ;;  %2229 = vmatpush.msra.mxu1 %v8639_v36  ;;  %v2174_v24 = vmul.f32 %v7921_v10, %v2173_v6  ;;  %vm10108_vm13 = vmmov %vm10107_vm6 }
 0x2b3   :  { %v2160_v25 = vadd.f32 %v7919_v57, %v2159_v59  ;;  %7678 = vmatmul.msk.f32.vlgmr.msra.gmra.mxu0 %vm278_vm0, %v257_v14  ;;  %7679 = vmatmul.msk.f32.vlgmr.msra.gmra.mxu1 %vm278_vm0, %v257_v14 }
 0x2b4   :  { %v2175_v3 = vadd.f32 %v7921_v10, %v2174_v24 }
 0x2b5   :  { %v2164_v56 = vsel %vm2163_vm4, %v7919_v57, %v2160_v25  ;;  %vm10109_vm4 = vmmov %vm10107_vm6 }
 0x2b6   :  { %v8658_v37 = vsel %vm2166_vm15, %v2168_v26, %v2164_v56  ;;  %v2179_v41 = vsel %vm2178_vm9, %v7921_v10, %v2175_v3  ;;  %v255_v3 = vld [vmem:[%s10030_s5 + $0x10] sm:$0xff]  ;;  %vm10113_vm15 = vmmov %vm10109_vm4 }
 0x2b7   :  { %10102 = vst [vmem:[#allocation10_spill] sm:$0xff] %v8658_v37  ;;  %2249 = vmatpush.msra.mxu2 %v8658_v37  ;;  %v8661_v15 = vsel %vm2181_vm8, %v2183_v9, %v2179_v41  ;;  %vm10114_vm14 = vmmov %vm10109_vm4 }
 0x2b8   :  { %10103 = vst [vmem:[#allocation11_spill] sm:$0xff] %v8661_v15  ;;  %7680 = vmatmul.msk.f32.vlgmr.msra.gmra.mxu2 %vm278_vm0, %v257_v14  ;;  %2269 = vmatpush.msra.mxu3 %v8661_v15  ;;  %vm10116_vm9 = vmmov %vm10109_vm4 }
 0x2b9   :  { %2480 = vrot.lane.b32.xlu2 %v8636_v19, %s7960_s19  ;;  %2377 = vrot.lane.b32.xlu1 %v8636_v19, %s7959_s18  ;;  %vm10117_vm8 = vmmov %vm10109_vm4 }
 0x2ba   :  { %2585 = vrot.lane.b32.xlu0 %v8639_v36, %s7961_s0  ;;  %7681 = vmatmul.msk.f32.vlgmr.msra.gmra.mxu3 %vm278_vm0, %v257_v14 }
 0x2c1   :  { %2280 = vrot.lane.b32.xlu2 %v8661_v15, %s7958_s13  ;;  %2278 = vrot.lane.b32.xlu1 %v8658_v37, %s7958_s13 }
 0x2c2   :  { %2274 = vrot.lane.b32.xlu0 %v8636_v19, %s7958_s13 }
 0x2c9   :  { %2381 = vrot.lane.b32.xlu2 %v8658_v37, %s7959_s18  ;;  %2686 = vrot.lane.b32.xlu1 %v8636_v19, %s7962_s20 }
 0x2ca   :  { %2583 = vrot.lane.b32.xlu0 %v8636_v19, %s7961_s0 }
 0x2d1   :  { %2789 = vrot.lane.b32.xlu2 %v8636_v19, %s7963_s21  ;;  %2486 = vrot.lane.b32.xlu1 %v8661_v15, %s7960_s19 }
 0x2d2   :  { %2383 = vrot.lane.b32.xlu0 %v8661_v15, %s7959_s18 }
 0x2d9   :  { %2589 = vrot.lane.b32.xlu2 %v8661_v15, %s7961_s0  ;;  %2587 = vrot.lane.b32.xlu1 %v8658_v37, %s7961_s0 }
 0x2da   :  { %2484 = vrot.lane.b32.xlu0 %v8658_v37, %s7960_s19 }
 0x2e1   :  { %2690 = vrot.lane.b32.xlu2 %v8658_v37, %s7962_s20  ;;  %2688 = vrot.lane.b32.xlu1 %v8639_v36, %s7962_s20 }
 0x2e2   :  { %2892 = vrot.lane.b32.xlu0 %v8636_v19, %s7964_s22 }
 0x2e9   :  { %2791 = vrot.lane.b32.xlu2 %v8639_v36, %s7963_s21  ;;  %2795 = vrot.lane.b32.xlu1 %v8661_v15, %s7963_s21 }
 0x2ea   :  { %2692 = vrot.lane.b32.xlu0 %v8661_v15, %s7962_s20 }
 0x2f1   :  { %2896 = vrot.lane.b32.xlu2 %v8658_v37, %s7964_s22  ;;  %2898 = vrot.lane.b32.xlu1 %v8661_v15, %s7964_s22 }
 0x2f2   :  { %2793 = vrot.lane.b32.xlu0 %v8658_v37, %s7963_s21 }
 0x2f9   :  { %2999 = vrot.lane.b32.xlu2 %v8658_v37, %s7965_s23  ;;  %2995 = vrot.lane.b32.xlu1 %v8636_v19, %s7965_s23 }
 0x2fa   :  { %2894 = vrot.lane.b32.xlu0 %v8639_v36, %s7964_s22 }
 0x301   :  { %2188 = vperm.xlu2 %7904, %v262_v23   ;;  %2997 = vrot.lane.b32.xlu1 %v8639_v36, %s7965_s23 }
 0x302   :  { %3001 = vrot.lane.b32.xlu0 %v8661_v15, %s7965_s23 }
 0x30b   :  { %v8727_v7 = vpop.permute.xlu2 %2482 }
 0x313   :  { %v2481_v12 = vpop.permute.xlu2 %2480 }
 0x314   :  { %v2490_v5 = vsel %vm578_vm11, %v2481_v12, %v8727_v7 }
 0x315   :  { %v2493_v18 = vmul.f32 %v8175_v48, %v2490_v5 }
 0x31b   :  { %v2281_v39 = vpop.permute.xlu2 %2280 }
 0x323   :  { %v2380_v40 = vpop.permute.xlu1 %2379  ;;  %v2382_v43 = vpop.permute.xlu2 %2381 }
 0x324   :  { %v2277_v20 = vpop.permute.xlu0 %2276  ;;  %v2386_v60 = vsel %vm474_vm5, %v2380_v40, %v2382_v43 }
 0x325   :  { %v2391_v10 = vmul.f32 %v8126_v28, %v2386_v60  ;;  %v258_v60 = vld [vmem:[%s10030_s5 + $0x28] sm:$0xff] }
 0x32b   :  { %v2378_v44 = vpop.permute.xlu1 %2377  ;;  %v8729_v27 = vpop.permute.xlu2 %2789 }
 0x32c   :  { %v2586_v38 = vpop.permute.xlu0 %2585  ;;  %v2387_v55 = vsel %vm474_vm5, %v2378_v44, %v2380_v40 }
 0x333   :  { %v2279_v46 = vpop.permute.xlu1 %2278  ;;  %v2590_v61 = vpop.permute.xlu2 %2589 }
 0x334   :  { %v2275_v47 = vpop.permute.xlu0 %2274  ;;  %v2282_v49 = vsel %vm370_vm10, %v2279_v46, %v2281_v39  ;;  %v2283_v51 = vsel %vm370_vm10, %v2277_v20, %v2279_v46 }
 0x335   :  { %v2284_v53 = vsel %vm370_vm10, %v2275_v47, %v2277_v20  ;;  %v2285_v54 = vsel %vm370_vm10, %v2281_v39, %v2275_v47  ;;  %v2288_v52 = vmul.f32 %v8144_v33, %v2283_v51  ;;  %v2289_v21 = vmul.f32 %v8149_v34, %v2282_v49  ;;  %v256_v51 = vld [vmem:[%s10030_s5 + $0x18] sm:$0xff] }
 0x336   :  { %v2286_v57 = vmul.f32 %v8136_v31, %v2285_v54  ;;  %v2287_v58 = vmul.f32 %v8141_v32, %v2284_v53 }
 0x337   :  { %2348 = vmatpush.msrb.mxu2 %v2288_v52  ;;  %2368 = vmatpush.msrb.mxu3 %v2289_v21 }
 0x338   :  { %2308 = vmatpush.msrb.mxu0 %v2286_v57  ;;  %2328 = vmatpush.msrb.mxu1 %v2287_v58 }
 0x339   :  { %7682 = vmatmul.msk.f32.vlgmr.msrb.gmra.mxu0 %vm278_vm0, %v253_v29  ;;  %7683 = vmatmul.msk.f32.vlgmr.msrb.gmra.mxu1 %vm278_vm0, %v253_v29 }
 0x33a   :  { %7684 = vmatmul.msk.f32.vlgmr.msrb.gmra.mxu2 %vm278_vm0, %v253_v29  ;;  %7685 = vmatmul.msk.f32.vlgmr.msrb.gmra.mxu3 %vm278_vm0, %v253_v29 }
 0x33b   :  { %2431 = vmatpush.msra.mxu1 %v2387_v55  ;;  %2451 = vmatpush.msra.mxu2 %v2391_v10  ;;  %v8759_v42 = vpop.permute.xlu1 %2686  ;;  %v2691_v9 = vpop.permute.xlu2 %2690 }
 0x33c   :  { %v2584_v22 = vpop.permute.xlu0 %2583 }
 0x33d   :  { %2534 = vmatpush.msrb.mxu1 %v2493_v18  ;;  %v2593_v4 = vsel %vm682_vm1, %v2584_v22, %v2586_v38  ;;  %v2594_v30 = vsel %vm682_vm1, %v2590_v61, %v2584_v22 }
 0x33e   :  { %v2596_v59 = vmul.f32 %v8141_v32, %v2593_v4  ;;  %v2595_v41 = vmul.f32 %v8282_v35, %v2594_v30 }
 0x341   :  { %7687 = vmatmul.msk.f32.vlgmr.msra.gmra.mxu1 %vm278_vm0, %v254_v11 }
 0x342   :  { %7688 = vmatmul.msk.f32.vlgmr.msra.gmra.mxu2 %vm278_vm0, %v254_v11  ;;  %2637 = vmatpush.msra.mxu1 %v2596_v59 }
 0x343   :  { %v2487_v6 = vpop.permute.xlu1 %2486 }
 0x344   :  { %v2384_v62 = vpop.permute.xlu0 %2383  ;;  %v2491_v14 = vsel %vm578_vm11, %v2487_v6, %v2481_v12 }
 0x345   :  { %v2388_v25 = vsel %vm474_vm5, %v2384_v62, %v2378_v44  ;;  %v2385_v24 = vsel %vm474_vm5, %v2382_v43, %v2384_v62  ;;  %v2492_v26 = vmul.f32 %v8233_v0, %v2491_v14 }
 0x346   :  { %v2389_v56 = vmul.f32 %v8186_v50, %v2388_v25  ;;  %2471 = vmatpush.msra.mxu3 %v2385_v24  ;;  %v10104_v25 = vld [vmem:[#allocation2_spill] sm:$0xff] }
 0x347   :  { %7689 = vmatmul.msk.f32.vlgmr.msra.gmra.mxu3 %vm278_vm0, %v254_v11 }
 0x348   :  { %2411 = vmatpush.msra.mxu0 %v2389_v56 }
 0x349   :  { %7686 = vmatmul.msk.f32.vlgmr.msra.gmra.mxu0 %vm278_vm0, %v254_v11  ;;  %7691 = vmatmul.msk.f32.vlgmr.msrb.gmra.mxu1 %vm278_vm0, %v255_v3 }
 0x34a   :  { %2514 = vmatpush.msrb.mxu0 %v2492_v26  ;;  %v259_v26 = vld [vmem:[%s10030_s5 + $0x30] sm:$0xff] }
 0x34b   :  { %v2588_v23 = vpop.permute.xlu1 %2587 }
 0x34c   :  { %2617 = vmatpush.msra.mxu0 %v2595_v41  ;;  %v2485_v12 = vpop.permute.xlu0 %2484  ;;  %v2591_v39 = vsel %vm682_vm1, %v2588_v23, %v2590_v61  ;;  %v2592_v40 = vsel %vm682_vm1, %v2586_v38, %v2588_v23 }
 0x34d   :  { %v2488_v20 = vsel %vm578_vm11, %v2485_v12, %v2487_v6  ;;  %v2489_v43 = vsel %vm578_vm11, %v8727_v7, %v2485_v12  ;;  %v2597_v47 = vmul.f32 %v8264_v17, %v2592_v40  ;;  %v2598_v49 = vmul.f32 %v8149_v34, %v2591_v39  ;;  %v2792_v7 = vpop.permute.xlu2 %2791  ;;  %v10105_v39 = vld [vmem:[#allocation5_spill] sm:$0xff] }
 0x34e   :  { %v2494_v44 = vmul.f32 %v8230_v63, %v2489_v43  ;;  %v2495_v46 = vmul.f32 %v8238_v1, %v2488_v20  ;;  %v2799_v21 = vsel %vm890_vm2, %v8729_v27, %v2792_v7  ;;  %v260_v20 = vld [vmem:[%s10030_s5 + $0x38] sm:$0xff] }
 0x34f   :  { %v2801_v29 = vmul.f32 %v8282_v35, %v2799_v21  ;;  %v10111_v21 = vld [vmem:[#allocation6_spill] sm:$0xff] }
 0x350   :  { %2554 = vmatpush.msrb.mxu2 %v2494_v44  ;;  %2574 = vmatpush.msrb.mxu3 %v2495_v46 }
 0x351   :  { %7690 = vmatmul.msk.f32.vlgmr.msrb.gmra.mxu0 %vm278_vm0, %v255_v3  ;;  %7692 = vmatmul.msk.f32.vlgmr.msrb.gmra.mxu2 %vm278_vm0, %v255_v3 }
 0x352   :  { %7693 = vmatmul.msk.f32.vlgmr.msrb.gmra.mxu3 %vm278_vm0, %v255_v3  ;;  %7695 = vmatmul.msk.f32.vlgmr.msra.gmra.mxu1 %vm278_vm0, %v256_v51 }
 0x353   :  { %2657 = vmatpush.msra.mxu2 %v2597_v47  ;;  %2677 = vmatpush.msra.mxu3 %v2598_v49  ;;  %v2689_v38 = vpop.permute.xlu1 %2688 }
 0x354   :  { %v2893_v53 = vpop.permute.xlu0 %2892  ;;  %v2695_v54 = vsel %vm786_vm3, %v2689_v38, %v2691_v9  ;;  %v2696_v52 = vsel %vm786_vm3, %v8759_v42, %v2689_v38 }
 0x355   :  { %v2698_v57 = vmul.f32 %v8307_v13, %v2696_v52  ;;  %v2699_v58 = vmul.f32 %v8175_v48, %v2695_v54  ;;  %v2897_v56 = vpop.permute.xlu2 %2896 }
 0x357   :  { %2720 = vmatpush.msrb.mxu0 %v2698_v57  ;;  %2740 = vmatpush.msrb.mxu1 %v2699_v58  ;;  %v261_v58 = vld [vmem:[%s10030_s5 + $0x40] sm:$0xff] }
 0x359   :  { %7694 = vmatmul.msk.f32.vlgmr.msra.gmra.mxu0 %vm278_vm0, %v256_v51  ;;  %7696 = vmatmul.msk.f32.vlgmr.msra.gmra.mxu2 %vm278_vm0, %v256_v51 }
 0x35a   :  { %7697 = vmatmul.msk.f32.vlgmr.msra.gmra.mxu3 %vm278_vm0, %v256_v51  ;;  %7699 = vmatmul.msk.f32.vlgmr.msrb.gmra.mxu1 %vm278_vm0, %v258_v60 }
 0x35b   :  { %2823 = vmatpush.msra.mxu0 %v2801_v29  ;;  %v2796_v5 = vpop.permute.xlu1 %2795  ;;  %v2211_v29 = vpop.f32.mrf.mxu0 }
 0x35c   :  { %v2693_v10 = vpop.permute.xlu0 %2692  ;;  %v2800_v18 = vsel %vm890_vm2, %v2796_v5, %v8729_v27 }
 0x35d   :  { %v2694_v55 = vsel %vm786_vm3, %v2691_v9, %v2693_v10  ;;  %v2697_v22 = vsel %vm786_vm3, %v2693_v10, %v8759_v42  ;;  %v2804_v59 = vmul.f32 %v8351_v2, %v2800_v18  ;;  %v3000_v43 = vpop.permute.xlu2 %2999  ;;  %v2251_v10 = vpop.f32.mrf.mxu2 }
 0x35e   :  { %v2700_v4 = vmul.f32 %v8302_v45, %v2694_v55  ;;  %v2701_v61 = vmul.f32 %v8238_v1, %v2697_v22  ;;  %v2271_v18 = vpop.f32.mrf.mxu3 }
 0x360   :  { %2760 = vmatpush.msrb.mxu2 %v2700_v4  ;;  %2780 = vmatpush.msrb.mxu3 %v2701_v61 }
 0x361   :  { %7698 = vmatmul.msk.f32.vlgmr.msrb.gmra.mxu0 %vm278_vm0, %v258_v60  ;;  %7700 = vmatmul.msk.f32.vlgmr.msrb.gmra.mxu2 %vm278_vm0, %v258_v60 }
 0x362   :  { %7701 = vmatmul.msk.f32.vlgmr.msrb.gmra.mxu3 %vm278_vm0, %v258_v60  ;;  %v2231_v60 = vpop.f32.mrf.mxu1 }
 0x363   :  { %2883 = vmatpush.msra.mxu3 %v2804_v59  ;;  %v2899_v27 = vpop.permute.xlu1 %2898 }
 0x364   :  { %v2794_v11 = vpop.permute.xlu0 %2793  ;;  %v2903_v42 = vsel %vm994_vm7, %v2899_v27, %v2893_v53  ;;  %v2900_v3 = vsel %vm994_vm7, %v2897_v56, %v2899_v27 }
 0x365   :  { %v2797_v6 = vsel %vm890_vm2, %v2794_v11, %v2796_v5  ;;  %v2798_v62 = vsel %vm890_vm2, %v2792_v7, %v2794_v11  ;;  %v2907_v14 = vmul.f32 %v8373_v16, %v2903_v42 }
 0x366   :  { %v2802_v24 = vmul.f32 %v10104_v25, %v2798_v62  ;;  %v2803_v30 = vmul.f32 %v8264_v17, %v2797_v6 }
 0x367   :  { %2986 = vmatpush.msrb.mxu3 %v2907_v14 }
 0x368   :  { %2843 = vmatpush.msra.mxu1 %v2802_v24  ;;  %2863 = vmatpush.msra.mxu2 %v2803_v30 }
 0x369   :  { %7702 = vmatmul.msk.f32.vlgmr.msra.gmra.mxu0 %vm278_vm0, %v259_v26  ;;  %7703 = vmatmul.msk.f32.vlgmr.msra.gmra.mxu1 %vm278_vm0, %v259_v26 }
 0x36a   :  { %7704 = vmatmul.msk.f32.vlgmr.msra.gmra.mxu2 %vm278_vm0, %v259_v26  ;;  %7705 = vmatmul.msk.f32.vlgmr.msra.gmra.mxu3 %vm278_vm0, %v259_v26 }
 0x36b   :  { %2966 = vmatpush.msrb.mxu2 %v2900_v3  ;;  %v2996_v9 = vpop.permute.xlu1 %2995 }
 0x36c   :  { %v2895_v41 = vpop.permute.xlu0 %2894 }
 0x36d   :  { %v2901_v23 = vsel %vm994_vm7, %v2895_v41, %v2897_v56  ;;  %v2902_v12 = vsel %vm994_vm7, %v2893_v53, %v2895_v41  ;;  %v10110_v53 = vld [vmem:[#allocation7_spill] sm:$0xff] }
 0x36e   :  { %v2905_v40 = vmul.f32 %v10105_v39, %v2901_v23  ;;  %2926 = vmatpush.msrb.mxu0 %v2902_v12  ;;  %v8887_v23 = vpop.permute.xlu2 %2188 }
 0x36f   :  { %10112 = vst [vmem:[#allocation12_spill] sm:$0xff] %v8887_v23  ;;  %v2272_v15 = vadd.f32 %v2271_v18, %v8887_v23 }
 0x370   :  { %2946 = vmatpush.msrb.mxu1 %v2905_v40 }
 0x371   :  { %7706 = vmatmul.msk.f32.vlgmr.msrb.gmra.mxu0 %vm278_vm0, %v260_v20  ;;  %7707 = vmatmul.msk.f32.vlgmr.msrb.gmra.mxu1 %vm278_vm0, %v260_v20 }
 0x372   :  { %7708 = vmatmul.msk.f32.vlgmr.msrb.gmra.mxu2 %vm278_vm0, %v260_v20  ;;  %7709 = vmatmul.msk.f32.vlgmr.msrb.gmra.mxu3 %vm278_vm0, %v260_v20 }
 0x373   :  { %v2998_v44 = vpop.permute.xlu1 %2997 }
 0x374   :  { %v3002_v46 = vpop.permute.xlu0 %3001  ;;  %v3004_v47 = vsel %vm10106_vm12, %v2998_v44, %v3000_v43  ;;  %v3005_v49 = vsel %vm10107_vm6, %v2996_v9, %v2998_v44  ;;  %v2232_v44 = vadd.f32 %v2231_v60, %v8887_v23  ;;  %vm10128_vm12 = vmmov %vm10109_vm4 }
 0x375   :  { %v3003_v51 = vsel %vm10108_vm13, %v3000_v43, %v3002_v46  ;;  %v3006_v7 = vsel %vm10109_vm4, %v3002_v46, %v2996_v9  ;;  %v3007_v38 = vmul.f32 %v8307_v13, %v3005_v49  ;;  %v3008_v54 = vmul.f32 %v10110_v53, %v3004_v47  ;;  %vm10129_vm6 = vmmov %vm10109_vm4 }
 0x376   :  { %v3009_v52 = vmul.f32 %v8302_v45, %v3003_v51  ;;  %v3010_v57 = vmul.f32 %v10111_v21, %v3006_v7  ;;  %v2212_v43 = vadd.f32 %v2211_v29, %v8887_v23  ;;  %vm10131_vm13 = vmmov %vm10109_vm4 }
 0x377   :  { %3029 = vmatpush.msra.mxu0 %v3007_v38  ;;  %3049 = vmatpush.msra.mxu1 %v3008_v54 }
 0x378   :  { %3069 = vmatpush.msra.mxu2 %v3009_v52  ;;  %3089 = vmatpush.msra.mxu3 %v3010_v57 }
 0x379   :  { %7710 = vmatmul.msk.f32.vlgmr.msra.gmra.mxu0 %vm278_vm0, %v261_v58  ;;  %7711 = vmatmul.msk.f32.vlgmr.msra.gmra.mxu1 %vm278_vm0, %v261_v58 }
 0x37a   :  { %7712 = vmatmul.msk.f32.vlgmr.msra.gmra.mxu2 %vm278_vm0, %v261_v58  ;;  %7713 = vmatmul.msk.f32.vlgmr.msra.gmra.mxu3 %vm278_vm0, %v261_v58  ;;  %v2252_v58 = vadd.f32 %v2251_v10, %v8887_v23 }
 0x3b6   :  { %v2330_v5 = vpop.f32.mrf.mxu1  ;;  %v2310_v55 = vpop.f32.mrf.mxu0 }
 0x3b7   :  { %v2373_v46 = vadd.f32 %v2310_v55, %v2212_v43  ;;  %v2374_v47 = vadd.f32 %v2330_v5, %v2232_v44 }
 0x3bd   :  { %v2350_v4 = vpop.f32.mrf.mxu2  ;;  %v2370_v61 = vpop.f32.mrf.mxu3 }
 0x3be   :  { %v2433_v22 = vpop.f32.mrf.mxu1  ;;  %v2375_v21 = vadd.f32 %v2350_v4, %v2252_v58  ;;  %v2376_v29 = vadd.f32 %v2370_v61, %v2272_v15 }
 0x3bf   :  { %v2477_v49 = vadd.f32 %v2433_v22, %v2374_v47 }
 0x3c5   :  { %v2453_v11 = vpop.f32.mrf.mxu2 }
 0x3c6   :  { %v2413_v59 = vpop.f32.mrf.mxu0  ;;  %v2536_v27 = vpop.f32.mrf.mxu1  ;;  %v2478_v55 = vadd.f32 %v2453_v11, %v2375_v21 }
 0x3c7   :  { %v2476_v51 = vadd.f32 %v2413_v59, %v2373_v46  ;;  %v2580_v38 = vadd.f32 %v2536_v27, %v2477_v49 }
 0x3ca   :  { %v2473_v42 = vpop.f32.mrf.mxu3 }
 0x3cb   :  { %v2479_v5 = vadd.f32 %v2473_v42, %v2376_v29 }
 0x3ce   :  { %v2516_v6 = vpop.f32.mrf.mxu0 }
 0x3cf   :  { %v2639_v14 = vpop.f32.mrf.mxu1  ;;  %v2579_v54 = vadd.f32 %v2516_v6, %v2476_v51 }
 0x3d0   :  { %v2683_v36 = vadd.f32 %v2639_v14, %v2580_v38 }
 0x3d4   :  { %v2556_v62 = vpop.f32.mrf.mxu2 }
 0x3d5   :  { %v2576_v24 = vpop.f32.mrf.mxu3  ;;  %v2581_v43 = vadd.f32 %v2556_v62, %v2478_v55 }
 0x3d6   :  { %v2619_v30 = vpop.f32.mrf.mxu0  ;;  %v2582_v27 = vadd.f32 %v2576_v24, %v2479_v5 }
 0x3d7   :  { %v2742_v9 = vpop.f32.mrf.mxu1  ;;  %v2682_v19 = vadd.f32 %v2619_v30, %v2579_v54 }
 0x3d8   :  { %v2786_v53 = vadd.f32 %v2742_v9, %v2683_v36  ;;  %v272_v9 = vld [vmem:[%s10033_s8] sm:$0xff] }
 0x3dc   :  { %v2659_v26 = vpop.f32.mrf.mxu2 }
 0x3dd   :  { %v2679_v56 = vpop.f32.mrf.mxu3  ;;  %v2684_v10 = vadd.f32 %v2659_v26, %v2581_v43 }
 0x3de   :  { %v2722_v3 = vpop.f32.mrf.mxu0  ;;  %v2685_v49 = vadd.f32 %v2679_v56, %v2582_v27 }
 0x3df   :  { %v2785_v60 = vadd.f32 %v2722_v3, %v2682_v19 }
 0x3e4   :  { %v2762_v41 = vpop.f32.mrf.mxu2 }
 0x3e5   :  { %v2782_v12 = vpop.f32.mrf.mxu3  ;;  %v2787_v4 = vadd.f32 %v2762_v41, %v2684_v10 }
 0x3e6   :  { %v2825_v40 = vpop.f32.mrf.mxu0  ;;  %v2845_v20 = vpop.f32.mrf.mxu1  ;;  %v2788_v15 = vadd.f32 %v2782_v12, %v2685_v49 }
 0x3e7   :  { %v2888_v22 = vadd.f32 %v2825_v40, %v2785_v60  ;;  %v2889_v59 = vadd.f32 %v2845_v20, %v2786_v53 }
 0x3ed   :  { %v2865_v7 = vpop.f32.mrf.mxu2  ;;  %v2885_v52 = vpop.f32.mrf.mxu3 }
 0x3ee   :  { %v2928_v57 = vpop.f32.mrf.mxu0  ;;  %v2948_v37 = vpop.f32.mrf.mxu1  ;;  %v2890_v21 = vadd.f32 %v2865_v7, %v2787_v4  ;;  %v2891_v61 = vadd.f32 %v2885_v52, %v2788_v15  ;;  %v264_v15 = vld [vmem:[%s10032_s7 + $0x8] sm:$0xff] }
 0x3ef   :  { %v2991_v44 = vadd.f32 %v2928_v57, %v2888_v22  ;;  %v2992_v46 = vadd.f32 %v2948_v37, %v2889_v59  ;;  %v267_v37 = vld [vmem:[%s10032_s7 + $0x20] sm:$0xff] }
 0x3f5   :  { %v2968_v6 = vpop.f32.mrf.mxu2  ;;  %v2988_v47 = vpop.f32.mrf.mxu3 }
 0x3f6   :  { %v3031_v18 = vpop.f32.mrf.mxu0  ;;  %v3051_v51 = vpop.f32.mrf.mxu1  ;;  %v2993_v53 = vadd.f32 %v2968_v6, %v2890_v21  ;;  %v2994_v11 = vadd.f32 %v2988_v47, %v2891_v61 }
 0x3f7   :  { %v3094_v14 = vadd.f32 %v3031_v18, %v2991_v44  ;;  %v3095_v30 = vadd.f32 %v3051_v51, %v2992_v46  ;;  %v263_v46 = vld [vmem:[%s10032_s7] sm:$0xff] }
 0x3f9   :  { %v3098_v36 = vmax.f32 %v3094_v14, 0.0  ;;  %v3099_v19 = vmax.f32 %v3095_v30, 0.0 }
 0x3fb   :  { %3398 = vrot.lane.b32.xlu2 %v3099_v19, %s7960_s19  ;;  %3295 = vrot.lane.b32.xlu1 %v3099_v19, %s7959_s18 }
 0x3fc   :  { %3192 = vrot.lane.b32.xlu0 %v3099_v19, %s7958_s13  ;;  %3125 = vmatpush.msrb.mxu0 %v3098_v36 }
 0x3fd   :  { %3145 = vmatpush.msrb.mxu1 %v3099_v19  ;;  %v3071_v42 = vpop.f32.mrf.mxu2  ;;  %v3091_v62 = vpop.f32.mrf.mxu3  ;;  %7714 = vmatmul.msk.f32.vlgmr.msrb.gmra.mxu0 %vm278_vm0, %v267_v37 }
 0x3fe   :  { %v3096_v24 = vadd.f32 %v3071_v42, %v2993_v53  ;;  %v3097_v26 = vadd.f32 %v3091_v62, %v2994_v11  ;;  %7715 = vmatmul.msk.f32.vlgmr.msrb.gmra.mxu1 %vm278_vm0, %v267_v37 }
 0x400   :  { %v3100_v56 = vmax.f32 %v3096_v24, 0.0  ;;  %v3101_v3 = vmax.f32 %v3097_v26, 0.0  ;;  %v265_v24 = vld [vmem:[%s10032_s7 + $0x10] sm:$0xff] }
 0x402   :  { %3165 = vmatpush.msrb.mxu2 %v3100_v56  ;;  %3185 = vmatpush.msrb.mxu3 %v3101_v3 }
 0x403   :  { %3396 = vrot.lane.b32.xlu2 %v3098_v36, %s7960_s19  ;;  %3293 = vrot.lane.b32.xlu1 %v3098_v36, %s7959_s18 }
 0x404   :  { %3501 = vrot.lane.b32.xlu0 %v3099_v19, %s7961_s0  ;;  %7716 = vmatmul.msk.f32.vlgmr.msrb.gmra.mxu2 %vm278_vm0, %v267_v37 }
 0x405   :  { %7717 = vmatmul.msk.f32.vlgmr.msrb.gmra.mxu3 %vm278_vm0, %v267_v37 }
 0x40b   :  { %3196 = vrot.lane.b32.xlu2 %v3101_v3, %s7958_s13  ;;  %3194 = vrot.lane.b32.xlu1 %v3100_v56, %s7958_s13 }
 0x40c   :  { %3190 = vrot.lane.b32.xlu0 %v3098_v36, %s7958_s13 }
 0x413   :  { %3297 = vrot.lane.b32.xlu2 %v3100_v56, %s7959_s18  ;;  %3602 = vrot.lane.b32.xlu1 %v3098_v36, %s7962_s20 }
 0x414   :  { %3499 = vrot.lane.b32.xlu0 %v3098_v36, %s7961_s0 }
 0x41b   :  { %3705 = vrot.lane.b32.xlu2 %v3098_v36, %s7963_s21  ;;  %3402 = vrot.lane.b32.xlu1 %v3101_v3, %s7960_s19 }
 0x41c   :  { %3299 = vrot.lane.b32.xlu0 %v3101_v3, %s7959_s18 }
 0x423   :  { %3505 = vrot.lane.b32.xlu2 %v3101_v3, %s7961_s0  ;;  %3503 = vrot.lane.b32.xlu1 %v3100_v56, %s7961_s0 }
 0x424   :  { %3400 = vrot.lane.b32.xlu0 %v3100_v56, %s7960_s19 }
 0x42b   :  { %3606 = vrot.lane.b32.xlu2 %v3100_v56, %s7962_s20  ;;  %3604 = vrot.lane.b32.xlu1 %v3099_v19, %s7962_s20 }
 0x42c   :  { %3808 = vrot.lane.b32.xlu0 %v3098_v36, %s7964_s22 }
 0x433   :  { %3707 = vrot.lane.b32.xlu2 %v3099_v19, %s7963_s21  ;;  %3711 = vrot.lane.b32.xlu1 %v3101_v3, %s7963_s21 }
 0x434   :  { %3608 = vrot.lane.b32.xlu0 %v3101_v3, %s7962_s20 }
 0x43b   :  { %3812 = vrot.lane.b32.xlu2 %v3100_v56, %s7964_s22  ;;  %3814 = vrot.lane.b32.xlu1 %v3101_v3, %s7964_s22 }
 0x43c   :  { %3709 = vrot.lane.b32.xlu0 %v3100_v56, %s7963_s21 }
 0x443   :  { %3915 = vrot.lane.b32.xlu2 %v3100_v56, %s7965_s23  ;;  %3911 = vrot.lane.b32.xlu1 %v3098_v36, %s7965_s23 }
 0x444   :  { %3810 = vrot.lane.b32.xlu0 %v3099_v19, %s7964_s22 }
 0x44b   :  { %3104 = vperm.xlu2 %7904, %v272_v9   ;;  %3913 = vrot.lane.b32.xlu1 %v3099_v19, %s7965_s23 }
 0x44c   :  { %3917 = vrot.lane.b32.xlu0 %v3101_v3, %s7965_s23 }
 0x455   :  { %v8935_v41 = vpop.permute.xlu2 %3398 }
 0x45d   :  { %v3397_v12 = vpop.permute.xlu2 %3396 }
 0x45e   :  { %v3406_v47 = vsel %vm578_vm11, %v3397_v12, %v8935_v41 }
 0x45f   :  { %v3409_v49 = vmul.f32 %v8175_v48, %v3406_v47 }
 0x465   :  { %v3197_v40 = vpop.permute.xlu2 %3196 }
 0x46d   :  { %v3296_v20 = vpop.permute.xlu1 %3295  ;;  %v3298_v38 = vpop.permute.xlu2 %3297 }
 0x46e   :  { %v3193_v7 = vpop.permute.xlu0 %3192  ;;  %v3302_v27 = vsel %vm474_vm5, %v3296_v20, %v3298_v38 }
 0x46f   :  { %v3307_v10 = vmul.f32 %v8126_v28, %v3302_v27 }
 0x475   :  { %v3294_v54 = vpop.permute.xlu1 %3293  ;;  %v8941_v55 = vpop.permute.xlu2 %3705 }
 0x476   :  { %v3502_v52 = vpop.permute.xlu0 %3501  ;;  %v3303_v18 = vsel %vm474_vm5, %v3294_v54, %v3296_v20 }
 0x47d   :  { %v3195_v57 = vpop.permute.xlu1 %3194  ;;  %v3506_v36 = vpop.permute.xlu2 %3505 }
 0x47e   :  { %v3198_v58 = vsel %vm370_vm10, %v3195_v57, %v3197_v40  ;;  %v3199_v29 = vsel %vm370_vm10, %v3193_v7, %v3195_v57  ;;  %v3191_v60 = vpop.permute.xlu0 %3190 }
 0x47f   :  { %v3204_v5 = vmul.f32 %v8144_v33, %v3199_v29  ;;  %v3205_v22 = vmul.f32 %v8149_v34, %v3198_v58  ;;  %v3200_v59 = vsel %vm370_vm10, %v3191_v60, %v3193_v7  ;;  %v3201_v43 = vsel %vm370_vm10, %v3197_v40, %v3191_v60 }
 0x480   :  { %v3202_v6 = vmul.f32 %v8136_v31, %v3201_v43  ;;  %v3203_v44 = vmul.f32 %v8141_v32, %v3200_v59 }
 0x481   :  { %3264 = vmatpush.msra.mxu2 %v3204_v5  ;;  %3284 = vmatpush.msra.mxu3 %v3205_v22 }
 0x482   :  { %3224 = vmatpush.msra.mxu0 %v3202_v6  ;;  %3244 = vmatpush.msra.mxu1 %v3203_v44  ;;  %v268_v6 = vld [vmem:[%s10032_s7 + $0x28] sm:$0xff] }
 0x483   :  { %7718 = vmatmul.msk.f32.vlgmr.msra.gmra.mxu0 %vm278_vm0, %v263_v46  ;;  %7719 = vmatmul.msk.f32.vlgmr.msra.gmra.mxu1 %vm278_vm0, %v263_v46 }
 0x484   :  { %7720 = vmatmul.msk.f32.vlgmr.msra.gmra.mxu2 %vm278_vm0, %v263_v46  ;;  %7721 = vmatmul.msk.f32.vlgmr.msra.gmra.mxu3 %vm278_vm0, %v263_v46 }
 0x485   :  { %3347 = vmatpush.msrb.mxu1 %v3303_v18  ;;  %3367 = vmatpush.msrb.mxu2 %v3307_v10  ;;  %v8967_v51 = vpop.permute.xlu1 %3602  ;;  %v3607_v26 = vpop.permute.xlu2 %3606 }
 0x486   :  { %v3500_v14 = vpop.permute.xlu0 %3499 }
 0x487   :  { %3450 = vmatpush.msra.mxu1 %v3409_v49  ;;  %v3509_v30 = vsel %vm682_vm1, %v3500_v14, %v3502_v52  ;;  %v3510_v37 = vsel %vm682_vm1, %v3506_v36, %v3500_v14 }
 0x488   :  { %v3512_v4 = vmul.f32 %v8141_v32, %v3509_v30  ;;  %v3511_v56 = vmul.f32 %v8282_v35, %v3510_v37 }
 0x48b   :  { %7723 = vmatmul.msk.f32.vlgmr.msrb.gmra.mxu1 %vm278_vm0, %v264_v15 }
 0x48c   :  { %7724 = vmatmul.msk.f32.vlgmr.msrb.gmra.mxu2 %vm278_vm0, %v264_v15  ;;  %3553 = vmatpush.msrb.mxu1 %v3512_v4 }
 0x48d   :  { %v3403_v19 = vpop.permute.xlu1 %3402 }
 0x48e   :  { %v3407_v21 = vsel %vm578_vm11, %v3403_v19, %v3397_v12  ;;  %v3300_v61 = vpop.permute.xlu0 %3299 }
 0x48f   :  { %v3304_v53 = vsel %vm474_vm5, %v3300_v61, %v3294_v54  ;;  %v3301_v11 = vsel %vm474_vm5, %v3298_v38, %v3300_v61  ;;  %v3408_v42 = vmul.f32 %v8233_v0, %v3407_v21 }
 0x490   :  { %v3305_v62 = vmul.f32 %v8186_v50, %v3304_v53  ;;  %3387 = vmatpush.msrb.mxu3 %v3301_v11  ;;  %v269_v11 = vld [vmem:[%s10032_s7 + $0x30] sm:$0xff] }
 0x491   :  { %7725 = vmatmul.msk.f32.vlgmr.msrb.gmra.mxu3 %vm278_vm0, %v264_v15 }
 0x492   :  { %3327 = vmatpush.msrb.mxu0 %v3305_v62 }
 0x493   :  { %7722 = vmatmul.msk.f32.vlgmr.msrb.gmra.mxu0 %vm278_vm0, %v264_v15  ;;  %7727 = vmatmul.msk.f32.vlgmr.msra.gmra.mxu1 %vm278_vm0, %v265_v24 }
 0x494   :  { %3430 = vmatpush.msra.mxu0 %v3408_v42 }
 0x495   :  { %v3504_v3 = vpop.permute.xlu1 %3503 }
 0x496   :  { %3533 = vmatpush.msrb.mxu0 %v3511_v56  ;;  %v3507_v9 = vsel %vm682_vm1, %v3504_v3, %v3506_v36  ;;  %v3508_v12 = vsel %vm682_vm1, %v3502_v52, %v3504_v3  ;;  %v3401_v40 = vpop.permute.xlu0 %3400  ;;  %v266_v52 = vld [vmem:[%s10032_s7 + $0x18] sm:$0xff] }
 0x497   :  { %v3404_v20 = vsel %vm578_vm11, %v3401_v40, %v3403_v19  ;;  %v3405_v7 = vsel %vm578_vm11, %v8935_v41, %v3401_v40  ;;  %v3513_v57 = vmul.f32 %v8264_v17, %v3508_v12  ;;  %v3514_v58 = vmul.f32 %v8149_v34, %v3507_v9  ;;  %v3708_v41 = vpop.permute.xlu2 %3707  ;;  %v270_v9 = vld [vmem:[%s10032_s7 + $0x38] sm:$0xff] }
 0x498   :  { %v3410_v38 = vmul.f32 %v8230_v63, %v3405_v7  ;;  %v3411_v54 = vmul.f32 %v8238_v1, %v3404_v20  ;;  %v3715_v27 = vsel %vm890_vm2, %v8941_v55, %v3708_v41 }
 0x499   :  { %v3717_v44 = vmul.f32 %v8282_v35, %v3715_v27 }
 0x49a   :  { %3470 = vmatpush.msra.mxu2 %v3410_v38  ;;  %3490 = vmatpush.msra.mxu3 %v3411_v54 }
 0x49b   :  { %7726 = vmatmul.msk.f32.vlgmr.msra.gmra.mxu0 %vm278_vm0, %v265_v24  ;;  %7728 = vmatmul.msk.f32.vlgmr.msra.gmra.mxu2 %vm278_vm0, %v265_v24 }
 0x49c   :  { %7729 = vmatmul.msk.f32.vlgmr.msra.gmra.mxu3 %vm278_vm0, %v265_v24  ;;  %7731 = vmatmul.msk.f32.vlgmr.msrb.gmra.mxu1 %vm278_vm0, %v266_v52 }
 0x49d   :  { %3573 = vmatpush.msrb.mxu2 %v3513_v57  ;;  %3593 = vmatpush.msrb.mxu3 %v3514_v58  ;;  %v3605_v29 = vpop.permute.xlu1 %3604  ;;  %v10115_v57 = vld [vmem:[#allocation7_spill] sm:$0xff] }
 0x49e   :  { %v3611_v60 = vsel %vm786_vm3, %v3605_v29, %v3607_v26  ;;  %v3612_v5 = vsel %vm786_vm3, %v8967_v51, %v3605_v29  ;;  %v3809_v22 = vpop.permute.xlu0 %3808 }
 0x49f   :  { %v3614_v59 = vmul.f32 %v8307_v13, %v3612_v5  ;;  %v3615_v43 = vmul.f32 %v8175_v48, %v3611_v60  ;;  %v3813_v37 = vpop.permute.xlu2 %3812  ;;  %v10118_v60 = vld [vmem:[#allocation6_spill] sm:$0xff] }
 0x4a1   :  { %3636 = vmatpush.msra.mxu0 %v3614_v59  ;;  %3656 = vmatpush.msra.mxu1 %v3615_v43  ;;  %v3147_v59 = vpop.f32.mrf.mxu1  ;;  %v3127_v43 = vpop.f32.mrf.mxu0 }
 0x4a3   :  { %7730 = vmatmul.msk.f32.vlgmr.msrb.gmra.mxu0 %vm278_vm0, %v266_v52  ;;  %7732 = vmatmul.msk.f32.vlgmr.msrb.gmra.mxu2 %vm278_vm0, %v266_v52 }
 0x4a4   :  { %7733 = vmatmul.msk.f32.vlgmr.msrb.gmra.mxu3 %vm278_vm0, %v266_v52  ;;  %7735 = vmatmul.msk.f32.vlgmr.msra.gmra.mxu1 %vm278_vm0, %v268_v6 }
 0x4a5   :  { %3739 = vmatpush.msrb.mxu0 %v3717_v44  ;;  %v3712_v46 = vpop.permute.xlu1 %3711  ;;  %v3187_v44 = vpop.f32.mrf.mxu3 }
 0x4a6   :  { %v3716_v47 = vsel %vm890_vm2, %v3712_v46, %v8941_v55  ;;  %v3609_v10 = vpop.permute.xlu0 %3608 }
 0x4a7   :  { %v3610_v49 = vsel %vm786_vm3, %v3607_v26, %v3609_v10  ;;  %v3613_v18 = vsel %vm786_vm3, %v3609_v10, %v8967_v51  ;;  %v3720_v4 = vmul.f32 %v8351_v2, %v3716_v47  ;;  %v3916_v12 = vpop.permute.xlu2 %3915 }
 0x4a8   :  { %v3616_v14 = vmul.f32 %v8302_v45, %v3610_v49  ;;  %v3617_v30 = vmul.f32 %v8238_v1, %v3613_v18 }
 0x4aa   :  { %3676 = vmatpush.msra.mxu2 %v3616_v14  ;;  %3696 = vmatpush.msra.mxu3 %v3617_v30 }
 0x4ab   :  { %7734 = vmatmul.msk.f32.vlgmr.msra.gmra.mxu0 %vm278_vm0, %v268_v6  ;;  %7736 = vmatmul.msk.f32.vlgmr.msra.gmra.mxu2 %vm278_vm0, %v268_v6 }
 0x4ac   :  { %7737 = vmatmul.msk.f32.vlgmr.msra.gmra.mxu3 %vm278_vm0, %v268_v6  ;;  %v3167_v6 = vpop.f32.mrf.mxu2 }
 0x4ad   :  { %3799 = vmatpush.msrb.mxu3 %v3720_v4  ;;  %v3815_v55 = vpop.permute.xlu1 %3814 }
 0x4ae   :  { %v3819_v15 = vsel %vm994_vm7, %v3815_v55, %v3809_v22  ;;  %v3710_v51 = vpop.permute.xlu0 %3709  ;;  %v3816_v42 = vsel %vm994_vm7, %v3813_v37, %v3815_v55 }
 0x4af   :  { %v3823_v36 = vmul.f32 %v8373_v16, %v3819_v15  ;;  %v3713_v19 = vsel %vm890_vm2, %v3710_v51, %v3712_v46  ;;  %v3714_v21 = vsel %vm890_vm2, %v3708_v41, %v3710_v51 }
 0x4b0   :  { %v3718_v61 = vmul.f32 %v10104_v25, %v3714_v21  ;;  %v3719_v53 = vmul.f32 %v8264_v17, %v3713_v19 }
 0x4b1   :  { %3902 = vmatpush.msra.mxu3 %v3823_v36 }
 0x4b2   :  { %3759 = vmatpush.msrb.mxu1 %v3718_v61  ;;  %3779 = vmatpush.msrb.mxu2 %v3719_v53 }
 0x4b3   :  { %7738 = vmatmul.msk.f32.vlgmr.msrb.gmra.mxu0 %vm278_vm0, %v269_v11  ;;  %7739 = vmatmul.msk.f32.vlgmr.msrb.gmra.mxu1 %vm278_vm0, %v269_v11 }
 0x4b4   :  { %7740 = vmatmul.msk.f32.vlgmr.msrb.gmra.mxu2 %vm278_vm0, %v269_v11  ;;  %7741 = vmatmul.msk.f32.vlgmr.msrb.gmra.mxu3 %vm278_vm0, %v269_v11 }
 0x4b5   :  { %3882 = vmatpush.msra.mxu2 %v3816_v42  ;;  %v3912_v62 = vpop.permute.xlu1 %3911 }
 0x4b6   :  { %v3811_v24 = vpop.permute.xlu0 %3810 }
 0x4b7   :  { %v3817_v26 = vsel %vm994_vm7, %v3811_v24, %v3813_v37  ;;  %v3818_v56 = vsel %vm994_vm7, %v3809_v22, %v3811_v24  ;;  %v271_v22 = vld [vmem:[%s10032_s7 + $0x40] sm:$0xff]  ;;  %v9095_v37 = vpop.permute.xlu2 %3104 }
 0x4b8   :  { %v3821_v3 = vmul.f32 %v10105_v39, %v3817_v26  ;;  %3842 = vmatpush.msra.mxu0 %v3818_v56  ;;  %10119 = vst [vmem:[#allocation13_spill] sm:$0xff] %v9095_v37  ;;  %v3128_v56 = vadd.f32 %v3127_v43, %v9095_v37 }
 0x4ba   :  { %3862 = vmatpush.msra.mxu1 %v3821_v3  ;;  %v3148_v3 = vadd.f32 %v3147_v59, %v9095_v37 }
 0x4bb   :  { %7742 = vmatmul.msk.f32.vlgmr.msra.gmra.mxu0 %vm278_vm0, %v270_v9  ;;  %7743 = vmatmul.msk.f32.vlgmr.msra.gmra.mxu1 %vm278_vm0, %v270_v9 }
 0x4bc   :  { %7744 = vmatmul.msk.f32.vlgmr.msra.gmra.mxu2 %vm278_vm0, %v270_v9  ;;  %7745 = vmatmul.msk.f32.vlgmr.msra.gmra.mxu3 %vm278_vm0, %v270_v9 }
 0x4bd   :  { %v3914_v40 = vpop.permute.xlu1 %3913 }
 0x4be   :  { %v3920_v20 = vsel %vm10113_vm15, %v3914_v40, %v3916_v12  ;;  %v3921_v7 = vsel %vm10114_vm14, %v3912_v62, %v3914_v40  ;;  %v3918_v38 = vpop.permute.xlu0 %3917  ;;  %vm10134_vm15 = vmmov %vm10109_vm4 }
 0x4bf   :  { %v3923_v54 = vmul.f32 %v8307_v13, %v3921_v7  ;;  %v3924_v58 = vmul.f32 %v10115_v57, %v3920_v20  ;;  %v3919_v52 = vsel %vm10116_vm9, %v3916_v12, %v3918_v38  ;;  %v3922_v41 = vsel %vm10117_vm8, %v3918_v38, %v3912_v62  ;;  %vm10135_vm14 = vmmov %vm10109_vm4 }
 0x4c0   :  { %v3925_v29 = vmul.f32 %v8302_v45, %v3919_v52  ;;  %v3926_v5 = vmul.f32 %v10118_v60, %v3922_v41  ;;  %v3168_v52 = vadd.f32 %v3167_v6, %v9095_v37  ;;  %v3188_v41 = vadd.f32 %v3187_v44, %v9095_v37  ;;  %vm10137_vm9 = vmmov %vm10109_vm4 }
 0x4c1   :  { %3945 = vmatpush.msrb.mxu0 %v3923_v54  ;;  %3965 = vmatpush.msrb.mxu1 %v3924_v58  ;;  %vm10138_vm8 = vmmov %vm10109_vm4 }
 0x4c2   :  { %3985 = vmatpush.msrb.mxu2 %v3925_v29  ;;  %4005 = vmatpush.msrb.mxu3 %v3926_v5 }
 0x4c3   :  { %7746 = vmatmul.msk.f32.vlgmr.msrb.gmra.mxu0 %vm278_vm0, %v271_v22  ;;  %7747 = vmatmul.msk.f32.vlgmr.msrb.gmra.mxu1 %vm278_vm0, %v271_v22 }
 0x4c4   :  { %7748 = vmatmul.msk.f32.vlgmr.msrb.gmra.mxu2 %vm278_vm0, %v271_v22  ;;  %7749 = vmatmul.msk.f32.vlgmr.msrb.gmra.mxu3 %vm278_vm0, %v271_v22 }
 0x500   :  { %v3246_v27 = vpop.f32.mrf.mxu1  ;;  %v3226_v46 = vpop.f32.mrf.mxu0 }
 0x501   :  { %v3289_v9 = vadd.f32 %v3226_v46, %v3128_v56  ;;  %v3290_v12 = vadd.f32 %v3246_v27, %v3148_v3 }
 0x507   :  { %v3266_v10 = vpop.f32.mrf.mxu2  ;;  %v3286_v49 = vpop.f32.mrf.mxu3 }
 0x508   :  { %v3349_v47 = vpop.f32.mrf.mxu1  ;;  %v3291_v60 = vadd.f32 %v3266_v10, %v3168_v52  ;;  %v3292_v43 = vadd.f32 %v3286_v49, %v3188_v41  ;;  %v10126_v52 = vld [vmem:[#allocation11_spill] sm:$0xff] }
 0x509   :  { %v3393_v40 = vadd.f32 %v3349_v47, %v3290_v12 }
 0x50f   :  { %v3369_v30 = vpop.f32.mrf.mxu2 }
 0x510   :  { %v3329_v18 = vpop.f32.mrf.mxu0  ;;  %v3452_v14 = vpop.f32.mrf.mxu1  ;;  %v3394_v46 = vadd.f32 %v3369_v30, %v3291_v60 }
 0x511   :  { %v3392_v20 = vadd.f32 %v3329_v18, %v3289_v9  ;;  %v3496_v7 = vadd.f32 %v3452_v14, %v3393_v40 }
 0x514   :  { %v3389_v4 = vpop.f32.mrf.mxu3 }
 0x515   :  { %v3395_v27 = vadd.f32 %v3389_v4, %v3292_v43  ;;  %v10120_v4 = vld [vmem:[#allocation8_spill] sm:$0xff] }
 0x518   :  { %v3432_v55 = vpop.f32.mrf.mxu0 }
 0x519   :  { %v3555_v15 = vpop.f32.mrf.mxu1  ;;  %v3495_v38 = vadd.f32 %v3432_v55, %v3392_v20 }
 0x51a   :  { %v3599_v22 = vadd.f32 %v3555_v15, %v3496_v7 }
 0x51e   :  { %v3472_v51 = vpop.f32.mrf.mxu2 }
 0x51f   :  { %v3492_v36 = vpop.f32.mrf.mxu3  ;;  %v3497_v14 = vadd.f32 %v3472_v51, %v3394_v46  ;;  %v10122_v51 = vld [vmem:[#allocation9_spill] sm:$0xff] }
 0x520   :  { %v3535_v19 = vpop.f32.mrf.mxu0  ;;  %v3498_v55 = vadd.f32 %v3492_v36, %v3395_v27 }
 0x521   :  { %v3658_v53 = vpop.f32.mrf.mxu1  ;;  %v3598_v23 = vadd.f32 %v3535_v19, %v3495_v38 }
 0x522   :  { %v3702_v57 = vadd.f32 %v3658_v53, %v3599_v22 }
 0x526   :  { %v3575_v21 = vpop.f32.mrf.mxu2 }
 0x527   :  { %v3595_v61 = vpop.f32.mrf.mxu3  ;;  %v3600_v12 = vadd.f32 %v3575_v21, %v3497_v14 }
 0x528   :  { %v3638_v11 = vpop.f32.mrf.mxu0  ;;  %v3601_v44 = vadd.f32 %v3595_v61, %v3498_v55 }
 0x529   :  { %v3701_v59 = vadd.f32 %v3638_v11, %v3598_v23 }
 0x52e   :  { %v3678_v42 = vpop.f32.mrf.mxu2 }
 0x52f   :  { %v3698_v62 = vpop.f32.mrf.mxu3  ;;  %v3703_v10 = vadd.f32 %v3678_v42, %v3600_v12 }
 0x530   :  { %v3741_v24 = vpop.f32.mrf.mxu0  ;;  %v3761_v26 = vpop.f32.mrf.mxu1  ;;  %v3704_v49 = vadd.f32 %v3698_v62, %v3601_v44 }
 0x531   :  { %v3804_v47 = vadd.f32 %v3741_v24, %v3701_v59  ;;  %v3805_v18 = vadd.f32 %v3761_v26, %v3702_v57  ;;  %v7922_v26 = vld [vmem:[%s10030_s5 + $0x20] sm:$0xff] }
 0x537   :  { %v3781_v54 = vpop.f32.mrf.mxu2  ;;  %v3801_v58 = vpop.f32.mrf.mxu3 }
 0x538   :  { %v3844_v29 = vpop.f32.mrf.mxu0  ;;  %v3864_v5 = vpop.f32.mrf.mxu1  ;;  %v3806_v60 = vadd.f32 %v3781_v54, %v3703_v10  ;;  %v3807_v30 = vadd.f32 %v3801_v58, %v3704_v49  ;;  %v10124_v54 = vld [vmem:[#allocation10_spill] sm:$0xff] }
 0x539   :  { %v3907_v56 = vadd.f32 %v3844_v29, %v3804_v47  ;;  %v3908_v3 = vadd.f32 %v3864_v5, %v3805_v18  ;;  %v7923_v49 = vld [vmem:[%s10030_s5] sm:$0xff] }
 0x53f   :  { %v3884_v9 = vpop.f32.mrf.mxu2  ;;  %v3904_v6 = vpop.f32.mrf.mxu3 }
 0x540   :  { %v3947_v40 = vpop.f32.mrf.mxu0  ;;  %v3967_v20 = vpop.f32.mrf.mxu1  ;;  %v3909_v11 = vadd.f32 %v3884_v9, %v3806_v60  ;;  %v3910_v24 = vadd.f32 %v3904_v6, %v3807_v30 }
 0x541   :  { %v4010_v15 = vadd.f32 %v3947_v40, %v3907_v56  ;;  %v4011_v19 = vadd.f32 %v3967_v20, %v3908_v3 }
 0x543   :  { %v4014_v53 = vmul.f32 0.7, %v4010_v15  ;;  %v4015_v23 = vmul.f32 0.7, %v4011_v19 }
 0x545   :  { %v9102_v57 = vadd.f32 %v4014_v53, %v10120_v4  ;;  %v9105_v36 = vadd.f32 %v4015_v23, %v10122_v51 }
 0x547   :  { %10121 = vst [vmem:[#allocation8_spill] sm:$0xff] %v9102_v57  ;;  %v3987_v21 = vpop.f32.mrf.mxu2  ;;  %v4007_v61 = vpop.f32.mrf.mxu3  ;;  %4304 = vrot.lane.b32.xlu2 %v9105_v36, %s7960_s19  ;;  %4204 = vrot.lane.b32.xlu1 %v9105_v36, %s7959_s18 }
 0x548   :  { %10123 = vst [vmem:[#allocation9_spill] sm:$0xff] %v9105_v36  ;;  %v4012_v42 = vadd.f32 %v3987_v21, %v3909_v11  ;;  %v4013_v62 = vadd.f32 %v4007_v61, %v3910_v24  ;;  %4104 = vrot.lane.b32.xlu0 %v9105_v36, %s7958_s13  ;;  %4037 = vmatpush.msra.mxu0 %v9102_v57  ;;  %v7924_v24 = vld [vmem:[%s10030_s5 + $0x8] sm:$0xff] }
 0x549   :  { %4057 = vmatpush.msra.mxu1 %v9105_v36  ;;  %7750 = vmatmul.msk.f32.vlgmr.msra.gmra.mxu0 %vm278_vm0, %v7922_v26 }
 0x54a   :  { %v4016_v7 = vmul.f32 0.7, %v4012_v42  ;;  %v4017_v38 = vmul.f32 0.7, %v4013_v62  ;;  %7751 = vmatmul.msk.f32.vlgmr.msra.gmra.mxu1 %vm278_vm0, %v7922_v26 }
 0x54c   :  { %v9121_v58 = vadd.f32 %v4016_v7, %v10124_v54  ;;  %v9124_v41 = vadd.f32 %v4017_v38, %v10126_v52  ;;  %v7925_v52 = vld [vmem:[%s10030_s5 + $0x10] sm:$0xff] }
 0x54e   :  { %10125 = vst [vmem:[#allocation10_spill] sm:$0xff] %v9121_v58  ;;  %4077 = vmatpush.msra.mxu2 %v9121_v58  ;;  %4097 = vmatpush.msra.mxu3 %v9124_v41 }
 0x54f   :  { %10127 = vst [vmem:[#allocation11_spill] sm:$0xff] %v9124_v41  ;;  %7752 = vmatmul.msk.f32.vlgmr.msra.gmra.mxu2 %vm278_vm0, %v7922_v26  ;;  %7753 = vmatmul.msk.f32.vlgmr.msra.gmra.mxu3 %vm278_vm0, %v7922_v26 }
 0x550   :  { %4404 = vrot.lane.b32.xlu0 %v9105_v36, %s7961_s0  ;;  %4302 = vrot.lane.b32.xlu2 %v9102_v57, %s7960_s19 }
 0x551   :  { %4202 = vrot.lane.b32.xlu1 %v9102_v57, %s7959_s18 }
 0x558   :  { %4108 = vrot.lane.b32.xlu2 %v9124_v41, %s7958_s13  ;;  %4102 = vrot.lane.b32.xlu0 %v9102_v57, %s7958_s13 }
 0x559   :  { %4106 = vrot.lane.b32.xlu1 %v9121_v58, %s7958_s13 }
 0x560   :  { %4206 = vrot.lane.b32.xlu2 %v9121_v58, %s7959_s18  ;;  %4402 = vrot.lane.b32.xlu0 %v9102_v57, %s7961_s0 }
 0x561   :  { %4502 = vrot.lane.b32.xlu1 %v9102_v57, %s7962_s20 }
 0x568   :  { %4602 = vrot.lane.b32.xlu2 %v9102_v57, %s7963_s21  ;;  %4208 = vrot.lane.b32.xlu0 %v9124_v41, %s7959_s18 }
 0x569   :  { %4308 = vrot.lane.b32.xlu1 %v9124_v41, %s7960_s19 }
 0x570   :  { %4408 = vrot.lane.b32.xlu2 %v9124_v41, %s7961_s0  ;;  %4306 = vrot.lane.b32.xlu0 %v9121_v58, %s7960_s19 }
 0x571   :  { %4406 = vrot.lane.b32.xlu1 %v9121_v58, %s7961_s0 }
 0x578   :  { %4506 = vrot.lane.b32.xlu2 %v9121_v58, %s7962_s20  ;;  %4702 = vrot.lane.b32.xlu0 %v9102_v57, %s7964_s22 }
 0x579   :  { %4504 = vrot.lane.b32.xlu1 %v9105_v36, %s7962_s20 }
 0x580   :  { %4604 = vrot.lane.b32.xlu2 %v9105_v36, %s7963_s21  ;;  %4508 = vrot.lane.b32.xlu0 %v9124_v41, %s7962_s20 }
 0x581   :  { %4608 = vrot.lane.b32.xlu1 %v9124_v41, %s7963_s21 }
 0x588   :  { %4706 = vrot.lane.b32.xlu2 %v9121_v58, %s7964_s22  ;;  %4606 = vrot.lane.b32.xlu0 %v9121_v58, %s7963_s21 }
 0x589   :  { %4708 = vrot.lane.b32.xlu1 %v9124_v41, %s7964_s22 }
 0x590   :  { %4806 = vrot.lane.b32.xlu2 %v9121_v58, %s7965_s23  ;;  %4704 = vrot.lane.b32.xlu0 %v9105_v36, %s7964_s22 }
 0x591   :  { %4802 = vrot.lane.b32.xlu1 %v9102_v57, %s7965_s23 }
 0x598   :  { %4808 = vrot.lane.b32.xlu0 %v9124_v41, %s7965_s23 }
 0x599   :  { %4804 = vrot.lane.b32.xlu1 %v9105_v36, %s7965_s23 }
 0x5a1   :  { %v9188_v29 = vpop.permute.xlu2 %4304 }
 0x5aa   :  { %v4303_v5 = vpop.permute.xlu2 %4302 }
 0x5ab   :  { %v4312_v19 = vsel %vm578_vm11, %v4303_v5, %v9188_v29 }
 0x5ac   :  { %v4315_v53 = vmul.f32 %v8175_v48, %v4312_v19 }
 0x5b2   :  { %v4109_v22 = vpop.permute.xlu2 %4108 }
 0x5b9   :  { %v4205_v43 = vpop.permute.xlu1 %4204 }
 0x5ba   :  { %v4105_v59 = vpop.permute.xlu0 %4104  ;;  %v4207_v27 = vpop.permute.xlu2 %4206 }
 0x5bb   :  { %v4211_v44 = vsel %vm474_vm5, %v4205_v43, %v4207_v27 }
 0x5bc   :  { %v4216_v10 = vmul.f32 %v8126_v28, %v4211_v44 }
 0x5c2   :  { %v4405_v46 = vpop.permute.xlu0 %4404  ;;  %v9202_v40 = vpop.permute.xlu2 %4602 }
 0x5c3   :  { %v4203_v47 = vpop.permute.xlu1 %4202 }
 0x5c4   :  { %v4212_v23 = vsel %vm474_vm5, %v4203_v47, %v4205_v43 }
 0x5ca   :  { %v4103_v18 = vpop.permute.xlu0 %4102  ;;  %v4409_v11 = vpop.permute.xlu2 %4408 }
 0x5cb   :  { %v4107_v14 = vpop.permute.xlu1 %4106  ;;  %v4112_v55 = vsel %vm370_vm10, %v4103_v18, %v4105_v59  ;;  %v4113_v56 = vsel %vm370_vm10, %v4109_v22, %v4103_v18 }
 0x5cc   :  { %v4110_v3 = vsel %vm370_vm10, %v4107_v14, %v4109_v22  ;;  %v4111_v9 = vsel %vm370_vm10, %v4105_v59, %v4107_v14  ;;  %v4114_v6 = vmul.f32 %v8136_v31, %v4113_v56  ;;  %v4115_v12 = vmul.f32 %v8141_v32, %v4112_v55 }
 0x5cd   :  { %v4116_v20 = vmul.f32 %v8144_v33, %v4111_v9  ;;  %v4117_v15 = vmul.f32 %v8149_v34, %v4110_v3 }
 0x5ce   :  { %4133 = vmatpush.msrb.mxu0 %v4114_v6  ;;  %4153 = vmatpush.msrb.mxu1 %v4115_v12 }
 0x5cf   :  { %4173 = vmatpush.msrb.mxu2 %v4116_v20  ;;  %4193 = vmatpush.msrb.mxu3 %v4117_v15 }
 0x5d0   :  { %7754 = vmatmul.msk.f32.vlgmr.msrb.gmra.mxu0 %vm278_vm0, %v7923_v49  ;;  %7755 = vmatmul.msk.f32.vlgmr.msrb.gmra.mxu1 %vm278_vm0, %v7923_v49 }
 0x5d1   :  { %7756 = vmatmul.msk.f32.vlgmr.msrb.gmra.mxu2 %vm278_vm0, %v7923_v49  ;;  %7757 = vmatmul.msk.f32.vlgmr.msrb.gmra.mxu3 %vm278_vm0, %v7923_v49 }
 0x5d2   :  { %4253 = vmatpush.msra.mxu1 %v4212_v23  ;;  %4273 = vmatpush.msra.mxu2 %v4216_v10  ;;  %v4403_v30 = vpop.permute.xlu0 %4402 }
 0x5d3   :  { %v9220_v60 = vpop.permute.xlu1 %4502  ;;  %v4412_v4 = vsel %vm682_vm1, %v4403_v30, %v4405_v46  ;;  %v4413_v7 = vsel %vm682_vm1, %v4409_v11, %v4403_v30 }
 0x5d4   :  { %4353 = vmatpush.msrb.mxu1 %v4315_v53  ;;  %v4415_v51 = vmul.f32 %v8141_v32, %v4412_v4  ;;  %v4414_v22 = vmul.f32 %v8282_v35, %v4413_v7  ;;  %v7927_v53 = vld [vmem:[%s10030_s5 + $0x28] sm:$0xff] }
 0x5d8   :  { %7759 = vmatmul.msk.f32.vlgmr.msra.gmra.mxu1 %vm278_vm0, %v7924_v24 }
 0x5d9   :  { %7760 = vmatmul.msk.f32.vlgmr.msra.gmra.mxu2 %vm278_vm0, %v7924_v24  ;;  %4453 = vmatpush.msra.mxu1 %v4415_v51 }
 0x5da   :  { %v4209_v42 = vpop.permute.xlu0 %4208 }
 0x5db   :  { %v4309_v21 = vpop.permute.xlu1 %4308  ;;  %v4210_v62 = vsel %vm474_vm5, %v4207_v27, %v4209_v42  ;;  %v4213_v26 = vsel %vm474_vm5, %v4209_v42, %v4203_v47 }
 0x5dc   :  { %v4313_v61 = vsel %vm578_vm11, %v4309_v21, %v4303_v5  ;;  %v4214_v54 = vmul.f32 %v8186_v50, %v4213_v26  ;;  %4293 = vmatpush.msra.mxu3 %v4210_v62  ;;  %v4507_v5 = vpop.permute.xlu2 %4506 }
 0x5dd   :  { %v4314_v38 = vmul.f32 %v8233_v0, %v4313_v61  ;;  %7761 = vmatmul.msk.f32.vlgmr.msra.gmra.mxu3 %vm278_vm0, %v7924_v24 }
 0x5de   :  { %4233 = vmatpush.msra.mxu0 %v4214_v54 }
 0x5df   :  { %7758 = vmatmul.msk.f32.vlgmr.msra.gmra.mxu0 %vm278_vm0, %v7924_v24 }
 0x5e0   :  { %7763 = vmatmul.msk.f32.vlgmr.msrb.gmra.mxu1 %vm278_vm0, %v7925_v52  ;;  %4333 = vmatpush.msrb.mxu0 %v4314_v38 }
 0x5e2   :  { %4433 = vmatpush.msra.mxu0 %v4414_v22  ;;  %v4307_v47 = vpop.permute.xlu0 %4306 }
 0x5e3   :  { %v4407_v43 = vpop.permute.xlu1 %4406  ;;  %v4310_v18 = vsel %vm578_vm11, %v4307_v47, %v4309_v21  ;;  %v4311_v14 = vsel %vm578_vm11, %v9188_v29, %v4307_v47  ;;  %v7926_v29 = vld [vmem:[%s10030_s5 + $0x18] sm:$0xff] }
 0x5e4   :  { %v4410_v59 = vsel %vm682_vm1, %v4407_v43, %v4409_v11  ;;  %v4411_v27 = vsel %vm682_vm1, %v4405_v46, %v4407_v43  ;;  %v4316_v55 = vmul.f32 %v8230_v63, %v4311_v14  ;;  %v4317_v56 = vmul.f32 %v8238_v1, %v4310_v18  ;;  %v4605_v46 = vpop.permute.xlu2 %4604  ;;  %v7929_v14 = vld [vmem:[%s10030_s5 + $0x38] sm:$0xff] }
 0x5e5   :  { %v4416_v3 = vmul.f32 %v8264_v17, %v4411_v27  ;;  %v4417_v9 = vmul.f32 %v8149_v34, %v4410_v59  ;;  %v4612_v10 = vsel %vm890_vm2, %v9202_v40, %v4605_v46 }
 0x5e6   :  { %4373 = vmatpush.msrb.mxu2 %v4316_v55  ;;  %4393 = vmatpush.msrb.mxu3 %v4317_v56  ;;  %v4614_v49 = vmul.f32 %v8282_v35, %v4612_v10 }
 0x5e7   :  { %7762 = vmatmul.msk.f32.vlgmr.msrb.gmra.mxu0 %vm278_vm0, %v7925_v52  ;;  %7764 = vmatmul.msk.f32.vlgmr.msrb.gmra.mxu2 %vm278_vm0, %v7925_v52 }
 0x5e8   :  { %7765 = vmatmul.msk.f32.vlgmr.msrb.gmra.mxu3 %vm278_vm0, %v7925_v52  ;;  %7767 = vmatmul.msk.f32.vlgmr.msra.gmra.mxu1 %vm278_vm0, %v7926_v29 }
 0x5e9   :  { %4473 = vmatpush.msra.mxu2 %v4416_v3  ;;  %4493 = vmatpush.msra.mxu3 %v4417_v9 }
 0x5ea   :  { %v4703_v20 = vpop.permute.xlu0 %4702 }
 0x5eb   :  { %v4505_v6 = vpop.permute.xlu1 %4504 }
 0x5ec   :  { %v4511_v12 = vsel %vm786_vm3, %v4505_v6, %v4507_v5  ;;  %v4512_v44 = vsel %vm786_vm3, %v9220_v60, %v4505_v6  ;;  %v4707_v52 = vpop.permute.xlu2 %4706  ;;  %v10130_v6 = vld [vmem:[#allocation7_spill] sm:$0xff] }
 0x5ed   :  { %v4514_v15 = vmul.f32 %v8307_v13, %v4512_v44  ;;  %v4515_v19 = vmul.f32 %v8175_v48, %v4511_v12 }
 0x5ef   :  { %4533 = vmatpush.msrb.mxu0 %v4514_v15  ;;  %4553 = vmatpush.msrb.mxu1 %v4515_v19  ;;  %v10132_v19 = vld [vmem:[#allocation6_spill] sm:$0xff] }
 0x5f0   :  { %7766 = vmatmul.msk.f32.vlgmr.msra.gmra.mxu0 %vm278_vm0, %v7926_v29  ;;  %7768 = vmatmul.msk.f32.vlgmr.msra.gmra.mxu2 %vm278_vm0, %v7926_v29 }
 0x5f1   :  { %7769 = vmatmul.msk.f32.vlgmr.msra.gmra.mxu3 %vm278_vm0, %v7926_v29  ;;  %7771 = vmatmul.msk.f32.vlgmr.msrb.gmra.mxu1 %vm278_vm0, %v7927_v53 }
 0x5f2   :  { %4633 = vmatpush.msra.mxu0 %v4614_v49  ;;  %v4509_v4 = vpop.permute.xlu0 %4508  ;;  %v7930_v49 = vld [vmem:[%s10030_s5 + $0x40] sm:$0xff] }
 0x5f3   :  { %v4609_v23 = vpop.permute.xlu1 %4608  ;;  %v4510_v51 = vsel %vm786_vm3, %v4507_v5, %v4509_v4  ;;  %v4513_v11 = vsel %vm786_vm3, %v4509_v4, %v9220_v60  ;;  %v7928_v5 = vld [vmem:[%s10030_s5 + $0x30] sm:$0xff]  ;;  %v4079_v4 = vpop.f32.mrf.mxu2 }
 0x5f4   :  { %v4613_v30 = vsel %vm890_vm2, %v4609_v23, %v9202_v40  ;;  %v4516_v24 = vmul.f32 %v8302_v45, %v4510_v51  ;;  %v4517_v21 = vmul.f32 %v8238_v1, %v4513_v11  ;;  %v4807_v55 = vpop.permute.xlu2 %4806  ;;  %v4099_v51 = vpop.f32.mrf.mxu3 }
 0x5f5   :  { %v4617_v61 = vmul.f32 %v8351_v2, %v4613_v30 }
 0x5f6   :  { %4573 = vmatpush.msrb.mxu2 %v4516_v24  ;;  %4593 = vmatpush.msrb.mxu3 %v4517_v21 }
 0x5f8   :  { %7770 = vmatmul.msk.f32.vlgmr.msrb.gmra.mxu0 %vm278_vm0, %v7927_v53  ;;  %7772 = vmatmul.msk.f32.vlgmr.msrb.gmra.mxu2 %vm278_vm0, %v7927_v53 }
 0x5f9   :  { %7773 = vmatmul.msk.f32.vlgmr.msrb.gmra.mxu3 %vm278_vm0, %v7927_v53  ;;  %v4059_v53 = vpop.f32.mrf.mxu1 }
 0x5fa   :  { %4693 = vmatpush.msra.mxu3 %v4617_v61  ;;  %v4607_v60 = vpop.permute.xlu0 %4606 }
 0x5fb   :  { %v4709_v40 = vpop.permute.xlu1 %4708  ;;  %v4610_v26 = vsel %vm890_vm2, %v4607_v60, %v4609_v23  ;;  %v4611_v7 = vsel %vm890_vm2, %v4605_v46, %v4607_v60  ;;  %v4039_v23 = vpop.f32.mrf.mxu0 }
 0x5fc   :  { %v4713_v42 = vsel %vm994_vm7, %v4709_v40, %v4703_v20  ;;  %v4615_v38 = vmul.f32 %v10104_v25, %v4611_v7  ;;  %v4616_v54 = vmul.f32 %v8264_v17, %v4610_v26  ;;  %v4710_v22 = vsel %vm994_vm7, %v4707_v52, %v4709_v40 }
 0x5fd   :  { %v4717_v62 = vmul.f32 %v8373_v16, %v4713_v42 }
 0x5fe   :  { %4653 = vmatpush.msra.mxu1 %v4615_v38  ;;  %4673 = vmatpush.msra.mxu2 %v4616_v54 }
 0x5ff   :  { %4793 = vmatpush.msrb.mxu3 %v4717_v62  ;;  %7775 = vmatmul.msk.f32.vlgmr.msra.gmra.mxu1 %vm278_vm0, %v7928_v5 }
 0x600   :  { %7774 = vmatmul.msk.f32.vlgmr.msra.gmra.mxu0 %vm278_vm0, %v7928_v5  ;;  %7776 = vmatmul.msk.f32.vlgmr.msra.gmra.mxu2 %vm278_vm0, %v7928_v5 }
 0x601   :  { %7777 = vmatmul.msk.f32.vlgmr.msra.gmra.mxu3 %vm278_vm0, %v7928_v5  ;;  %4773 = vmatpush.msrb.mxu2 %v4710_v22 }
 0x602   :  { %v4705_v59 = vpop.permute.xlu0 %4704 }
 0x603   :  { %v4803_v43 = vpop.permute.xlu1 %4802  ;;  %v4711_v27 = vsel %vm994_vm7, %v4705_v59, %v4707_v52  ;;  %v4712_v47 = vsel %vm994_vm7, %v4703_v20, %v4705_v59 }
 0x604   :  { %v4715_v18 = vmul.f32 %v10105_v39, %v4711_v27  ;;  %4733 = vmatpush.msrb.mxu0 %v4712_v47 }
 0x606   :  { %4753 = vmatpush.msrb.mxu1 %v4715_v18 }
 0x607   :  { %7779 = vmatmul.msk.f32.vlgmr.msrb.gmra.mxu1 %vm278_vm0, %v7929_v14 }
 0x608   :  { %7778 = vmatmul.msk.f32.vlgmr.msrb.gmra.mxu0 %vm278_vm0, %v7929_v14  ;;  %7780 = vmatmul.msk.f32.vlgmr.msrb.gmra.mxu2 %vm278_vm0, %v7929_v14 }
 0x609   :  { %7781 = vmatmul.msk.f32.vlgmr.msrb.gmra.mxu3 %vm278_vm0, %v7929_v14 }
 0x60a   :  { %v4809_v29 = vpop.permute.xlu0 %4808 }
 0x60b   :  { %v4805_v56 = vpop.permute.xlu1 %4804  ;;  %v4810_v44 = vsel %vm10131_vm13, %v4807_v55, %v4809_v29  ;;  %v4813_v20 = vsel %vm10109_vm4, %v4809_v29, %v4803_v43  ;;  %vm10156_vm13 = vmmov %vm10109_vm4 }
 0x60c   :  { %v4811_v3 = vsel %vm10128_vm12, %v4805_v56, %v4807_v55  ;;  %v4812_v9 = vsel %vm10129_vm6, %v4803_v43, %v4805_v56  ;;  %v4816_v15 = vmul.f32 %v8302_v45, %v4810_v44  ;;  %v4817_v10 = vmul.f32 %v10132_v19, %v4813_v20  ;;  %v10133_v55 = vld [vmem:[#allocation12_spill] sm:$0xff]  ;;  %vm10152_vm12 = vmmov %vm10109_vm4 }
 0x60d   :  { %v4814_v46 = vmul.f32 %v8307_v13, %v4812_v9  ;;  %v4815_v12 = vmul.f32 %v10130_v6, %v4811_v3  ;;  %v4040_v56 = vadd.f32 %v4039_v23, %v10133_v55  ;;  %v4060_v3 = vadd.f32 %v4059_v53, %v10133_v55  ;;  %vm10153_vm6 = vmmov %vm10109_vm4 }
 0x60e   :  { %4873 = vmatpush.msra.mxu2 %v4816_v15  ;;  %4893 = vmatpush.msra.mxu3 %v4817_v10  ;;  %v4100_v36 = vadd.f32 %v4099_v51, %v10133_v55 }
 0x60f   :  { %4833 = vmatpush.msra.mxu0 %v4814_v46  ;;  %4853 = vmatpush.msra.mxu1 %v4815_v12 }
 0x610   :  { %7782 = vmatmul.msk.f32.vlgmr.msra.gmra.mxu0 %vm278_vm0, %v7930_v49  ;;  %7783 = vmatmul.msk.f32.vlgmr.msra.gmra.mxu1 %vm278_vm0, %v7930_v49 }
 0x611   :  { %7784 = vmatmul.msk.f32.vlgmr.msra.gmra.mxu2 %vm278_vm0, %v7930_v49  ;;  %7785 = vmatmul.msk.f32.vlgmr.msra.gmra.mxu3 %vm278_vm0, %v7930_v49  ;;  %v4080_v49 = vadd.f32 %v4079_v4, %v10133_v55 }
 0x64d   :  { %v4155_v30 = vpop.f32.mrf.mxu1  ;;  %v4135_v11 = vpop.f32.mrf.mxu0 }
 0x64e   :  { %v4198_v9 = vadd.f32 %v4135_v11, %v4040_v56  ;;  %v4199_v29 = vadd.f32 %v4155_v30, %v4060_v3 }
 0x654   :  { %v4175_v21 = vpop.f32.mrf.mxu2  ;;  %v4195_v61 = vpop.f32.mrf.mxu3 }
 0x655   :  { %v4255_v24 = vpop.f32.mrf.mxu1  ;;  %v4200_v6 = vadd.f32 %v4175_v21, %v4080_v49  ;;  %v4201_v23 = vadd.f32 %v4195_v61, %v4100_v36 }
 0x656   :  { %v4299_v46 = vadd.f32 %v4255_v24, %v4199_v29 }
 0x65c   :  { %v4235_v40 = vpop.f32.mrf.mxu0  ;;  %v4275_v60 = vpop.f32.mrf.mxu2 }
 0x65d   :  { %v4355_v42 = vpop.f32.mrf.mxu1  ;;  %v4298_v12 = vadd.f32 %v4235_v40, %v4198_v9  ;;  %v4300_v11 = vadd.f32 %v4275_v60, %v4200_v6 }
 0x65e   :  { %v4399_v44 = vadd.f32 %v4355_v42, %v4299_v46 }
 0x660   :  { %v4295_v62 = vpop.f32.mrf.mxu3 }
 0x661   :  { %v4301_v30 = vadd.f32 %v4295_v62, %v4201_v23  ;;  %v7931_v62 = vld [vmem:[%s10032_s7 + $0x20] sm:$0xff] }
 0x664   :  { %v4335_v26 = vpop.f32.mrf.mxu0 }
 0x665   :  { %v4455_v7 = vpop.f32.mrf.mxu1  ;;  %v4398_v20 = vadd.f32 %v4335_v26, %v4298_v12 }
 0x666   :  { %v4499_v58 = vadd.f32 %v4455_v7, %v4399_v44 }
 0x66a   :  { %v4375_v38 = vpop.f32.mrf.mxu2 }
 0x66b   :  { %v4395_v54 = vpop.f32.mrf.mxu3  ;;  %v4400_v42 = vadd.f32 %v4375_v38, %v4300_v11 }
 0x66c   :  { %v4401_v26 = vadd.f32 %v4395_v54, %v4301_v30 }
 0x66d   :  { %v4435_v52 = vpop.f32.mrf.mxu0 }
 0x66e   :  { %v4555_v43 = vpop.f32.mrf.mxu1  ;;  %v4498_v37 = vadd.f32 %v4435_v52, %v4398_v20 }
 0x66f   :  { %v4599_v19 = vadd.f32 %v4555_v43, %v4499_v58 }
 0x673   :  { %v4475_v5 = vpop.f32.mrf.mxu2 }
 0x674   :  { %v4495_v22 = vpop.f32.mrf.mxu3  ;;  %v4500_v29 = vadd.f32 %v4475_v5, %v4400_v42  ;;  %v7933_v42 = vld [vmem:[%s10032_s7 + $0x8] sm:$0xff] }
 0x675   :  { %v4535_v59 = vpop.f32.mrf.mxu0  ;;  %v4501_v51 = vadd.f32 %v4495_v22, %v4401_v26 }
 0x676   :  { %v4598_v53 = vadd.f32 %v4535_v59, %v4498_v37 }
 0x67b   :  { %v4575_v27 = vpop.f32.mrf.mxu2 }
 0x67c   :  { %v4595_v47 = vpop.f32.mrf.mxu3  ;;  %v4655_v14 = vpop.f32.mrf.mxu1  ;;  %v4600_v21 = vadd.f32 %v4575_v27, %v4500_v29 }
 0x67d   :  { %v4635_v18 = vpop.f32.mrf.mxu0  ;;  %v4699_v40 = vadd.f32 %v4655_v14, %v4599_v19  ;;  %v4601_v36 = vadd.f32 %v4595_v47, %v4501_v51  ;;  %v7932_v14 = vld [vmem:[%s10032_s7] sm:$0xff] }
 0x67e   :  { %v4698_v24 = vadd.f32 %v4635_v18, %v4598_v53 }
 0x683   :  { %v4675_v15 = vpop.f32.mrf.mxu2 }
 0x684   :  { %v4695_v10 = vpop.f32.mrf.mxu3  ;;  %v4755_v41 = vpop.f32.mrf.mxu1  ;;  %v4700_v6 = vadd.f32 %v4675_v15, %v4600_v21 }
 0x685   :  { %v4735_v57 = vpop.f32.mrf.mxu0  ;;  %v4799_v3 = vadd.f32 %v4755_v41, %v4699_v40  ;;  %v4701_v61 = vadd.f32 %v4695_v10, %v4601_v36 }
 0x686   :  { %v4798_v56 = vadd.f32 %v4735_v57, %v4698_v24 }
 0x68b   :  { %v4775_v9 = vpop.f32.mrf.mxu2 }
 0x68c   :  { %v4795_v4 = vpop.f32.mrf.mxu3  ;;  %v4800_v57 = vadd.f32 %v4775_v9, %v4700_v6 }
 0x68d   :  { %v4835_v46 = vpop.f32.mrf.mxu0  ;;  %v4855_v12 = vpop.f32.mrf.mxu1  ;;  %v4801_v41 = vadd.f32 %v4795_v4, %v4701_v61 }
 0x68e   :  { %v4898_v7 = vadd.f32 %v4835_v46, %v4798_v56  ;;  %v4899_v52 = vadd.f32 %v4855_v12, %v4799_v3 }
 0x690   :  { %v4902_v58 = vmax.f32 %v4898_v7, 0.0  ;;  %v4903_v37 = vmax.f32 %v4899_v52, 0.0  ;;  %v7934_v52 = vld [vmem:[%s10032_s7 + $0x10] sm:$0xff] }
 0x692   :  { %5188 = vrot.lane.b32.xlu1 %v4903_v37, %s7960_s19  ;;  %5088 = vrot.lane.b32.xlu0 %v4903_v37, %s7959_s18 }
 0x693   :  { %4988 = vrot.lane.b32.xlu2 %v4903_v37, %s7958_s13  ;;  %4921 = vmatpush.msrb.mxu0 %v4902_v58 }
 0x694   :  { %4941 = vmatpush.msrb.mxu1 %v4903_v37  ;;  %v4875_v19 = vpop.f32.mrf.mxu2  ;;  %v4895_v60 = vpop.f32.mrf.mxu3  ;;  %7786 = vmatmul.msk.f32.vlgmr.msrb.gmra.mxu0 %vm278_vm0, %v7931_v62 }
 0x695   :  { %v4900_v38 = vadd.f32 %v4875_v19, %v4800_v57  ;;  %v4901_v54 = vadd.f32 %v4895_v60, %v4801_v41  ;;  %7787 = vmatmul.msk.f32.vlgmr.msrb.gmra.mxu1 %vm278_vm0, %v7931_v62  ;;  %v7935_v41 = vld [vmem:[%s10032_s7 + $0x18] sm:$0xff] }
 0x697   :  { %v4904_v5 = vmax.f32 %v4900_v38, 0.0  ;;  %v4905_v22 = vmax.f32 %v4901_v54, 0.0 }
 0x699   :  { %4961 = vmatpush.msrb.mxu2 %v4904_v5  ;;  %4981 = vmatpush.msrb.mxu3 %v4905_v22 }
 0x69a   :  { %7788 = vmatmul.msk.f32.vlgmr.msrb.gmra.mxu2 %vm278_vm0, %v7931_v62  ;;  %7789 = vmatmul.msk.f32.vlgmr.msrb.gmra.mxu3 %vm278_vm0, %v7931_v62 }
 0x69b   :  { %5288 = vrot.lane.b32.xlu2 %v4903_v37, %s7961_s0  ;;  %5186 = vrot.lane.b32.xlu1 %v4902_v58, %s7960_s19 }
 0x69c   :  { %5086 = vrot.lane.b32.xlu0 %v4902_v58, %s7959_s18 }
 0x6a3   :  { %4992 = vrot.lane.b32.xlu1 %v4905_v22, %s7958_s13  ;;  %4986 = vrot.lane.b32.xlu2 %v4902_v58, %s7958_s13 }
 0x6a4   :  { %4990 = vrot.lane.b32.xlu0 %v4904_v5, %s7958_s13 }
 0x6ab   :  { %5090 = vrot.lane.b32.xlu1 %v4904_v5, %s7959_s18  ;;  %5286 = vrot.lane.b32.xlu2 %v4902_v58, %s7961_s0 }
 0x6ac   :  { %5386 = vrot.lane.b32.xlu0 %v4902_v58, %s7962_s20 }
 0x6b3   :  { %5486 = vrot.lane.b32.xlu1 %v4902_v58, %s7963_s21  ;;  %5092 = vrot.lane.b32.xlu2 %v4905_v22, %s7959_s18 }
 0x6b4   :  { %5192 = vrot.lane.b32.xlu0 %v4905_v22, %s7960_s19 }
 0x6bb   :  { %5292 = vrot.lane.b32.xlu1 %v4905_v22, %s7961_s0  ;;  %5190 = vrot.lane.b32.xlu2 %v4904_v5, %s7960_s19 }
 0x6bc   :  { %5290 = vrot.lane.b32.xlu0 %v4904_v5, %s7961_s0 }
 0x6c3   :  { %5390 = vrot.lane.b32.xlu1 %v4904_v5, %s7962_s20  ;;  %5586 = vrot.lane.b32.xlu2 %v4902_v58, %s7964_s22 }
 0x6c4   :  { %5388 = vrot.lane.b32.xlu0 %v4903_v37, %s7962_s20 }
 0x6cb   :  { %5488 = vrot.lane.b32.xlu1 %v4903_v37, %s7963_s21  ;;  %5392 = vrot.lane.b32.xlu2 %v4905_v22, %s7962_s20 }
 0x6cc   :  { %5492 = vrot.lane.b32.xlu0 %v4905_v22, %s7963_s21 }
 0x6d3   :  { %5590 = vrot.lane.b32.xlu1 %v4904_v5, %s7964_s22  ;;  %5490 = vrot.lane.b32.xlu2 %v4904_v5, %s7963_s21 }
 0x6d4   :  { %5592 = vrot.lane.b32.xlu0 %v4905_v22, %s7964_s22 }
 0x6db   :  { %5690 = vrot.lane.b32.xlu1 %v4904_v5, %s7965_s23  ;;  %5588 = vrot.lane.b32.xlu2 %v4903_v37, %s7964_s22 }
 0x6dc   :  { %5686 = vrot.lane.b32.xlu0 %v4902_v58, %s7965_s23 }
 0x6e3   :  { %5692 = vrot.lane.b32.xlu2 %v4905_v22, %s7965_s23 }
 0x6e4   :  { %5688 = vrot.lane.b32.xlu0 %v4903_v37, %s7965_s23 }
 0x6ed   :  { %v4989_v43 = vpop.permute.xlu2 %4988 }
 0x6f5   :  { %v9391_v59 = vpop.permute.xlu2 %5288 }
 0x6fd   :  { %v4987_v27 = vpop.permute.xlu2 %4986 }
 0x6fe   :  { %v4996_v47 = vsel %vm370_vm10, %v4987_v27, %v4989_v43 }
 0x6ff   :  { %v4999_v18 = vmul.f32 %v8141_v32, %v4996_v47 }
 0x701   :  { %5037 = vmatpush.msra.mxu1 %v4999_v18 }
 0x702   :  { %7791 = vmatmul.msk.f32.vlgmr.msra.gmra.mxu1 %vm278_vm0, %v7932_v14 }
 0x704   :  { %v5189_v44 = vpop.permute.xlu1 %5188  ;;  %v5089_v20 = vpop.permute.xlu0 %5088 }
 0x705   :  { %v9400_v15 = vpop.permute.xlu2 %5286 }
 0x706   :  { %v5296_v49 = vsel %vm682_vm1, %v9400_v15, %v9391_v59 }
 0x707   :  { %v5299_v40 = vmul.f32 %v8141_v32, %v5296_v49 }
 0x70d   :  { %v5187_v10 = vpop.permute.xlu1 %5186  ;;  %v5093_v24 = vpop.permute.xlu2 %5092 }
 0x70e   :  { %v5196_v23 = vsel %vm578_vm11, %v5187_v10, %v5189_v44  ;;  %v5087_v53 = vpop.permute.xlu0 %5086 }
 0x70f   :  { %v5199_v11 = vmul.f32 %v8175_v48, %v5196_v23  ;;  %v5096_v30 = vsel %vm474_vm5, %v5087_v53, %v5089_v20  ;;  %v5097_v9 = vsel %vm474_vm5, %v5093_v24, %v5087_v53 }
 0x710   :  { %5137 = vmatpush.msrb.mxu1 %v5096_v30  ;;  %v5098_v21 = vmul.f32 %v8186_v50, %v5097_v9  ;;  %v7936_v9 = vld [vmem:[%s10032_s7 + $0x28] sm:$0xff] }
 0x711   :  { %7795 = vmatmul.msk.f32.vlgmr.msrb.gmra.mxu1 %vm278_vm0, %v7933_v42 }
 0x712   :  { %5237 = vmatpush.msra.mxu1 %v5199_v11 }
 0x714   :  { %5337 = vmatpush.msrb.mxu1 %v5299_v40 }
 0x715   :  { %v4993_v26 = vpop.permute.xlu1 %4992  ;;  %v5191_v7 = vpop.permute.xlu2 %5190 }
 0x716   :  { %v4997_v56 = vsel %vm370_vm10, %v4993_v26, %v4987_v27  ;;  %v4991_v3 = vpop.permute.xlu0 %4990  ;;  %v5195_v37 = vsel %vm578_vm11, %v5189_v44, %v5191_v7 }
 0x717   :  { %v4998_v4 = vmul.f32 %v8136_v31, %v4997_v56  ;;  %v4994_v29 = vsel %vm370_vm10, %v4991_v3, %v4993_v26  ;;  %v4995_v51 = vsel %vm370_vm10, %v4989_v43, %v4991_v3  ;;  %v5200_v19 = vmul.f32 %v8230_v63, %v5195_v37 }
 0x718   :  { %v5000_v46 = vmul.f32 %v8144_v33, %v4995_v51  ;;  %v5001_v12 = vmul.f32 %v8149_v34, %v4994_v29 }
 0x719   :  { %7799 = vmatmul.msk.f32.vlgmr.msra.gmra.mxu1 %vm278_vm0, %v7934_v52  ;;  %5017 = vmatpush.msra.mxu0 %v4998_v4 }
 0x71a   :  { %5057 = vmatpush.msra.mxu2 %v5000_v46  ;;  %5077 = vmatpush.msra.mxu3 %v5001_v12 }
 0x71b   :  { %7790 = vmatmul.msk.f32.vlgmr.msra.gmra.mxu0 %vm278_vm0, %v7932_v14  ;;  %7792 = vmatmul.msk.f32.vlgmr.msra.gmra.mxu2 %vm278_vm0, %v7932_v14 }
 0x71c   :  { %7793 = vmatmul.msk.f32.vlgmr.msra.gmra.mxu3 %vm278_vm0, %v7932_v14  ;;  %5117 = vmatpush.msrb.mxu0 %v5098_v21 }
 0x71d   :  { %v5091_v36 = vpop.permute.xlu1 %5090  ;;  %v9447_v60 = vpop.permute.xlu2 %5586 }
 0x71e   :  { %v5387_v58 = vpop.permute.xlu0 %5386  ;;  %v5094_v6 = vsel %vm474_vm5, %v5091_v36, %v5093_v24  ;;  %v5095_v61 = vsel %vm474_vm5, %v5089_v20, %v5091_v36 }
 0x71f   :  { %v5100_v57 = vmul.f32 %v8126_v28, %v5095_v61  ;;  %5177 = vmatpush.msrb.mxu3 %v5094_v6  ;;  %v7937_v6 = vld [vmem:[%s10032_s7 + $0x30] sm:$0xff] }
 0x721   :  { %7803 = vmatmul.msk.f32.vlgmr.msrb.gmra.mxu1 %vm278_vm0, %v7935_v41  ;;  %5157 = vmatpush.msrb.mxu2 %v5100_v57 }
 0x723   :  { %7794 = vmatmul.msk.f32.vlgmr.msrb.gmra.mxu0 %vm278_vm0, %v7933_v42  ;;  %7796 = vmatmul.msk.f32.vlgmr.msrb.gmra.mxu2 %vm278_vm0, %v7933_v42 }
 0x724   :  { %7797 = vmatmul.msk.f32.vlgmr.msrb.gmra.mxu3 %vm278_vm0, %v7933_v42  ;;  %5257 = vmatpush.msra.mxu2 %v5200_v19 }
 0x725   :  { %v5487_v62 = vpop.permute.xlu1 %5486  ;;  %v5393_v27 = vpop.permute.xlu2 %5392 }
 0x726   :  { %v5193_v38 = vpop.permute.xlu0 %5192 }
 0x727   :  { %v5194_v54 = vsel %vm578_vm11, %v5191_v7, %v5193_v38  ;;  %v5197_v5 = vsel %vm578_vm11, %v5193_v38, %v5187_v10  ;;  %v5397_v10 = vsel %vm786_vm3, %v5393_v27, %v5387_v58 }
 0x728   :  { %v5198_v22 = vmul.f32 %v8233_v0, %v5197_v5  ;;  %v5201_v43 = vmul.f32 %v8238_v1, %v5194_v54 }
 0x72a   :  { %5217 = vmatpush.msra.mxu0 %v5198_v22  ;;  %5277 = vmatpush.msra.mxu3 %v5201_v43  ;;  %v7938_v22 = vld [vmem:[%s10032_s7 + $0x38] sm:$0xff] }
 0x72b   :  { %7798 = vmatmul.msk.f32.vlgmr.msra.gmra.mxu0 %vm278_vm0, %v7934_v52  ;;  %7800 = vmatmul.msk.f32.vlgmr.msra.gmra.mxu2 %vm278_vm0, %v7934_v52 }
 0x72c   :  { %7801 = vmatmul.msk.f32.vlgmr.msra.gmra.mxu3 %vm278_vm0, %v7934_v52 }
 0x72d   :  { %v5293_v47 = vpop.permute.xlu1 %5292  ;;  %v5491_v42 = vpop.permute.xlu2 %5490 }
 0x72e   :  { %v5291_v18 = vpop.permute.xlu0 %5290  ;;  %v5297_v14 = vsel %vm682_vm1, %v5293_v47, %v9400_v15  ;;  %v5401_v15 = vmul.f32 %v8238_v1, %v5397_v10  ;;  %v7939_v10 = vld [vmem:[%s10032_s7 + $0x40] sm:$0xff] }
 0x72f   :  { %v5294_v44 = vsel %vm682_vm1, %v5291_v18, %v5293_v47  ;;  %v5295_v20 = vsel %vm682_vm1, %v9391_v59, %v5291_v18  ;;  %v5298_v49 = vmul.f32 %v8282_v35, %v5297_v14 }
 0x730   :  { %v5300_v23 = vmul.f32 %v8264_v17, %v5295_v20  ;;  %v5301_v53 = vmul.f32 %v8149_v34, %v5294_v44  ;;  %v10136_v44 = vld [vmem:[#allocation6_spill] sm:$0xff] }
 0x731   :  { %5317 = vmatpush.msrb.mxu0 %v5298_v49 }
 0x732   :  { %5357 = vmatpush.msrb.mxu2 %v5300_v23  ;;  %5377 = vmatpush.msrb.mxu3 %v5301_v53 }
 0x733   :  { %7802 = vmatmul.msk.f32.vlgmr.msrb.gmra.mxu0 %vm278_vm0, %v7935_v41  ;;  %7804 = vmatmul.msk.f32.vlgmr.msrb.gmra.mxu2 %vm278_vm0, %v7935_v41 }
 0x734   :  { %7805 = vmatmul.msk.f32.vlgmr.msrb.gmra.mxu3 %vm278_vm0, %v7935_v41 }
 0x735   :  { %5477 = vmatpush.msra.mxu3 %v5401_v15  ;;  %v5391_v59 = vpop.permute.xlu1 %5390  ;;  %v5589_v37 = vpop.permute.xlu2 %5588 }
 0x736   :  { %v5389_v11 = vpop.permute.xlu0 %5388  ;;  %v5394_v30 = vsel %vm786_vm3, %v5391_v59, %v5393_v27  ;;  %v5596_v61 = vsel %vm994_vm7, %v9447_v60, %v5589_v37 }
 0x737   :  { %v5395_v24 = vsel %vm786_vm3, %v5389_v11, %v5391_v59  ;;  %v5396_v40 = vsel %vm786_vm3, %v5387_v58, %v5389_v11  ;;  %v5400_v26 = vmul.f32 %v8302_v45, %v5394_v30  ;;  %v10139_v59 = vld [vmem:[#allocation7_spill] sm:$0xff]  ;;  %v4923_v30 = vpop.f32.mrf.mxu0 }
 0x738   :  { %v5398_v56 = vmul.f32 %v8307_v13, %v5396_v40  ;;  %v5399_v3 = vmul.f32 %v8175_v48, %v5395_v24  ;;  %v4943_v24 = vpop.f32.mrf.mxu1  ;;  %v4963_v40 = vpop.f32.mrf.mxu2 }
 0x739   :  { %5457 = vmatpush.msra.mxu2 %v5400_v26 }
 0x73a   :  { %5417 = vmatpush.msra.mxu0 %v5398_v56  ;;  %5437 = vmatpush.msra.mxu1 %v5399_v3 }
 0x73b   :  { %7806 = vmatmul.msk.f32.vlgmr.msra.gmra.mxu0 %vm278_vm0, %v7936_v9  ;;  %7807 = vmatmul.msk.f32.vlgmr.msra.gmra.mxu1 %vm278_vm0, %v7936_v9 }
 0x73c   :  { %7808 = vmatmul.msk.f32.vlgmr.msra.gmra.mxu2 %vm278_vm0, %v7936_v9  ;;  %7809 = vmatmul.msk.f32.vlgmr.msra.gmra.mxu3 %vm278_vm0, %v7936_v9 }
 0x73d   :  { %v5489_v4 = vpop.permute.xlu1 %5488  ;;  %v5693_v43 = vpop.permute.xlu2 %5692 }
 0x73e   :  { %v5493_v29 = vpop.permute.xlu0 %5492  ;;  %v5495_v51 = vsel %vm890_vm2, %v5489_v4, %v5491_v42  ;;  %v5496_v46 = vsel %vm890_vm2, %v5487_v62, %v5489_v4 }
 0x73f   :  { %v5494_v12 = vsel %vm890_vm2, %v5491_v42, %v5493_v29  ;;  %v5497_v7 = vsel %vm890_vm2, %v5493_v29, %v5487_v62  ;;  %v5498_v52 = vmul.f32 %v8282_v35, %v5496_v46  ;;  %v5499_v21 = vmul.f32 %v10104_v25, %v5495_v51  ;;  %v4983_v42 = vpop.f32.mrf.mxu3 }
 0x740   :  { %v5500_v36 = vmul.f32 %v8264_v17, %v5494_v12  ;;  %v5501_v58 = vmul.f32 %v8351_v2, %v5497_v7 }
 0x741   :  { %5517 = vmatpush.msrb.mxu0 %v5498_v52  ;;  %5537 = vmatpush.msrb.mxu1 %v5499_v21 }
 0x742   :  { %5557 = vmatpush.msrb.mxu2 %v5500_v36  ;;  %5577 = vmatpush.msrb.mxu3 %v5501_v58 }
 0x743   :  { %7810 = vmatmul.msk.f32.vlgmr.msrb.gmra.mxu0 %vm278_vm0, %v7937_v6  ;;  %7811 = vmatmul.msk.f32.vlgmr.msrb.gmra.mxu1 %vm278_vm0, %v7937_v6 }
 0x744   :  { %7812 = vmatmul.msk.f32.vlgmr.msrb.gmra.mxu2 %vm278_vm0, %v7937_v6  ;;  %7813 = vmatmul.msk.f32.vlgmr.msrb.gmra.mxu3 %vm278_vm0, %v7937_v6 }
 0x745   :  { %5617 = vmatpush.msra.mxu0 %v5596_v61  ;;  %v5591_v57 = vpop.permute.xlu1 %5590 }
 0x746   :  { %v5593_v41 = vpop.permute.xlu0 %5592  ;;  %v5595_v19 = vsel %vm994_vm7, %v5589_v37, %v5591_v57 }
 0x747   :  { %v5594_v62 = vsel %vm994_vm7, %v5591_v57, %v5593_v41  ;;  %v5597_v38 = vsel %vm994_vm7, %v5593_v41, %v9447_v60  ;;  %v5599_v54 = vmul.f32 %v10105_v39, %v5595_v19 }
 0x748   :  { %v5601_v5 = vmul.f32 %v8373_v16, %v5597_v38  ;;  %5657 = vmatpush.msra.mxu2 %v5594_v62 }
 0x749   :  { %5637 = vmatpush.msra.mxu1 %v5599_v54 }
 0x74a   :  { %5677 = vmatpush.msra.mxu3 %v5601_v5 }
 0x74b   :  { %7814 = vmatmul.msk.f32.vlgmr.msra.gmra.mxu0 %vm278_vm0, %v7938_v22  ;;  %7815 = vmatmul.msk.f32.vlgmr.msra.gmra.mxu1 %vm278_vm0, %v7938_v22 }
 0x74c   :  { %7816 = vmatmul.msk.f32.vlgmr.msra.gmra.mxu2 %vm278_vm0, %v7938_v22  ;;  %7817 = vmatmul.msk.f32.vlgmr.msra.gmra.mxu3 %vm278_vm0, %v7938_v22  ;;  %v10140_v22 = vld [vmem:[#allocation13_spill] sm:$0xff] }
 0x74d   :  { %v5691_v60 = vpop.permute.xlu1 %5690 }
 0x74e   :  { %v5687_v27 = vpop.permute.xlu0 %5686  ;;  %v5694_v47 = vsel %vm10134_vm15, %v5691_v60, %v5693_v43 }
 0x74f   :  { %v5697_v18 = vsel %vm10135_vm14, %v5693_v43, %v5687_v27  ;;  %v5700_v14 = vmul.f32 %v8302_v45, %v5694_v47  ;;  %v4964_v43 = vadd.f32 %v4963_v40, %v10140_v22  ;;  %v4944_v47 = vadd.f32 %v4943_v24, %v10140_v22 }
 0x750   :  { %v5701_v20 = vmul.f32 %v10136_v44, %v5697_v18 }
 0x751   :  { %5757 = vmatpush.msrb.mxu2 %v5700_v14 }
 0x752   :  { %5777 = vmatpush.msrb.mxu3 %v5701_v20 }
 0x754   :  { %7820 = vmatmul.msk.f32.vlgmr.msrb.gmra.mxu2 %vm278_vm0, %v7939_v10  ;;  %7821 = vmatmul.msk.f32.vlgmr.msrb.gmra.mxu3 %vm278_vm0, %v7939_v10 }
 0x756   :  { %v5689_v49 = vpop.permute.xlu0 %5688 }
 0x757   :  { %v5695_v23 = vsel %vm10137_vm9, %v5689_v49, %v5691_v60  ;;  %v5696_v53 = vsel %vm10138_vm8, %v5687_v27, %v5689_v49  ;;  %v4984_v60 = vadd.f32 %v4983_v42, %v10140_v22  ;;  %v4924_v27 = vadd.f32 %v4923_v30, %v10140_v22 }
 0x758   :  { %v5698_v15 = vmul.f32 %v8307_v13, %v5696_v53  ;;  %v5699_v11 = vmul.f32 %v10139_v59, %v5695_v23 }
 0x75a   :  { %5717 = vmatpush.msrb.mxu0 %v5698_v15  ;;  %5737 = vmatpush.msrb.mxu1 %v5699_v11 }
 0x75b   :  { %7818 = vmatmul.msk.f32.vlgmr.msrb.gmra.mxu0 %vm278_vm0, %v7939_v10  ;;  %7819 = vmatmul.msk.f32.vlgmr.msrb.gmra.mxu1 %vm278_vm0, %v7939_v10 }
 0x77f   :  { %v5039_v56 = vpop.f32.mrf.mxu1 }
 0x780   :  { %v5083_v20 = vadd.f32 %v5039_v56, %v4944_v47 }
 0x78e   :  { %v5139_v29 = vpop.f32.mrf.mxu1 }
 0x78f   :  { %v5183_v53 = vadd.f32 %v5139_v29, %v5083_v20 }
 0x796   :  { %v5239_v7 = vpop.f32.mrf.mxu1 }
 0x797   :  { %v5283_v44 = vadd.f32 %v5239_v7, %v5183_v53  ;;  %v7941_v53 = vld [vmem:[%s10030_s5] sm:$0xff] }
 0x798   :  { %v5019_v26 = vpop.f32.mrf.mxu0 }
 0x799   :  { %v5082_v10 = vadd.f32 %v5019_v26, %v4924_v27 }
 0x79e   :  { %v5059_v3 = vpop.f32.mrf.mxu2  ;;  %v5339_v58 = vpop.f32.mrf.mxu1 }
 0x79f   :  { %v5079_v9 = vpop.f32.mrf.mxu3  ;;  %v5084_v18 = vadd.f32 %v5059_v3, %v4964_v43  ;;  %v5383_v2 = vadd.f32 %v5339_v58, %v5283_v44 }
 0x7a0   :  { %v5119_v4 = vpop.f32.mrf.mxu0  ;;  %v5085_v14 = vadd.f32 %v5079_v9, %v4984_v60 }
 0x7a1   :  { %v5182_v15 = vadd.f32 %v5119_v4, %v5082_v10 }
 0x7a6   :  { %v5159_v51 = vpop.f32.mrf.mxu2 }
 0x7a7   :  { %v5179_v46 = vpop.f32.mrf.mxu3  ;;  %v5184_v49 = vadd.f32 %v5159_v51, %v5084_v18 }
 0x7a8   :  { %v5219_v12 = vpop.f32.mrf.mxu0  ;;  %v5185_v23 = vadd.f32 %v5179_v46, %v5085_v14 }
 0x7a9   :  { %v5282_v59 = vadd.f32 %v5219_v12, %v5182_v15 }
 0x7ae   :  { %v5259_v52 = vpop.f32.mrf.mxu2 }
 0x7af   :  { %v5279_v21 = vpop.f32.mrf.mxu3  ;;  %v5284_v11 = vadd.f32 %v5259_v52, %v5184_v49 }
 0x7b0   :  { %v5319_v36 = vpop.f32.mrf.mxu0  ;;  %v5285_v55 = vadd.f32 %v5279_v21, %v5185_v23 }
 0x7b1   :  { %v5382_v24 = vadd.f32 %v5319_v36, %v5282_v59 }
 0x7b6   :  { %v5359_v37 = vpop.f32.mrf.mxu2 }
 0x7b7   :  { %v5379_v6 = vpop.f32.mrf.mxu3  ;;  %v5384_v25 = vadd.f32 %v5359_v37, %v5284_v11 }
 0x7b8   :  { %v5419_v61 = vpop.f32.mrf.mxu0  ;;  %v5439_v57 = vpop.f32.mrf.mxu1  ;;  %v5385_v42 = vadd.f32 %v5379_v6, %v5285_v55 }
 0x7b9   :  { %v5482_v56 = vadd.f32 %v5419_v61, %v5382_v24  ;;  %v5483_v26 = vadd.f32 %v5439_v57, %v5383_v2  ;;  %v10141_v61 = vld [vmem:[#allocation10_spill] sm:$0xff] }
 0x7bf   :  { %v5459_v41 = vpop.f32.mrf.mxu2  ;;  %v5479_v19 = vpop.f32.mrf.mxu3 }
 0x7c0   :  { %v5519_v62 = vpop.f32.mrf.mxu0  ;;  %v5539_v38 = vpop.f32.mrf.mxu1  ;;  %v5484_v3 = vadd.f32 %v5459_v41, %v5384_v25  ;;  %v5485_v9 = vadd.f32 %v5479_v19, %v5385_v42  ;;  %v10143_v41 = vld [vmem:[#allocation11_spill] sm:$0xff] }
 0x7c1   :  { %v5582_v29 = vadd.f32 %v5519_v62, %v5482_v56  ;;  %v5583_v4 = vadd.f32 %v5539_v38, %v5483_v26  ;;  %v10147_v62 = vld [vmem:[#allocation9_spill] sm:$0xff] }
 0x7c7   :  { %v5559_v54 = vpop.f32.mrf.mxu2  ;;  %v5579_v5 = vpop.f32.mrf.mxu3 }
 0x7c8   :  { %v5619_v16 = vpop.f32.mrf.mxu0  ;;  %v5639_v30 = vpop.f32.mrf.mxu1  ;;  %v5584_v51 = vadd.f32 %v5559_v54, %v5484_v3  ;;  %v5585_v46 = vadd.f32 %v5579_v5, %v5485_v9  ;;  %v7940_v54 = vld [vmem:[%s10030_s5 + $0x20] sm:$0xff] }
 0x7c9   :  { %v5682_v7 = vadd.f32 %v5619_v16, %v5582_v29  ;;  %v5683_v12 = vadd.f32 %v5639_v30, %v5583_v4  ;;  %v10145_v16 = vld [vmem:[#allocation8_spill] sm:$0xff] }
 0x7cf   :  { %v5659_v39 = vpop.f32.mrf.mxu2  ;;  %v5679_v40 = vpop.f32.mrf.mxu3 }
 0x7d0   :  { %v5684_v52 = vadd.f32 %v5659_v39, %v5584_v51  ;;  %v5685_v21 = vadd.f32 %v5679_v40, %v5585_v46 }
 0x7d7   :  { %v5759_v43 = vpop.f32.mrf.mxu2  ;;  %v5779_v60 = vpop.f32.mrf.mxu3 }
 0x7d8   :  { %v5784_v37 = vadd.f32 %v5759_v43, %v5684_v52  ;;  %v5785_v55 = vadd.f32 %v5779_v60, %v5685_v21  ;;  %v5719_v6 = vpop.f32.mrf.mxu0  ;;  %v5739_v27 = vpop.f32.mrf.mxu1 }
 0x7d9   :  { %v5782_v44 = vadd.f32 %v5719_v6, %v5682_v7  ;;  %v5783_v59 = vadd.f32 %v5739_v27, %v5683_v12  ;;  %v7942_v6 = vld [vmem:[%s10030_s5 + $0x8] sm:$0xff] }
 0x7da   :  { %v5788_v25 = vmul.f32 0.7, %v5784_v37  ;;  %v5789_v36 = vmul.f32 0.7, %v5785_v55 }
 0x7db   :  { %v5786_v58 = vmul.f32 0.7, %v5782_v44  ;;  %v5787_v2 = vmul.f32 0.7, %v5783_v59 }
 0x7dc   :  { %v9556_v57 = vadd.f32 %v5788_v25, %v10141_v61  ;;  %v9559_v39 = vadd.f32 %v5789_v36, %v10143_v41  ;;  %v7943_v41 = vld [vmem:[%s10030_s5 + $0x10] sm:$0xff] }
 0x7dd   :  { %v9562_v19 = vadd.f32 %v5786_v58, %v10145_v16  ;;  %v9565_v38 = vadd.f32 %v5787_v2, %v10147_v62 }
 0x7de   :  { %10142 = vst [vmem:[#allocation10_spill] sm:$0xff] %v9556_v57  ;;  %5849 = vmatpush.msra.mxu2 %v9556_v57  ;;  %5869 = vmatpush.msra.mxu3 %v9559_v39 }
 0x7df   :  { %10144 = vst [vmem:[#allocation11_spill] sm:$0xff] %v9559_v39  ;;  %7824 = vmatmul.msk.f32.vlgmr.msra.gmra.mxu2 %vm278_vm0, %v7940_v54  ;;  %7825 = vmatmul.msk.f32.vlgmr.msra.gmra.mxu3 %vm278_vm0, %v7940_v54 }
 0x7e0   :  { %10146 = vst [vmem:[#allocation8_spill] sm:$0xff] %v9562_v19  ;;  %6076 = vrot.lane.b32.xlu0 %v9565_v38, %s7960_s19  ;;  %5976 = vrot.lane.b32.xlu2 %v9565_v38, %s7959_s18 }
 0x7e1   :  { %10148 = vst [vmem:[#allocation9_spill] sm:$0xff] %v9565_v38  ;;  %5876 = vrot.lane.b32.xlu1 %v9565_v38, %s7958_s13  ;;  %5809 = vmatpush.msra.mxu0 %v9562_v19 }
 0x7e2   :  { %5829 = vmatpush.msra.mxu1 %v9565_v38  ;;  %7822 = vmatmul.msk.f32.vlgmr.msra.gmra.mxu0 %vm278_vm0, %v7940_v54 }
 0x7e3   :  { %7823 = vmatmul.msk.f32.vlgmr.msra.gmra.mxu1 %vm278_vm0, %v7940_v54 }
 0x7e8   :  { %6074 = vrot.lane.b32.xlu0 %v9562_v19, %s7960_s19  ;;  %5974 = vrot.lane.b32.xlu2 %v9562_v19, %s7959_s18 }
 0x7e9   :  { %6176 = vrot.lane.b32.xlu1 %v9565_v38, %s7961_s0 }
 0x7f0   :  { %5880 = vrot.lane.b32.xlu0 %v9559_v39, %s7958_s13  ;;  %5878 = vrot.lane.b32.xlu2 %v9556_v57, %s7958_s13 }
 0x7f1   :  { %5874 = vrot.lane.b32.xlu1 %v9562_v19, %s7958_s13 }
 0x7f8   :  { %5978 = vrot.lane.b32.xlu0 %v9556_v57, %s7959_s18  ;;  %6274 = vrot.lane.b32.xlu2 %v9562_v19, %s7962_s20 }
 0x7f9   :  { %6174 = vrot.lane.b32.xlu1 %v9562_v19, %s7961_s0 }
 0x800   :  { %6374 = vrot.lane.b32.xlu0 %v9562_v19, %s7963_s21  ;;  %6080 = vrot.lane.b32.xlu2 %v9559_v39, %s7960_s19 }
 0x801   :  { %5980 = vrot.lane.b32.xlu1 %v9559_v39, %s7959_s18 }
 0x808   :  { %6180 = vrot.lane.b32.xlu0 %v9559_v39, %s7961_s0  ;;  %6178 = vrot.lane.b32.xlu2 %v9556_v57, %s7961_s0 }
 0x809   :  { %6078 = vrot.lane.b32.xlu1 %v9556_v57, %s7960_s19 }
 0x810   :  { %6278 = vrot.lane.b32.xlu0 %v9556_v57, %s7962_s20  ;;  %6276 = vrot.lane.b32.xlu2 %v9565_v38, %s7962_s20 }
 0x811   :  { %6474 = vrot.lane.b32.xlu1 %v9562_v19, %s7964_s22 }
 0x818   :  { %6376 = vrot.lane.b32.xlu0 %v9565_v38, %s7963_s21  ;;  %6380 = vrot.lane.b32.xlu2 %v9559_v39, %s7963_s21 }
 0x819   :  { %6280 = vrot.lane.b32.xlu1 %v9559_v39, %s7962_s20 }
 0x820   :  { %6478 = vrot.lane.b32.xlu0 %v9556_v57, %s7964_s22  ;;  %6480 = vrot.lane.b32.xlu2 %v9559_v39, %s7964_s22 }
 0x821   :  { %6378 = vrot.lane.b32.xlu1 %v9556_v57, %s7963_s21 }
 0x828   :  { %6578 = vrot.lane.b32.xlu0 %v9556_v57, %s7965_s23  ;;  %6574 = vrot.lane.b32.xlu2 %v9562_v19, %s7965_s23 }
 0x829   :  { %6476 = vrot.lane.b32.xlu1 %v9565_v38, %s7964_s22 }
 0x830   :  { %6576 = vrot.lane.b32.xlu2 %v9565_v38, %s7965_s23 }
 0x831   :  { %6580 = vrot.lane.b32.xlu1 %v9559_v39, %s7965_s23 }
 0x83a   :  { %v5977_v5 = vpop.permute.xlu2 %5976 }
 0x842   :  { %v5975_v47 = vpop.permute.xlu2 %5974 }
 0x843   :  { %v5984_v4 = vsel %vm474_vm5, %v5975_v47, %v5977_v5 }
 0x84a   :  { %v5879_v18 = vpop.permute.xlu2 %5878 }
 0x852   :  { %v9642_v14 = vpop.permute.xlu0 %6076  ;;  %v9644_v20 = vpop.permute.xlu2 %6274 }
 0x853   :  { %v5877_v10 = vpop.permute.xlu1 %5876 }
 0x854   :  { %v5883_v49 = vsel %vm370_vm10, %v5877_v10, %v5879_v18 }
 0x855   :  { %v5888_v23 = vmul.f32 %v8144_v33, %v5883_v49 }
 0x857   :  { %5945 = vmatpush.msrb.mxu2 %v5888_v23 }
 0x858   :  { %7828 = vmatmul.msk.f32.vlgmr.msrb.gmra.mxu2 %vm278_vm0, %v7941_v53 }
 0x85a   :  { %v6075_v15 = vpop.permute.xlu0 %6074  ;;  %v6081_v40 = vpop.permute.xlu2 %6080 }
 0x85b   :  { %v6177_v11 = vpop.permute.xlu1 %6176  ;;  %v6084_v51 = vsel %vm578_vm11, %v6075_v15, %v9642_v14  ;;  %v6085_v59 = vsel %vm578_vm11, %v6081_v40, %v6075_v15 }
 0x85c   :  { %v6087_v52 = vmul.f32 %v8175_v48, %v6084_v51  ;;  %v6086_v2 = vmul.f32 %v8233_v0, %v6085_v59 }
 0x862   :  { %v5881_v42 = vpop.permute.xlu0 %5880  ;;  %v6179_v9 = vpop.permute.xlu2 %6178 }
 0x863   :  { %v5882_v30 = vsel %vm370_vm10, %v5879_v18, %v5881_v42  ;;  %v5875_v24 = vpop.permute.xlu1 %5874  ;;  %v6183_v49 = vsel %vm682_vm1, %v6177_v11, %v6179_v9 }
 0x864   :  { %v5889_v3 = vmul.f32 %v8149_v34, %v5882_v30  ;;  %v5884_v56 = vsel %vm370_vm10, %v5875_v24, %v5877_v10  ;;  %v5885_v26 = vsel %vm370_vm10, %v5881_v42, %v5875_v24 }
 0x865   :  { %v5886_v46 = vmul.f32 %v8136_v31, %v5885_v26  ;;  %v5887_v29 = vmul.f32 %v8141_v32, %v5884_v56  ;;  %v7945_v26 = vld [vmem:[%s10030_s5 + $0x28] sm:$0xff] }
 0x866   :  { %5965 = vmatpush.msrb.mxu3 %v5889_v3 }
 0x867   :  { %5905 = vmatpush.msrb.mxu0 %v5886_v46  ;;  %5925 = vmatpush.msrb.mxu1 %v5887_v29 }
 0x868   :  { %7826 = vmatmul.msk.f32.vlgmr.msrb.gmra.mxu0 %vm278_vm0, %v7941_v53  ;;  %7827 = vmatmul.msk.f32.vlgmr.msrb.gmra.mxu1 %vm278_vm0, %v7941_v53 }
 0x869   :  { %7829 = vmatmul.msk.f32.vlgmr.msrb.gmra.mxu3 %vm278_vm0, %v7941_v53  ;;  %6025 = vmatpush.msra.mxu1 %v5984_v4 }
 0x86a   :  { %v5979_v21 = vpop.permute.xlu0 %5978  ;;  %v6277_v55 = vpop.permute.xlu2 %6276 }
 0x86b   :  { %6125 = vmatpush.msrb.mxu1 %v6087_v52  ;;  %v5983_v7 = vsel %vm474_vm5, %v5977_v5, %v5979_v21  ;;  %v6175_v12 = vpop.permute.xlu1 %6174  ;;  %v6284_v15 = vsel %vm786_vm3, %v9644_v20, %v6277_v55 }
 0x86c   :  { %v5988_v43 = vmul.f32 %v8126_v28, %v5983_v7  ;;  %v6184_v60 = vsel %vm682_vm1, %v6175_v12, %v6177_v11  ;;  %v7944_v11 = vld [vmem:[%s10030_s5 + $0x18] sm:$0xff] }
 0x86d   :  { %v6187_v37 = vmul.f32 %v8141_v32, %v6184_v60 }
 0x86e   :  { %6045 = vmatpush.msra.mxu2 %v5988_v43 }
 0x86f   :  { %7832 = vmatmul.msk.f32.vlgmr.msra.gmra.mxu2 %vm278_vm0, %v7942_v6 }
 0x870   :  { %7831 = vmatmul.msk.f32.vlgmr.msra.gmra.mxu1 %vm278_vm0, %v7942_v6 }
 0x871   :  { %6225 = vmatpush.msra.mxu1 %v6187_v37 }
 0x872   :  { %v6375_v27 = vpop.permute.xlu0 %6374  ;;  %v9691_v61 = vpop.permute.xlu2 %6380 }
 0x873   :  { %v5981_v44 = vpop.permute.xlu1 %5980 }
 0x874   :  { %v5982_v25 = vsel %vm474_vm5, %v5979_v21, %v5981_v44  ;;  %v5985_v36 = vsel %vm474_vm5, %v5981_v44, %v5975_v47 }
 0x875   :  { %v5986_v58 = vmul.f32 %v8186_v50, %v5985_v36  ;;  %6065 = vmatpush.msra.mxu3 %v5982_v25 }
 0x876   :  { %7833 = vmatmul.msk.f32.vlgmr.msra.gmra.mxu3 %vm278_vm0, %v7942_v6 }
 0x877   :  { %6005 = vmatpush.msra.mxu0 %v5986_v58  ;;  %v10151_v58 = vld [vmem:[#allocation2_spill] sm:$0xff] }
 0x878   :  { %7830 = vmatmul.msk.f32.vlgmr.msra.gmra.mxu0 %vm278_vm0, %v7942_v6  ;;  %7835 = vmatmul.msk.f32.vlgmr.msrb.gmra.mxu1 %vm278_vm0, %v7943_v41 }
 0x879   :  { %6105 = vmatpush.msrb.mxu0 %v6086_v2 }
 0x87a   :  { %v6181_v16 = vpop.permute.xlu0 %6180  ;;  %v6481_v30 = vpop.permute.xlu2 %6480 }
 0x87b   :  { %v6182_v62 = vsel %vm682_vm1, %v6179_v9, %v6181_v16  ;;  %v6185_v54 = vsel %vm682_vm1, %v6181_v16, %v6175_v12  ;;  %v6079_v5 = vpop.permute.xlu1 %6078  ;;  %v6385_v12 = vsel %vm890_vm2, %v9691_v61, %v6375_v27 }
 0x87c   :  { %v6186_v47 = vmul.f32 %v8282_v35, %v6185_v54  ;;  %v6082_v18 = vsel %vm578_vm11, %v6079_v5, %v6081_v40  ;;  %v6083_v10 = vsel %vm578_vm11, %v9642_v14, %v6079_v5  ;;  %v6189_v42 = vmul.f32 %v8149_v34, %v6182_v62  ;;  %v7946_v62 = vld [vmem:[%s10030_s5 + $0x30] sm:$0xff] }
 0x87d   :  { %v6088_v23 = vmul.f32 %v8230_v63, %v6083_v10  ;;  %v6089_v53 = vmul.f32 %v8238_v1, %v6082_v18  ;;  %v6188_v40 = vmul.f32 %v8264_v17, %v6183_v49  ;;  %v6286_v14 = vmul.f32 %v8307_v13, %v6284_v15 }
 0x87e   :  { %6205 = vmatpush.msra.mxu0 %v6186_v47 }
 0x87f   :  { %6145 = vmatpush.msrb.mxu2 %v6088_v23  ;;  %6165 = vmatpush.msrb.mxu3 %v6089_v53  ;;  %v10154_v53 = vld [vmem:[#allocation5_spill] sm:$0xff] }
 0x880   :  { %7834 = vmatmul.msk.f32.vlgmr.msrb.gmra.mxu0 %vm278_vm0, %v7943_v41  ;;  %7836 = vmatmul.msk.f32.vlgmr.msrb.gmra.mxu2 %vm278_vm0, %v7943_v41 }
 0x881   :  { %7837 = vmatmul.msk.f32.vlgmr.msrb.gmra.mxu3 %vm278_vm0, %v7943_v41  ;;  %7839 = vmatmul.msk.f32.vlgmr.msra.gmra.mxu1 %vm278_vm0, %v7944_v11 }
 0x882   :  { %6245 = vmatpush.msra.mxu2 %v6188_v40  ;;  %6265 = vmatpush.msra.mxu3 %v6189_v42  ;;  %v6279_v24 = vpop.permute.xlu0 %6278  ;;  %v6575_v4 = vpop.permute.xlu2 %6574  ;;  %v10155_v42 = vld [vmem:[#allocation7_spill] sm:$0xff] }
 0x883   :  { %6305 = vmatpush.msrb.mxu0 %v6286_v14  ;;  %v6283_v3 = vsel %vm786_vm3, %v6277_v55, %v6279_v24  ;;  %v6475_v9 = vpop.permute.xlu1 %6474  ;;  %v10149_v55 = vld [vmem:[#allocation3_spill] sm:$0xff]  ;;  %v7947_v14 = vld [vmem:[%s10030_s5 + $0x38] sm:$0xff] }
 0x884   :  { %v6287_v56 = vmul.f32 %v8175_v48, %v6283_v3  ;;  %v6485_v37 = vsel %vm994_vm7, %v6481_v30, %v6475_v9  ;;  %v6389_v6 = vmul.f32 %v10149_v55, %v6385_v12 }
 0x886   :  { %6325 = vmatpush.msrb.mxu1 %v6287_v56 }
 0x888   :  { %7838 = vmatmul.msk.f32.vlgmr.msra.gmra.mxu0 %vm278_vm0, %v7944_v11  ;;  %7840 = vmatmul.msk.f32.vlgmr.msra.gmra.mxu2 %vm278_vm0, %v7944_v11 }
 0x889   :  { %7841 = vmatmul.msk.f32.vlgmr.msra.gmra.mxu3 %vm278_vm0, %v7944_v11  ;;  %7843 = vmatmul.msk.f32.vlgmr.msrb.gmra.mxu1 %vm278_vm0, %v7945_v26 }
 0x88a   :  { %v6377_v51 = vpop.permute.xlu0 %6376  ;;  %v6577_v16 = vpop.permute.xlu2 %6576 }
 0x88b   :  { %v6384_v46 = vsel %vm890_vm2, %v6375_v27, %v6377_v51  ;;  %v6281_v29 = vpop.permute.xlu1 %6280 }
 0x88c   :  { %v6386_v52 = vmul.f32 %v8282_v35, %v6384_v46  ;;  %v6282_v21 = vsel %vm786_vm3, %v6279_v24, %v6281_v29  ;;  %v6285_v7 = vsel %vm786_vm3, %v6281_v29, %v9644_v20  ;;  %v10150_v20 = vld [vmem:[#allocation4_spill] sm:$0xff]  ;;  %v5811_v46 = vpop.f32.mrf.mxu0 }
 0x88d   :  { %v6288_v43 = vmul.f32 %v8302_v45, %v6282_v21  ;;  %v6289_v60 = vmul.f32 %v8238_v1, %v6285_v7  ;;  %v6489_v44 = vmul.f32 %v10150_v20, %v6485_v37 }
 0x88e   :  { %6405 = vmatpush.msra.mxu0 %v6386_v52  ;;  %v5871_v52 = vpop.f32.mrf.mxu3 }
 0x88f   :  { %6345 = vmatpush.msrb.mxu2 %v6288_v43  ;;  %6365 = vmatpush.msrb.mxu3 %v6289_v60 }
 0x890   :  { %7842 = vmatmul.msk.f32.vlgmr.msrb.gmra.mxu0 %vm278_vm0, %v7945_v26  ;;  %7844 = vmatmul.msk.f32.vlgmr.msrb.gmra.mxu2 %vm278_vm0, %v7945_v26 }
 0x891   :  { %7845 = vmatmul.msk.f32.vlgmr.msrb.gmra.mxu3 %vm278_vm0, %v7945_v26  ;;  %v7948_v26 = vld [vmem:[%s10030_s5 + $0x40] sm:$0xff] }
 0x892   :  { %6465 = vmatpush.msra.mxu3 %v6389_v6  ;;  %v6479_v27 = vpop.permute.xlu0 %6478 }
 0x893   :  { %v6379_v59 = vpop.permute.xlu1 %6378  ;;  %v6482_v54 = vsel %vm994_vm7, %v6479_v27, %v6481_v30 }
 0x894   :  { %6565 = vmatpush.msrb.mxu3 %v6489_v44  ;;  %v6382_v25 = vsel %vm890_vm2, %v6379_v59, %v9691_v61  ;;  %v6383_v36 = vsel %vm890_vm2, %v6377_v51, %v6379_v59  ;;  %v6584_v61 = vsel %vm10152_vm12, %v6575_v4, %v6577_v16  ;;  %v5831_v51 = vpop.f32.mrf.mxu1 }
 0x895   :  { %v6387_v2 = vmul.f32 %v10151_v58, %v6383_v36  ;;  %v6388_v41 = vmul.f32 %v8264_v17, %v6382_v25  ;;  %v6586_v10 = vmul.f32 %v8307_v13, %v6584_v61 }
 0x897   :  { %6425 = vmatpush.msra.mxu1 %v6387_v2  ;;  %6445 = vmatpush.msra.mxu2 %v6388_v41 }
 0x898   :  { %7846 = vmatmul.msk.f32.vlgmr.msra.gmra.mxu0 %vm278_vm0, %v7946_v62  ;;  %7847 = vmatmul.msk.f32.vlgmr.msra.gmra.mxu1 %vm278_vm0, %v7946_v62 }
 0x899   :  { %7848 = vmatmul.msk.f32.vlgmr.msra.gmra.mxu2 %vm278_vm0, %v7946_v62  ;;  %7849 = vmatmul.msk.f32.vlgmr.msra.gmra.mxu3 %vm278_vm0, %v7946_v62 }
 0x89a   :  { %6545 = vmatpush.msrb.mxu2 %v6482_v54  ;;  %v6579_v5 = vpop.permute.xlu0 %6578 }
 0x89b   :  { %v6583_v47 = vsel %vm10153_vm6, %v6577_v16, %v6579_v5  ;;  %v6477_v18 = vpop.permute.xlu1 %6476 }
 0x89c   :  { %v6483_v49 = vsel %vm994_vm7, %v6477_v18, %v6479_v27  ;;  %v6484_v23 = vsel %vm994_vm7, %v6475_v9, %v6477_v18  ;;  %v6587_v40 = vmul.f32 %v10155_v42, %v6583_v47  ;;  %v10157_v9 = vld [vmem:[#allocation6_spill] sm:$0xff] }
 0x89d   :  { %v6487_v15 = vmul.f32 %v10154_v53, %v6483_v49  ;;  %6505 = vmatpush.msrb.mxu0 %v6484_v23 }
 0x89f   :  { %6605 = vmatpush.msra.mxu0 %v6586_v10  ;;  %6525 = vmatpush.msrb.mxu1 %v6487_v15  ;;  %v10158_v10 = vld [vmem:[#allocation12_spill] sm:$0xff] }
 0x8a0   :  { %7850 = vmatmul.msk.f32.vlgmr.msrb.gmra.mxu0 %vm278_vm0, %v7947_v14  ;;  %7851 = vmatmul.msk.f32.vlgmr.msrb.gmra.mxu1 %vm278_vm0, %v7947_v14  ;;  %v5812_v49 = vadd.f32 %v5811_v46, %v10158_v10  ;;  %v5832_v23 = vadd.f32 %v5831_v51, %v10158_v10  ;;  %v5872_v39 = vadd.f32 %v5871_v52, %v10158_v10 }
 0x8a1   :  { %7852 = vmatmul.msk.f32.vlgmr.msrb.gmra.mxu2 %vm278_vm0, %v7947_v14  ;;  %7853 = vmatmul.msk.f32.vlgmr.msrb.gmra.mxu3 %vm278_vm0, %v7947_v14 }
 0x8a2   :  { %6625 = vmatpush.msra.mxu1 %v6587_v40 }
 0x8a3   :  { %v6581_v11 = vpop.permute.xlu1 %6580 }
 0x8a4   :  { %v6582_v30 = vsel %vm10156_vm13, %v6579_v5, %v6581_v11  ;;  %v6585_v24 = vsel %vm10109_vm4, %v6581_v11, %v6575_v4  ;;  %v5851_v4 = vpop.f32.mrf.mxu2 }
 0x8a5   :  { %v6588_v3 = vmul.f32 %v8302_v45, %v6582_v30  ;;  %v6589_v56 = vmul.f32 %v10157_v9, %v6585_v24 }
 0x8a7   :  { %6645 = vmatpush.msra.mxu2 %v6588_v3  ;;  %6665 = vmatpush.msra.mxu3 %v6589_v56 }
 0x8a8   :  { %7854 = vmatmul.msk.f32.vlgmr.msra.gmra.mxu0 %vm278_vm0, %v7948_v26  ;;  %7855 = vmatmul.msk.f32.vlgmr.msra.gmra.mxu1 %vm278_vm0, %v7948_v26 }
 0x8a9   :  { %7856 = vmatmul.msk.f32.vlgmr.msra.gmra.mxu2 %vm278_vm0, %v7948_v26  ;;  %7857 = vmatmul.msk.f32.vlgmr.msra.gmra.mxu3 %vm278_vm0, %v7948_v26  ;;  %v5852_v26 = vadd.f32 %v5851_v4, %v10158_v10 }
 0x8db   :  { %v5947_v12 = vpop.f32.mrf.mxu2 }
 0x8dc   :  { %v5972_v9 = vadd.f32 %v5947_v12, %v5852_v26 }
 0x8e5   :  { %v5927_v29 = vpop.f32.mrf.mxu1  ;;  %v5907_v21 = vpop.f32.mrf.mxu0 }
 0x8e6   :  { %v5970_v15 = vadd.f32 %v5907_v21, %v5812_v49  ;;  %v5971_v40 = vadd.f32 %v5927_v29, %v5832_v23 }
 0x8ec   :  { %v5967_v43 = vpop.f32.mrf.mxu3 }
 0x8ed   :  { %v6027_v7 = vpop.f32.mrf.mxu1  ;;  %v5973_v46 = vadd.f32 %v5967_v43, %v5872_v39 }
 0x8ee   :  { %v6071_v14 = vadd.f32 %v6027_v7, %v5971_v40 }
 0x8f2   :  { %v6047_v6 = vpop.f32.mrf.mxu2 }
 0x8f3   :  { %v6072_v21 = vadd.f32 %v6047_v6, %v5972_v9 }
 0x8f5   :  { %v6007_v60 = vpop.f32.mrf.mxu0  ;;  %v6127_v37 = vpop.f32.mrf.mxu1 }
 0x8f6   :  { %v6070_v11 = vadd.f32 %v6007_v60, %v5970_v15  ;;  %v6171_v30 = vadd.f32 %v6127_v37, %v6071_v14 }
 0x8f9   :  { %v6067_v44 = vpop.f32.mrf.mxu3 }
 0x8fa   :  { %v6073_v29 = vadd.f32 %v6067_v44, %v5973_v46  ;;  %v7949_v44 = vld [vmem:[%s10032_s7 + $0x20] sm:$0xff] }
 0x8fd   :  { %v6107_v27 = vpop.f32.mrf.mxu0 }
 0x8fe   :  { %v6227_v59 = vpop.f32.mrf.mxu1  ;;  %v6170_v24 = vadd.f32 %v6107_v27, %v6070_v11 }
 0x8ff   :  { %v6271_v19 = vadd.f32 %v6227_v59, %v6171_v30 }
 0x903   :  { %v6147_v25 = vpop.f32.mrf.mxu2 }
 0x904   :  { %v6167_v36 = vpop.f32.mrf.mxu3  ;;  %v6172_v37 = vadd.f32 %v6147_v25, %v6072_v21 }
 0x905   :  { %v6207_v2 = vpop.f32.mrf.mxu0  ;;  %v6173_v27 = vadd.f32 %v6167_v36, %v6073_v29 }
 0x906   :  { %v6327_v62 = vpop.f32.mrf.mxu1  ;;  %v6270_v22 = vadd.f32 %v6207_v2, %v6170_v24 }
 0x907   :  { %v6371_v42 = vadd.f32 %v6327_v62, %v6271_v19 }
 0x90b   :  { %v6247_v41 = vpop.f32.mrf.mxu2 }
 0x90c   :  { %v6267_v16 = vpop.f32.mrf.mxu3  ;;  %v6272_v40 = vadd.f32 %v6247_v41, %v6172_v37 }
 0x90d   :  { %v6307_v61 = vpop.f32.mrf.mxu0  ;;  %v6273_v52 = vadd.f32 %v6267_v16, %v6173_v27 }
 0x90e   :  { %v6370_v51 = vadd.f32 %v6307_v61, %v6270_v22 }
 0x913   :  { %v6347_v54 = vpop.f32.mrf.mxu2 }
 0x914   :  { %v6367_v5 = vpop.f32.mrf.mxu3  ;;  %v6372_v12 = vadd.f32 %v6347_v54, %v6272_v40 }
 0x915   :  { %v6407_v47 = vpop.f32.mrf.mxu0  ;;  %v6427_v18 = vpop.f32.mrf.mxu1  ;;  %v6373_v39 = vadd.f32 %v6367_v5, %v6273_v52 }
 0x916   :  { %v6470_v7 = vadd.f32 %v6407_v47, %v6370_v51  ;;  %v6471_v60 = vadd.f32 %v6427_v18, %v6371_v42 }
 0x91c   :  { %v6447_v3 = vpop.f32.mrf.mxu2  ;;  %v6467_v56 = vpop.f32.mrf.mxu3 }
 0x91d   :  { %v6507_v57 = vpop.f32.mrf.mxu0  ;;  %v6527_v38 = vpop.f32.mrf.mxu1  ;;  %v6472_v9 = vadd.f32 %v6447_v3, %v6372_v12  ;;  %v6473_v43 = vadd.f32 %v6467_v56, %v6373_v39 }
 0x91e   :  { %v6570_v49 = vadd.f32 %v6507_v57, %v6470_v7  ;;  %v6571_v23 = vadd.f32 %v6527_v38, %v6471_v60 }
 0x924   :  { %v6547_v15 = vpop.f32.mrf.mxu2  ;;  %v6567_v4 = vpop.f32.mrf.mxu3 }
 0x925   :  { %v6607_v10 = vpop.f32.mrf.mxu0  ;;  %v6627_v14 = vpop.f32.mrf.mxu1  ;;  %v6572_v57 = vadd.f32 %v6547_v15, %v6472_v9  ;;  %v6573_v38 = vadd.f32 %v6567_v4, %v6473_v43  ;;  %v7952_v43 = vld [vmem:[%s10032_s7 + $0x10] sm:$0xff] }
 0x926   :  { %v6670_v59 = vadd.f32 %v6607_v10, %v6570_v49  ;;  %v6671_v2 = vadd.f32 %v6627_v14, %v6571_v23  ;;  %v7950_v23 = vld [vmem:[%s10032_s7] sm:$0xff]  ;;  %v7951_v14 = vld [vmem:[%s10032_s7 + $0x8] sm:$0xff] }
 0x928   :  { %v6674_v19 = vmax.f32 %v6670_v59, 0.0  ;;  %v6675_v22 = vmax.f32 %v6671_v2, 0.0 }
 0x92a   :  { %6960 = vrot.lane.b32.xlu2 %v6675_v22, %s7960_s19  ;;  %6860 = vrot.lane.b32.xlu1 %v6675_v22, %s7959_s18 }
 0x92b   :  { %6760 = vrot.lane.b32.xlu0 %v6675_v22, %s7958_s13  ;;  %6693 = vmatpush.msrb.mxu0 %v6674_v19 }
 0x92c   :  { %6713 = vmatpush.msrb.mxu1 %v6675_v22  ;;  %v6647_v42 = vpop.f32.mrf.mxu2  ;;  %v6667_v6 = vpop.f32.mrf.mxu3  ;;  %7858 = vmatmul.msk.f32.vlgmr.msrb.gmra.mxu0 %vm278_vm0, %v7949_v44 }
 0x92d   :  { %v6672_v25 = vadd.f32 %v6647_v42, %v6572_v57  ;;  %v6673_v36 = vadd.f32 %v6667_v6, %v6573_v38  ;;  %7859 = vmatmul.msk.f32.vlgmr.msrb.gmra.mxu1 %vm278_vm0, %v7949_v44 }
 0x92f   :  { %v6676_v41 = vmax.f32 %v6672_v25, 0.0  ;;  %v6677_v16 = vmax.f32 %v6673_v36, 0.0 }
 0x931   :  { %6733 = vmatpush.msrb.mxu2 %v6676_v41  ;;  %6753 = vmatpush.msrb.mxu3 %v6677_v16 }
 0x932   :  { %7860 = vmatmul.msk.f32.vlgmr.msrb.gmra.mxu2 %vm278_vm0, %v7949_v44  ;;  %7861 = vmatmul.msk.f32.vlgmr.msrb.gmra.mxu3 %vm278_vm0, %v7949_v44 }
 0x933   :  { %7060 = vrot.lane.b32.xlu0 %v6675_v22, %s7961_s0  ;;  %6958 = vrot.lane.b32.xlu2 %v6674_v19, %s7960_s19 }
 0x934   :  { %6858 = vrot.lane.b32.xlu1 %v6674_v19, %s7959_s18 }
 0x93b   :  { %6764 = vrot.lane.b32.xlu2 %v6677_v16, %s7958_s13  ;;  %6758 = vrot.lane.b32.xlu0 %v6674_v19, %s7958_s13 }
 0x93c   :  { %6762 = vrot.lane.b32.xlu1 %v6676_v41, %s7958_s13 }
 0x943   :  { %6862 = vrot.lane.b32.xlu2 %v6676_v41, %s7959_s18  ;;  %7058 = vrot.lane.b32.xlu0 %v6674_v19, %s7961_s0 }
 0x944   :  { %7158 = vrot.lane.b32.xlu1 %v6674_v19, %s7962_s20 }
 0x94b   :  { %7258 = vrot.lane.b32.xlu2 %v6674_v19, %s7963_s21  ;;  %6864 = vrot.lane.b32.xlu0 %v6677_v16, %s7959_s18 }
 0x94c   :  { %6964 = vrot.lane.b32.xlu1 %v6677_v16, %s7960_s19 }
 0x953   :  { %7064 = vrot.lane.b32.xlu2 %v6677_v16, %s7961_s0  ;;  %6962 = vrot.lane.b32.xlu0 %v6676_v41, %s7960_s19 }
 0x954   :  { %7062 = vrot.lane.b32.xlu1 %v6676_v41, %s7961_s0 }
 0x95b   :  { %7162 = vrot.lane.b32.xlu2 %v6676_v41, %s7962_s20  ;;  %7358 = vrot.lane.b32.xlu0 %v6674_v19, %s7964_s22 }
 0x95c   :  { %7160 = vrot.lane.b32.xlu1 %v6675_v22, %s7962_s20 }
 0x963   :  { %7260 = vrot.lane.b32.xlu2 %v6675_v22, %s7963_s21  ;;  %7164 = vrot.lane.b32.xlu0 %v6677_v16, %s7962_s20 }
 0x964   :  { %7264 = vrot.lane.b32.xlu1 %v6677_v16, %s7963_s21 }
 0x96b   :  { %7362 = vrot.lane.b32.xlu2 %v6676_v41, %s7964_s22  ;;  %7262 = vrot.lane.b32.xlu0 %v6676_v41, %s7963_s21 }
 0x96c   :  { %7364 = vrot.lane.b32.xlu1 %v6677_v16, %s7964_s22 }
 0x973   :  { %7462 = vrot.lane.b32.xlu2 %v6676_v41, %s7965_s23  ;;  %7360 = vrot.lane.b32.xlu0 %v6675_v22, %s7964_s22 }
 0x974   :  { %7458 = vrot.lane.b32.xlu1 %v6674_v19, %s7965_s23 }
 0x97b   :  { %7464 = vrot.lane.b32.xlu0 %v6677_v16, %s7965_s23 }
 0x97c   :  { %7460 = vrot.lane.b32.xlu1 %v6675_v22, %s7965_s23 }
 0x984   :  { %v9845_v62 = vpop.permute.xlu2 %6960 }
 0x98d   :  { %v6959_v61 = vpop.permute.xlu2 %6958 }
 0x98e   :  { %v6968_v49 = vsel %vm578_vm11, %v6959_v61, %v9845_v62 }
 0x995   :  { %v6765_v54 = vpop.permute.xlu2 %6764 }
 0x99c   :  { %v6861_v5 = vpop.permute.xlu1 %6860 }
 0x99d   :  { %v6761_v47 = vpop.permute.xlu0 %6760  ;;  %v6863_v11 = vpop.permute.xlu2 %6862 }
 0x99e   :  { %v6867_v7 = vsel %vm474_vm5, %v6861_v5, %v6863_v11 }
 0x9a5   :  { %v7061_v18 = vpop.permute.xlu0 %7060  ;;  %v9859_v60 = vpop.permute.xlu2 %7258 }
 0x9a6   :  { %v6859_v30 = vpop.permute.xlu1 %6858 }
 0x9a7   :  { %v6868_v15 = vsel %vm474_vm5, %v6859_v30, %v6861_v5 }
 0x9aa   :  { %v6715_v8 = vpop.f32.mrf.mxu1 }
 0x9ad   :  { %v6759_v24 = vpop.permute.xlu0 %6758  ;;  %v7065_v10 = vpop.permute.xlu2 %7064 }
 0x9ae   :  { %v6763_v3 = vpop.permute.xlu1 %6762  ;;  %v6768_v56 = vsel %vm370_vm10, %v6759_v24, %v6761_v47  ;;  %v6769_v26 = vsel %vm370_vm10, %v6765_v54, %v6759_v24 }
 0x9af   :  { %v6766_v46 = vsel %vm370_vm10, %v6763_v3, %v6765_v54  ;;  %v6767_v51 = vsel %vm370_vm10, %v6761_v47, %v6763_v3  ;;  %v6770_v21 = vmul.f32 %v8136_v31, %v6769_v26  ;;  %v6771_v29 = vmul.f32 %v8141_v32, %v6768_v56  ;;  %v7954_v3 = vld [vmem:[%s10032_s7 + $0x28] sm:$0xff]  ;;  %vm10160_vm10 = vmmov %vm10109_vm4 }
 0x9b0   :  { %v6772_v37 = vmul.f32 %v8144_v33, %v6767_v51  ;;  %v6773_v27 = vmul.f32 %v8149_v34, %v6766_v46  ;;  %v6872_v31 = vmul.f32 %v8126_v28, %v6867_v7  ;;  %v6971_v33 = vmul.f32 %v8175_v48, %v6968_v49 }
 0x9b1   :  { %6789 = vmatpush.msra.mxu0 %v6770_v21  ;;  %6809 = vmatpush.msra.mxu1 %v6771_v29 }
 0x9b2   :  { %6829 = vmatpush.msra.mxu2 %v6772_v37  ;;  %6849 = vmatpush.msra.mxu3 %v6773_v27 }
 0x9b3   :  { %7862 = vmatmul.msk.f32.vlgmr.msra.gmra.mxu0 %vm278_vm0, %v7950_v23  ;;  %7863 = vmatmul.msk.f32.vlgmr.msra.gmra.mxu1 %vm278_vm0, %v7950_v23 }
 0x9b4   :  { %7864 = vmatmul.msk.f32.vlgmr.msra.gmra.mxu2 %vm278_vm0, %v7950_v23  ;;  %7865 = vmatmul.msk.f32.vlgmr.msra.gmra.mxu3 %vm278_vm0, %v7950_v23 }
 0x9b5   :  { %6909 = vmatpush.msrb.mxu1 %v6868_v15  ;;  %6929 = vmatpush.msrb.mxu2 %v6872_v31  ;;  %v7059_v4 = vpop.permute.xlu0 %7058  ;;  %v7163_v57 = vpop.permute.xlu2 %7162 }
 0x9b6   :  { %v9877_v28 = vpop.permute.xlu1 %7158  ;;  %v7068_v40 = vsel %vm682_vm1, %v7059_v4, %v7061_v18  ;;  %v7069_v19 = vsel %vm682_vm1, %v7065_v10, %v7059_v4 }
 0x9b7   :  { %7009 = vmatpush.msra.mxu1 %v6971_v33  ;;  %v7071_v52 = vmul.f32 %v8141_v32, %v7068_v40  ;;  %v7070_v38 = vmul.f32 %v8282_v35, %v7069_v19  ;;  %v7955_v33 = vld [vmem:[%s10032_s7 + $0x30] sm:$0xff]  ;;  %v7956_v40 = vld [vmem:[%s10032_s7 + $0x38] sm:$0xff] }
 0x9bb   :  { %7867 = vmatmul.msk.f32.vlgmr.msrb.gmra.mxu1 %vm278_vm0, %v7951_v14 }
 0x9bc   :  { %7868 = vmatmul.msk.f32.vlgmr.msrb.gmra.mxu2 %vm278_vm0, %v7951_v14  ;;  %7109 = vmatpush.msrb.mxu1 %v7071_v52 }
 0x9bd   :  { %v6865_v12 = vpop.permute.xlu0 %6864 }
 0x9be   :  { %v6965_v59 = vpop.permute.xlu1 %6964  ;;  %v6866_v39 = vsel %vm474_vm5, %v6863_v11, %v6865_v12  ;;  %v6869_v32 = vsel %vm474_vm5, %v6865_v12, %v6859_v30  ;;  %vm10159_vm5 = vmmov %vm10109_vm4  ;;  %v10161_v12 = vld [vmem:[#allocation7_spill] sm:$0xff] }
 0x9bf   :  { %v6969_v2 = vsel %vm578_vm11, %v6965_v59, %v6959_v61  ;;  %v6870_v9 = vmul.f32 %v8186_v50, %v6869_v32  ;;  %6949 = vmatpush.msrb.mxu3 %v6866_v39 }
 0x9c0   :  { %v6970_v22 = vmul.f32 %v8233_v0, %v6969_v2  ;;  %7869 = vmatmul.msk.f32.vlgmr.msrb.gmra.mxu3 %vm278_vm0, %v7951_v14 }
 0x9c1   :  { %6889 = vmatpush.msrb.mxu0 %v6870_v9  ;;  %v10164_v9 = vld [vmem:[#allocation6_spill] sm:$0xff] }
 0x9c2   :  { %7866 = vmatmul.msk.f32.vlgmr.msrb.gmra.mxu0 %vm278_vm0, %v7951_v14 }
 0x9c3   :  { %7871 = vmatmul.msk.f32.vlgmr.msra.gmra.mxu1 %vm278_vm0, %v7952_v43  ;;  %6989 = vmatpush.msra.mxu0 %v6970_v22 }
 0x9c5   :  { %7089 = vmatpush.msrb.mxu0 %v7070_v38  ;;  %v6963_v6 = vpop.permute.xlu0 %6962  ;;  %v6735_v38 = vpop.f32.mrf.mxu2 }
 0x9c6   :  { %v7063_v0 = vpop.permute.xlu1 %7062  ;;  %v6966_v44 = vsel %vm578_vm11, %v6963_v6, %v6965_v59  ;;  %v6967_v25 = vsel %vm578_vm11, %v9845_v62, %v6963_v6  ;;  %v7953_v62 = vld [vmem:[%s10032_s7 + $0x18] sm:$0xff]  ;;  %vm10162_vm11 = vmmov %vm10109_vm4 }
 0x9c7   :  { %v7066_v50 = vsel %vm682_vm1, %v7063_v0, %v7065_v10  ;;  %v7067_v42 = vsel %vm682_vm1, %v7061_v18, %v7063_v0  ;;  %v6972_v36 = vmul.f32 %v8230_v63, %v6967_v25  ;;  %v6973_v41 = vmul.f32 %v8238_v1, %v6966_v44  ;;  %v7261_v63 = vpop.permute.xlu2 %7260  ;;  %vm10163_vm1 = vmmov %vm10109_vm4  ;;  %v6755_v0 = vpop.f32.mrf.mxu3 }
 0x9c8   :  { %v7072_v16 = vmul.f32 %v8264_v17, %v7067_v42  ;;  %v7073_v61 = vmul.f32 %v8149_v34, %v7066_v50  ;;  %v7268_v30 = vsel %vm890_vm2, %v9859_v60, %v7261_v63 }
 0x9c9   :  { %7029 = vmatpush.msra.mxu2 %v6972_v36  ;;  %7049 = vmatpush.msra.mxu3 %v6973_v41  ;;  %v7270_v24 = vmul.f32 %v8282_v35, %v7268_v30 }
 0x9ca   :  { %7870 = vmatmul.msk.f32.vlgmr.msra.gmra.mxu0 %vm278_vm0, %v7952_v43  ;;  %7872 = vmatmul.msk.f32.vlgmr.msra.gmra.mxu2 %vm278_vm0, %v7952_v43 }
 0x9cb   :  { %7873 = vmatmul.msk.f32.vlgmr.msra.gmra.mxu3 %vm278_vm0, %v7952_v43  ;;  %7875 = vmatmul.msk.f32.vlgmr.msrb.gmra.mxu1 %vm278_vm0, %v7953_v62 }
 0x9cc   :  { %7129 = vmatpush.msrb.mxu2 %v7072_v16  ;;  %7149 = vmatpush.msrb.mxu3 %v7073_v61 }
 0x9cd   :  { %v7359_v47 = vpop.permute.xlu0 %7358 }
 0x9ce   :  { %v7161_v54 = vpop.permute.xlu1 %7160 }
 0x9cf   :  { %v7167_v34 = vsel %vm786_vm3, %v7161_v54, %v7163_v57  ;;  %v7168_v5 = vsel %vm786_vm3, %v9877_v28, %v7161_v54  ;;  %v7363_v23 = vpop.permute.xlu2 %7362 }
 0x9d0   :  { %v7170_v18 = vmul.f32 %v8307_v13, %v7168_v5  ;;  %v7171_v11 = vmul.f32 %v8175_v48, %v7167_v34 }
 0x9d2   :  { %7189 = vmatpush.msra.mxu0 %v7170_v18  ;;  %7209 = vmatpush.msra.mxu1 %v7171_v11 }
 0x9d3   :  { %7874 = vmatmul.msk.f32.vlgmr.msrb.gmra.mxu0 %vm278_vm0, %v7953_v62  ;;  %7876 = vmatmul.msk.f32.vlgmr.msrb.gmra.mxu2 %vm278_vm0, %v7953_v62 }
 0x9d4   :  { %7877 = vmatmul.msk.f32.vlgmr.msrb.gmra.mxu3 %vm278_vm0, %v7953_v62  ;;  %7879 = vmatmul.msk.f32.vlgmr.msra.gmra.mxu1 %vm278_vm0, %v7954_v3 }
 0x9d5   :  { %7289 = vmatpush.msrb.mxu0 %v7270_v24  ;;  %v7165_v26 = vpop.permute.xlu0 %7164 }
 0x9d6   :  { %v7265_v48 = vpop.permute.xlu1 %7264  ;;  %v7166_v35 = vsel %vm786_vm3, %v7163_v57, %v7165_v26  ;;  %v7169_v46 = vsel %vm786_vm3, %v7165_v26, %v9877_v28 }
 0x9d7   :  { %v7269_v56 = vsel %vm890_vm2, %v7265_v48, %v9859_v60  ;;  %v7172_v51 = vmul.f32 %v8302_v45, %v7166_v35  ;;  %v7173_v21 = vmul.f32 %v8238_v1, %v7169_v46  ;;  %v7463_v52 = vpop.permute.xlu2 %7462 }
 0x9d8   :  { %v7273_v29 = vmul.f32 %v10149_v55, %v7269_v56  ;;  %v10165_v56 = vld [vmem:[#allocation13_spill] sm:$0xff] }
 0x9d9   :  { %7229 = vmatpush.msra.mxu2 %v7172_v51  ;;  %7249 = vmatpush.msra.mxu3 %v7173_v21  ;;  %v6716_v35 = vadd.f32 %v6715_v8, %v10165_v56 }
 0x9db   :  { %7878 = vmatmul.msk.f32.vlgmr.msra.gmra.mxu0 %vm278_vm0, %v7954_v3  ;;  %7880 = vmatmul.msk.f32.vlgmr.msra.gmra.mxu2 %vm278_vm0, %v7954_v3 }
 0x9dc   :  { %7881 = vmatmul.msk.f32.vlgmr.msra.gmra.mxu3 %vm278_vm0, %v7954_v3 }
 0x9dd   :  { %7349 = vmatpush.msrb.mxu3 %v7273_v29  ;;  %v7263_v37 = vpop.permute.xlu0 %7262 }
 0x9de   :  { %v7365_v7 = vpop.permute.xlu1 %7364  ;;  %v7266_v1 = vsel %vm890_vm2, %v7263_v37, %v7265_v48  ;;  %v7267_v55 = vsel %vm890_vm2, %v7261_v63, %v7263_v37 }
 0x9df   :  { %v7369_v60 = vsel %vm994_vm7, %v7365_v7, %v7359_v47  ;;  %v7271_v49 = vmul.f32 %v10151_v58, %v7267_v55  ;;  %v7272_v31 = vmul.f32 %v8264_v17, %v7266_v1  ;;  %v6736_v1 = vadd.f32 %v6735_v38, %v10165_v56 }
 0x9e0   :  { %v7373_v27 = vmul.f32 %v10150_v20, %v7369_v60  ;;  %v7366_v20 = vsel %vm994_vm7, %v7363_v23, %v7365_v7  ;;  %v6756_v55 = vadd.f32 %v6755_v0, %v10165_v56 }
 0x9e1   :  { %7309 = vmatpush.msrb.mxu1 %v7271_v49  ;;  %7329 = vmatpush.msrb.mxu2 %v7272_v31 }
 0x9e2   :  { %7449 = vmatpush.msra.mxu3 %v7373_v27  ;;  %7883 = vmatmul.msk.f32.vlgmr.msrb.gmra.mxu1 %vm278_vm0, %v7955_v33 }
 0x9e3   :  { %7882 = vmatmul.msk.f32.vlgmr.msrb.gmra.mxu0 %vm278_vm0, %v7955_v33  ;;  %7884 = vmatmul.msk.f32.vlgmr.msrb.gmra.mxu2 %vm278_vm0, %v7955_v33 }
 0x9e4   :  { %7885 = vmatmul.msk.f32.vlgmr.msrb.gmra.mxu3 %vm278_vm0, %v7955_v33  ;;  %7429 = vmatpush.msra.mxu2 %v7366_v20 }
 0x9e5   :  { %v7361_v58 = vpop.permute.xlu0 %7360 }
 0x9e6   :  { %v7459_v17 = vpop.permute.xlu1 %7458  ;;  %v7367_v15 = vsel %vm994_vm7, %v7361_v58, %v7363_v23  ;;  %v7368_v28 = vsel %vm994_vm7, %v7359_v47, %v7361_v58 }
 0x9e7   :  { %v7371_v4 = vmul.f32 %v10154_v53, %v7367_v15  ;;  %7389 = vmatpush.msra.mxu0 %v7368_v28 }
 0x9e9   :  { %7409 = vmatpush.msra.mxu1 %v7371_v4 }
 0x9ea   :  { %7887 = vmatmul.msk.f32.vlgmr.msra.gmra.mxu1 %vm278_vm0, %v7956_v40 }
 0x9eb   :  { %7886 = vmatmul.msk.f32.vlgmr.msra.gmra.mxu0 %vm278_vm0, %v7956_v40  ;;  %7888 = vmatmul.msk.f32.vlgmr.msra.gmra.mxu2 %vm278_vm0, %v7956_v40 }
 0x9ec   :  { %7889 = vmatmul.msk.f32.vlgmr.msra.gmra.mxu3 %vm278_vm0, %v7956_v40 }
 0x9ed   :  { %v7465_v59 = vpop.permute.xlu0 %7464 }
 0x9ee   :  { %v7461_v10 = vpop.permute.xlu1 %7460  ;;  %v7466_v32 = vsel %vm10162_vm11, %v7463_v52, %v7465_v59  ;;  %v7469_v19 = vsel %vm10163_vm1, %v7465_v59, %v7459_v17 }
 0x9ef   :  { %v7467_v14 = vsel %vm10159_vm5, %v7461_v10, %v7463_v52  ;;  %v7468_v53 = vsel %vm10160_vm10, %v7459_v17, %v7461_v10  ;;  %v7472_v22 = vmul.f32 %v8302_v45, %v7466_v32  ;;  %v7473_v43 = vmul.f32 %v10164_v9, %v7469_v19  ;;  %v6695_v45 = vpop.f32.mrf.mxu0 }
 0x9f0   :  { %v7470_v2 = vmul.f32 %v8307_v13, %v7468_v53  ;;  %v7471_v39 = vmul.f32 %v10161_v12, %v7467_v14  ;;  %v7957_v13 = vld [vmem:[%s10032_s7 + $0x40] sm:$0xff]  ;;  %v6696_v26 = vadd.f32 %v6695_v45, %v10165_v56 }
 0x9f1   :  { %7529 = vmatpush.msrb.mxu2 %v7472_v22  ;;  %7549 = vmatpush.msrb.mxu3 %v7473_v43 }
 0x9f2   :  { %7489 = vmatpush.msrb.mxu0 %v7470_v2  ;;  %7509 = vmatpush.msrb.mxu1 %v7471_v39 }
 0x9f3   :  { %7890 = vmatmul.msk.f32.vlgmr.msrb.gmra.mxu0 %vm278_vm0, %v7957_v13  ;;  %7891 = vmatmul.msk.f32.vlgmr.msrb.gmra.mxu1 %vm278_vm0, %v7957_v13 }
 0x9f4   :  { %7892 = vmatmul.msk.f32.vlgmr.msrb.gmra.mxu2 %vm278_vm0, %v7957_v13  ;;  %7893 = vmatmul.msk.f32.vlgmr.msrb.gmra.mxu3 %vm278_vm0, %v7957_v13 }
 0xa30   :  { %v6811_v57 = vpop.f32.mrf.mxu1  ;;  %v6791_v50 = vpop.f32.mrf.mxu0 }
 0xa31   :  { %v6854_v46 = vadd.f32 %v6791_v50, %v6696_v26  ;;  %v6855_v51 = vadd.f32 %v6811_v57, %v6716_v35  ;;  %v10166_v50 = vld [vmem:[#allocation8_spill] sm:$0xff] }
 0xa37   :  { %v6831_v6 = vpop.f32.mrf.mxu2  ;;  %v6851_v44 = vpop.f32.mrf.mxu3 }
 0xa38   :  { %v6911_v42 = vpop.f32.mrf.mxu1  ;;  %v6856_v20 = vadd.f32 %v6831_v6, %v6736_v1  ;;  %v6857_v17 = vadd.f32 %v6851_v44, %v6756_v55  ;;  %v10167_v6 = vld [vmem:[#allocation9_spill] sm:$0xff] }
 0xa39   :  { %v6955_v21 = vadd.f32 %v6911_v42, %v6855_v51 }
 0xa3f   :  { %v6891_v25 = vpop.f32.mrf.mxu0  ;;  %v6931_v41 = vpop.f32.mrf.mxu2 }
 0xa40   :  { %v7011_v36 = vpop.f32.mrf.mxu1  ;;  %v6954_v29 = vadd.f32 %v6891_v25, %v6854_v46  ;;  %v6956_v28 = vadd.f32 %v6931_v41, %v6856_v20 }
 0xa41   :  { %v7055_v7 = vadd.f32 %v7011_v36, %v6955_v21 }
 0xa43   :  { %v6951_v16 = vpop.f32.mrf.mxu3 }
 0xa44   :  { %v6957_v4 = vadd.f32 %v6951_v16, %v6857_v17 }
 0xa47   :  { %v6991_v61 = vpop.f32.mrf.mxu0 }
 0xa48   :  { %v7111_v62 = vpop.f32.mrf.mxu1  ;;  %v7054_v60 = vadd.f32 %v6991_v61, %v6954_v29 }
 0xa49   :  { %v7155_v23 = vadd.f32 %v7111_v62, %v7055_v7 }
 0xa4d   :  { %v7031_v63 = vpop.f32.mrf.mxu2 }
 0xa4e   :  { %v7051_v54 = vpop.f32.mrf.mxu3  ;;  %v7056_v10 = vadd.f32 %v7031_v63, %v6956_v28 }
 0xa4f   :  { %v7057_v14 = vadd.f32 %v7051_v54, %v6957_v4 }
 0xa50   :  { %v7091_v34 = vpop.f32.mrf.mxu0 }
 0xa51   :  { %v7211_v18 = vpop.f32.mrf.mxu1  ;;  %v7154_v33 = vadd.f32 %v7091_v34, %v7054_v60  ;;  %v10168_v34 = vld [vmem:[#allocation10_spill] sm:$0xff] }
 0xa52   :  { %v7255_v58 = vadd.f32 %v7211_v18, %v7155_v23 }
 0xa56   :  { %v7131_v5 = vpop.f32.mrf.mxu2 }
 0xa57   :  { %v7151_v47 = vpop.f32.mrf.mxu3  ;;  %v7156_v39 = vadd.f32 %v7131_v5, %v7056_v10 }
 0xa58   :  { %v7191_v11 = vpop.f32.mrf.mxu0  ;;  %v7157_v32 = vadd.f32 %v7151_v47, %v7057_v14  ;;  %v10169_v47 = vld [vmem:[#allocation11_spill] sm:$0xff] }
 0xa59   :  { %v7254_v15 = vadd.f32 %v7191_v11, %v7154_v33 }
 0xa5e   :  { %v7231_v30 = vpop.f32.mrf.mxu2 }
 0xa5f   :  { %v7251_v24 = vpop.f32.mrf.mxu3  ;;  %v7311_v48 = vpop.f32.mrf.mxu1  ;;  %v7256_v13 = vadd.f32 %v7231_v30, %v7156_v39 }
 0xa60   :  { %v7291_v3 = vpop.f32.mrf.mxu0  ;;  %v7355_v52 = vadd.f32 %v7311_v48, %v7255_v58  ;;  %v7257_v8 = vadd.f32 %v7251_v24, %v7157_v32 }
 0xa61   :  { %v7354_v40 = vadd.f32 %v7291_v3, %v7254_v15 }
 0xa66   :  { %v7331_v37 = vpop.f32.mrf.mxu2 }
 0xa67   :  { %v7351_v27 = vpop.f32.mrf.mxu3  ;;  %v7411_v31 = vpop.f32.mrf.mxu1  ;;  %v7356_v38 = vadd.f32 %v7331_v37, %v7256_v13 }
 0xa68   :  { %v7391_v49 = vpop.f32.mrf.mxu0  ;;  %v7455_v59 = vadd.f32 %v7411_v31, %v7355_v52  ;;  %v7357_v0 = vadd.f32 %v7351_v27, %v7257_v8 }
 0xa69   :  { %v7454_v53 = vadd.f32 %v7391_v49, %v7354_v40 }
 0xa6e   :  { %v7431_v2 = vpop.f32.mrf.mxu2 }
 0xa6f   :  { %v7451_v12 = vpop.f32.mrf.mxu3  ;;  %v7456_v25 = vadd.f32 %v7431_v2, %v7356_v38 }
 0xa70   :  { %v7491_v19 = vpop.f32.mrf.mxu0  ;;  %v7511_v22 = vpop.f32.mrf.mxu1  ;;  %v7457_v36 = vadd.f32 %v7451_v12, %v7357_v0 }
 0xa71   :  { %v7554_v9 = vadd.f32 %v7491_v19, %v7454_v53  ;;  %v7555_v43 = vadd.f32 %v7511_v22, %v7455_v59 }
 0xa73   :  { %v7558_v45 = vmul.f32 0.7, %v7554_v9  ;;  %v7559_v57 = vmul.f32 0.7, %v7555_v43 }
 0xa75   :  { %v7562_v42 = vadd.f32 %v7558_v45, %v10166_v50  ;;  %v7563_v44 = vadd.f32 %v7559_v57, %v10167_v6 }
 0xa77   :  { %7566 = vst [vmem:[%s10034_s9] sm:$0xff] %v7562_v42  ;;  %v7531_v41 = vpop.f32.mrf.mxu2  ;;  %v7551_v16 = vpop.f32.mrf.mxu3 }
 0xa78   :  { %7567 = vst [vmem:[%s10034_s9 + $0x8] sm:$0xff] %v7563_v44  ;;  %v7556_v61 = vadd.f32 %v7531_v41, %v7456_v25  ;;  %v7557_v62 = vadd.f32 %v7551_v16, %v7457_v36 }
 0xa7a   :  { %v7560_v63 = vmul.f32 0.7, %v7556_v61  ;;  %v7561_v54 = vmul.f32 0.7, %v7557_v62 }
 0xa7c   :  { %v7564_v5 = vadd.f32 %v7560_v63, %v10168_v34  ;;  %v7565_v18 = vadd.f32 %v7561_v54, %v10169_v47 }
 0xa7e   :  { %7568 = vst [vmem:[%s10034_s9 + $0x10] sm:$0xff] %v7564_v5 }
 0xa7f   :  { %7569 = vst [vmem:[%s10034_s9 + $0x18] sm:$0xff] %v7565_v18 }

</bundles_post_ra>
